<compile_context>
chip_gen: v7x
topology: tpu7x:2x2x1
jax: 0.10.0
libtpu: 0.0.40
codegen_flags: <defaults>
</compile_context>

<pallas_src>
import functools

import numpy as np
import jax
import jax.numpy as jnp
from jax.experimental import pallas as pl
from jax.experimental.pallas import tpu as pltpu


# MXU operand / inter-kernel activation dtype.  Accumulation, LN/softmax stats and GELU
# stay in float32 inside the kernels.
MATMUL_DTYPE = jnp.bfloat16
ACT_DTYPE = jnp.bfloat16

VMEM_LIMIT_BIG = 64 * 1024 * 1024   # conv (full sequence) / attention (full K/V)
VMEM_LIMIT_MM = 32 * 1024 * 1024    # tiled matmul-style kernels


def _cparams(sem, vmem_bytes):
    return pltpu.CompilerParams(dimension_semantics=sem, vmem_limit_bytes=vmem_bytes)


# ----------------------------------------------------------------------------
# In-kernel math helpers
# ----------------------------------------------------------------------------
def _gelu(x):
    # tanh-approx GELU in f32 (single EUP tanh instead of the ~12-op erf polynomial).
    c = 0.7978845608028654  # sqrt(2/pi)
    return 0.5 * x * (1.0 + jnp.tanh(c * (x + 0.044715 * x * x * x)))


def _to(x, dt):
    return x if x.dtype == dt else x.astype(dt)


# ----------------------------------------------------------------------------
# Tile-size helpers (blocks must be (8,128)-aligned or full-extent)
# ----------------------------------------------------------------------------
def _round_down(v, m):
    return max(m, (v // m) * m)


def _pick_m_tile(M, target=512):
    return M if M <= target else _round_down(target, 8)


def _pick_n_tile(N, target=512):
    return N if N <= target else _round_down(target, 128)


def _pick_k_tile(K, target=512):
    # K tile must divide K exactly (reduction axis -> no partial blocks allowed).
    if K <= target:
        return K
    for cand in range(_round_down(target, 128), 0, -128):
        if K % cand == 0:
            return cand
    return K


def _heads_per_block(n_head, dh):
    # Smallest head-group so that the per-block channel width is lane-dense
    # (multiple of 128); fall back to all heads (full n_state, small-model case).
    for g in range(1, n_head + 1):
        if n_head % g == 0 and (g * dh) % 128 == 0:
            return g
    return n_head


# ----------------------------------------------------------------------------
# Tiled matmul (bias + GELU + residual fused in the epilogue)
# ----------------------------------------------------------------------------
def _linear_kernel(x_ref, w_ref, b_ref, *rest, activation, cd, has_res):
    if has_res:
        res_ref, o_ref, acc_ref = rest
    else:
        o_ref, acc_ref = rest

    @pl.when(pl.program_id(2) == 0)
    def _():
        acc_ref[...] = jnp.zeros_like(acc_ref)

    acc_ref[...] += jnp.dot(_to(x_ref[...], cd), w_ref[...],
                            preferred_element_type=jnp.float32)

    @pl.when(pl.program_id(2) == pl.num_programs(2) - 1)
    def _():
        y = acc_ref[...] + b_ref[...]
        if activation == "gelu":
            y = _gelu(y)
        if has_res:
            y = y + res_ref[...].astype(jnp.float32)
        o_ref[...] = y.astype(o_ref.dtype)


def linear(x, w, b=None, activation="none", residual=None, out_dtype=ACT_DTYPE,
           tm_target=512, tn_target=512, tk_target=512):
    """y = act(x @ w + b) [+ residual].  x: (M, K) bf16, w: (K, N) bf16."""
    M, K = x.shape
    N = w.shape[1]
    tm = _pick_m_tile(M, tm_target)
    tn = _pick_n_tile(N, tn_target)
    tk = _pick_k_tile(K, tk_target)
    grid = (pl.cdiv(M, tm), pl.cdiv(N, tn), K // tk)

    b2 = (jnp.zeros((N,), jnp.float32) if b is None else b).reshape(1, N).astype(jnp.float32)
    has_res = residual is not None

    in_specs = [
        pl.BlockSpec((tm, tk), lambda i, j, k: (i, k)),
        pl.BlockSpec((tk, tn), lambda i, j, k: (k, j)),
        pl.BlockSpec((1, tn), lambda i, j, k: (0, j)),
    ]
    inputs = [x, w, b2]
    io_alias = {}
    if has_res:
        in_specs.append(pl.BlockSpec((tm, tn), lambda i, j, k: (i, j)))
        inputs.append(residual)
        io_alias = {3: 0}          # write the residual buffer in place

    return pl.pallas_call(
        functools.partial(_linear_kernel, activation=activation, cd=MATMUL_DTYPE,
                          has_res=has_res),
        out_shape=jax.ShapeDtypeStruct((M, N), out_dtype),
        grid=grid,
        in_specs=in_specs,
        out_specs=pl.BlockSpec((tm, tn), lambda i, j, k: (i, j)),
        scratch_shapes=[pltpu.VMEM((tm, tn), jnp.float32)],
        compiler_params=_cparams(("parallel", "parallel", "arbitrary"), VMEM_LIMIT_MM),
        input_output_aliases=io_alias,
    )(*inputs)


# ----------------------------------------------------------------------------
# Fused LayerNorm + matmul (LN result cached across the N tiles in a VMEM scratch)
# ----------------------------------------------------------------------------
def _ln_linear_kernel(x_ref, g_ref, bln_ref, w_ref, b_ref, o_ref, xn_ref, *,
                      eps, activation):
    @pl.when(pl.program_id(1) == 0)
    def _():
        x = x_ref[...].astype(jnp.float32)
        mean = jnp.mean(x, axis=-1, keepdims=True)
        xc = x - mean
        var = jnp.mean(xc * xc, axis=-1, keepdims=True)
        xn = xc * jax.lax.rsqrt(var + eps) * g_ref[...] + bln_ref[...]
        xn_ref[...] = xn.astype(xn_ref.dtype)

    y = jnp.dot(xn_ref[...], w_ref[...], preferred_element_type=jnp.float32) + b_ref[...]
    if activation == "gelu":
        y = _gelu(y)
    o_ref[...] = y.astype(o_ref.dtype)


def ln_linear(x, gamma, beta, w, b=None, activation="none", out_dtype=ACT_DTYPE,
              tm_target=512, tn_target=512, eps=1e-5):
    """y = act(LayerNorm(x) @ w + b).  Full K per block (LN needs the whole row)."""
    M, K = x.shape
    N = w.shape[1]
    tm = _pick_m_tile(M, tm_target)
    tn = _pick_n_tile(N, tn_target)
    grid = (pl.cdiv(M, tm), pl.cdiv(N, tn))
    g2 = gamma.reshape(1, K).astype(jnp.float32)
    bt2 = beta.reshape(1, K).astype(jnp.float32)
    b2 = (jnp.zeros((N,), jnp.float32) if b is None else b).reshape(1, N).astype(jnp.float32)

    return pl.pallas_call(
        functools.partial(_ln_linear_kernel, eps=eps, activation=activation),
        out_shape=jax.ShapeDtypeStruct((M, N), out_dtype),
        grid=grid,
        in_specs=[
            pl.BlockSpec((tm, K), lambda i, j: (i, 0)),
            pl.BlockSpec((1, K), lambda i, j: (0, 0)),
            pl.BlockSpec((1, K), lambda i, j: (0, 0)),
            pl.BlockSpec((K, tn), lambda i, j: (0, j)),
            pl.BlockSpec((1, tn), lambda i, j: (0, j)),
        ],
        out_specs=pl.BlockSpec((tm, tn), lambda i, j: (i, j)),
        scratch_shapes=[pltpu.VMEM((tm, K), MATMUL_DTYPE)],
        compiler_params=_cparams(("parallel", "arbitrary"), VMEM_LIMIT_MM),
    )(x, g2, bt2, w, b2)


# ----------------------------------------------------------------------------
# Attention (folded-heads layout, fused-qkv input, lane-dense output store)
# ----------------------------------------------------------------------------
def _attention_kernel(q_ref, k_ref, v_ref, o_ref, *, n_grp, dh, cd):
    """Softmax attention for a (query-tile, head-group) block.

    The 1/sqrt(dh) scale is pre-folded into the q projection, so no scaling here.
    Per-head reads slice lanes (unavoidable without re-layout); the head results are
    concatenated so the output store is a single lane-dense slab.
    """
    outs = []
    for g in range(n_grp):
        lo, hi = g * dh, (g + 1) * dh
        q = _to(q_ref[0, :, lo:hi], cd)               # (tq, dh)
        k = _to(k_ref[0, :, lo:hi], cd)               # (T,  dh)
        v = _to(v_ref[0, :, lo:hi], cd)               # (T,  dh)
        s = jax.lax.dot_general(q, k, (((1,), (1,)), ((), ())),
                                preferred_element_type=jnp.float32)
        m = jnp.max(s, axis=-1, keepdims=True)
        p = jnp.exp(s - m)
        denom = jnp.sum(p, axis=-1, keepdims=True)
        w = p * pl.reciprocal(denom, approx=True)
        outs.append(jnp.dot(w.astype(cd), v, preferred_element_type=jnp.float32))
    o = outs[0] if n_grp == 1 else jnp.concatenate(outs, axis=-1)
    o_ref[0] = o.astype(o_ref.dtype)                  # single lane-dense store


def attention_from_qkv(qkv, B, T, n_state, n_head, tq_target=128):
    """qkv: (B*T, 3*n_state) bf16 with channels [q | k | v], heads folded."""
    dh = n_state // n_head
    n_grp = _heads_per_block(n_head, dh)              # heads per grid step
    gdh = n_grp * dh
    n_hblk = n_head // n_grp
    tq = T if T <= tq_target else _round_down(tq_target, 8)
    grid = (B, n_hblk, pl.cdiv(T, tq))

    kern = functools.partial(_attention_kernel, n_grp=n_grp, dh=dh, cd=MATMUL_DTYPE)
    out_spec = pl.BlockSpec((1, tq, gdh), lambda b, h, i: (b, i, h))
    cp = _cparams(("parallel", "parallel", "parallel"), VMEM_LIMIT_BIG)

    if gdh % 128 == 0:
        # Lane-dense head group: read q/k/v straight out of the fused qkv buffer via
        # channel-offset index maps (no host-side slicing => no extra HBM round trips).
        qkv3 = qkv.reshape(B, T, 3 * n_state)
        in_specs = [
            pl.BlockSpec((1, tq, gdh), lambda b, h, i: (b, i, h)),
            pl.BlockSpec((1, T, gdh), lambda b, h, i: (b, 0, h + n_hblk)),
            pl.BlockSpec((1, T, gdh), lambda b, h, i: (b, 0, h + 2 * n_hblk)),
        ]
        args = (qkv3, qkv3, qkv3)
    else:
        # Small-model fallback (gdh == n_state < 128): slice host-side so every block
        # spans the full channel extent, which is always a legal BlockSpec.
        q = qkv[:, :n_state].reshape(B, T, n_state)
        k = qkv[:, n_state:2 * n_state].reshape(B, T, n_state)
        v = qkv[:, 2 * n_state:].reshape(B, T, n_state)
        in_specs = [
            pl.BlockSpec((1, tq, gdh), lambda b, h, i: (b, i, h)),
            pl.BlockSpec((1, T, gdh), lambda b, h, i: (b, 0, h)),
            pl.BlockSpec((1, T, gdh), lambda b, h, i: (b, 0, h)),
        ]
        args = (q, k, v)

    return pl.pallas_call(
        kern,
        out_shape=jax.ShapeDtypeStruct((B, T, n_state), ACT_DTYPE),
        grid=grid,
        in_specs=in_specs,
        out_specs=out_spec,
        compiler_params=cp,
    )(*args)


# ----------------------------------------------------------------------------
# Conv1d kernels (channels-last, lowered to matmuls) + GELU
# ----------------------------------------------------------------------------
def _conv_s1_kernel(x_ref, w_ref, b_ref, o_ref, *, t_out, cd):
    """Conv1d k=3 s=1 p=1 (input pre-padded) as 3 shifted matmuls + GELU.
    Cin is small (n_mels), so shifting the input is cheaper than shifting the output."""
    x = _to(x_ref[0], cd)
    acc = jnp.dot(x[0:t_out, :], w_ref[0], preferred_element_type=jnp.float32)
    acc += jnp.dot(x[1:t_out + 1, :], w_ref[1], preferred_element_type=jnp.float32)
    acc += jnp.dot(x[2:t_out + 2, :], w_ref[2], preferred_element_type=jnp.float32)
    o_ref[0] = _gelu(acc + b_ref[...]).astype(o_ref.dtype)


def conv1d_gelu_s1(xp, w, b, t_out, tn_target=512):
    """xp: (B, T+2, Cin) padded input; w: (3, Cin, Cout); returns (B, t_out, Cout) bf16."""
    B, tp2, cin = xp.shape
    cout = w.shape[2]
    tn = _pick_n_tile(cout, tn_target)
    b2 = b.reshape(1, cout).astype(jnp.float32)
    # TODO(synk): add halo-based time tiling (manual DMA) for very long sequences on v7x.
    return pl.pallas_call(
        functools.partial(_conv_s1_kernel, t_out=t_out, cd=MATMUL_DTYPE),
        out_shape=jax.ShapeDtypeStruct((B, t_out, cout), ACT_DTYPE),
        grid=(B, pl.cdiv(cout, tn)),
        in_specs=[
            pl.BlockSpec((1, tp2, cin), lambda bi, j: (bi, 0, 0)),
            pl.BlockSpec((3, cin, tn), lambda bi, j: (0, 0, j)),
            pl.BlockSpec((1, tn), lambda bi, j: (0, j)),
        ],
        out_specs=pl.BlockSpec((1, t_out, tn), lambda bi, j: (bi, 0, j)),
        compiler_params=_cparams(("parallel", "parallel"), VMEM_LIMIT_BIG),
    )(xp, w, b2)


def _conv_s2_kernel(xe_ref, xo_ref, w_ref, b_ref, pos_ref, o_ref, *, t_out, cd):
    """Conv1d k=3 s=2 p=1 via even/odd split + GELU + positional-embedding add.

    The sublane shift is applied to the (rows, tn) matmul *results* (narrower than the
    (rows, Cin) input at scale), i.e. shift(x)@W == shift(x@W) up to the dropped rows.
      y[t] = xe[t]@W0 + xo[t]@W1 + xe[t+1]@W2
    """
    xe = _to(xe_ref[0], cd)
    xo = _to(xo_ref[0], cd)
    z0 = jnp.dot(xe, w_ref[0], preferred_element_type=jnp.float32)   # (te, tn)
    z1 = jnp.dot(xo, w_ref[1], preferred_element_type=jnp.float32)   # (to, tn)
    z2 = jnp.dot(xe, w_ref[2], preferred_element_type=jnp.float32)   # (te, tn)
    acc = z0[0:t_out] + z1[0:t_out] + z2[1:t_out + 1]
    o_ref[0] = (_gelu(acc + b_ref[...]) + pos_ref[...]).astype(o_ref.dtype)


def conv1d_gelu_s2_pos(xe, xo, w, b, pos, t_out, tn_target=512):
    """xe/xo: even/odd rows of the padded input; pos: (t_out, Cout) positional embedding."""
    B, te, cin = xe.shape
    to = xo.shape[1]
    cout = w.shape[2]
    tn = _pick_n_tile(cout, tn_target)
    b2 = b.reshape(1, cout).astype(jnp.float32)
    # TODO(synk): add halo-based time tiling (manual DMA) for very long sequences on v7x.
    return pl.pallas_call(
        functools.partial(_conv_s2_kernel, t_out=t_out, cd=MATMUL_DTYPE),
        out_shape=jax.ShapeDtypeStruct((B, t_out, cout), ACT_DTYPE),
        grid=(B, pl.cdiv(cout, tn)),
        in_specs=[
            pl.BlockSpec((1, te, cin), lambda bi, j: (bi, 0, 0)),
            pl.BlockSpec((1, to, cin), lambda bi, j: (bi, 0, 0)),
            pl.BlockSpec((3, cin, tn), lambda bi, j: (0, 0, j)),
            pl.BlockSpec((1, tn), lambda bi, j: (0, j)),
            pl.BlockSpec((t_out, tn), lambda bi, j: (0, j)),
        ],
        out_specs=pl.BlockSpec((1, t_out, tn), lambda bi, j: (bi, 0, j)),
        compiler_params=_cparams(("parallel", "parallel"), VMEM_LIMIT_BIG),
    )(xe, xo, w, b2, pos)


# ----------------------------------------------------------------------------
# Fused AvgPool1d(2,2) + ln_post + proj
# ----------------------------------------------------------------------------
def _pool_ln_proj_kernel(x_ref, g_ref, bln_ref, w_ref, b_ref, o_ref, *, n_state, eps, cd):
    x = x_ref[...].astype(jnp.float32)               # (tm, 2*n_state): [t even | t odd]
    hp = (x[:, :n_state] + x[:, n_state:]) * 0.5
    mean = jnp.mean(hp, axis=-1, keepdims=True)
    xc = hp - mean
    var = jnp.mean(xc * xc, axis=-1, keepdims=True)
    xn = xc * jax.lax.rsqrt(var + eps) * g_ref[...] + bln_ref[...]
    y = jnp.dot(xn.astype(cd), w_ref[...], preferred_element_type=jnp.float32) + b_ref[...]
    o_ref[...] = y.astype(o_ref.dtype)


def pool_ln_proj(x2, gamma, beta, w, b, tm_target=512, tn_target=512, eps=1e-5):
    """x2: (B*Tp, 2*n_state) consecutive-time pairs; returns (B*Tp, output_dim) f32."""
    M, c2 = x2.shape
    n_state = c2 // 2
    N = w.shape[1]
    tm = _pick_m_tile(M, tm_target)
    tn = _pick_n_tile(N, tn_target)
    g2 = gamma.reshape(1, n_state).astype(jnp.float32)
    bt2 = beta.reshape(1, n_state).astype(jnp.float32)
    b2 = b.reshape(1, N).astype(jnp.float32)
    return pl.pallas_call(
        functools.partial(_pool_ln_proj_kernel, n_state=n_state, eps=eps, cd=MATMUL_DTYPE),
        out_shape=jax.ShapeDtypeStruct((M, N), jnp.float32),
        grid=(pl.cdiv(M, tm), pl.cdiv(N, tn)),
        in_specs=[
            pl.BlockSpec((tm, c2), lambda i, j: (i, 0)),
            pl.BlockSpec((1, n_state), lambda i, j: (0, 0)),
            pl.BlockSpec((1, n_state), lambda i, j: (0, 0)),
            pl.BlockSpec((n_state, tn), lambda i, j: (0, j)),
            pl.BlockSpec((1, tn), lambda i, j: (0, j)),
        ],
        out_specs=pl.BlockSpec((tm, tn), lambda i, j: (i, j)),
        compiler_params=_cparams(("parallel", "parallel"), VMEM_LIMIT_MM),
    )(x2, g2, bt2, w, b2)


# ----------------------------------------------------------------------------
# Parameters / glue
# ----------------------------------------------------------------------------
def sinusoids(length, channels, max_timescale=10000):
    assert channels % 2 == 0
    log_timescale_increment = np.log(max_timescale) / (channels // 2 - 1)
    inv_timescales = np.exp(-log_timescale_increment * np.arange(channels // 2))
    scaled_time = np.arange(length)[:, None] * inv_timescales[None, :]
    return jnp.asarray(
        np.concatenate([np.sin(scaled_time), np.cos(scaled_time)], axis=1),
        dtype=jnp.float32,
    )


def init_params(key, n_mels, n_ctx, n_state, n_head, n_layer, output_dim):
    keys = list(jax.random.split(key, 16 + 16 * n_layer))
    ki = iter(keys)

    def nrm(shape, std=0.02):
        return jax.random.normal(next(ki), shape, jnp.float32) * std

    p = {}
    # Conv1d weights: torch layout (C_out, C_in, K) -> (K, C_in, C_out)
    p["conv1_w"] = jnp.transpose(nrm((n_state, n_mels, 3)), (2, 1, 0))
    p["conv1_b"] = nrm((n_state,))
    p["conv2_w"] = jnp.transpose(nrm((n_state, n_state, 3)), (2, 1, 0))
    p["conv2_b"] = nrm((n_state,))
    p["pos_emb"] = sinusoids(n_ctx, n_state)

    blocks = []
    for _ in range(n_layer):
        # torch Linear weight is (out, in); transpose to (in, out) for x @ W.
        qw = nrm((n_state, n_state)).T
        kw = nrm((n_state, n_state)).T
        vw = nrm((n_state, n_state)).T
        blk = {
            "attn_ln_g": jnp.ones((n_state,), jnp.float32),
            "attn_ln_b": jnp.zeros((n_state,), jnp.float32),
            # Fused QKV weight (key has no bias in the reference module).
            "qkv_w": jnp.concatenate([qw, kw, vw], axis=1),
            "qkv_b": jnp.concatenate(
                [nrm((n_state,)), jnp.zeros((n_state,), jnp.float32), nrm((n_state,))]),
            "out_w": nrm((n_state, n_state)).T, "out_b": nrm((n_state,)),
            "mlp_ln_g": jnp.ones((n_state,), jnp.float32),
            "mlp_ln_b": jnp.zeros((n_state,), jnp.float32),
            "fc1_w": nrm((4 * n_state, n_state)).T, "fc1_b": nrm((4 * n_state,)),
            "fc2_w": nrm((n_state, 4 * n_state)).T, "fc2_b": nrm((n_state,)),
        }
        blocks.append(blk)
    p["blocks"] = blocks
    p["ln_post_g"] = jnp.ones((n_state,), jnp.float32)
    p["ln_post_b"] = jnp.zeros((n_state,), jnp.float32)
    p["proj_w"] = nrm((output_dim, n_state)).T
    p["proj_b"] = nrm((output_dim,))
    p["bos_eos"] = nrm((2, output_dim))     # nn.Embedding(2, output_dim).weight
    return p


def prepare_params(p, n_head, dtype=MATMUL_DTYPE):
    """Pre-cast matmul weights to the MXU dtype once and fold the attention scale
    (dh**-0.5 == (dh**-0.25)**2 of the reference) into the q projection."""
    n_state = p["conv1_w"].shape[2]
    dh = n_state // n_head
    scale = float(dh) ** -0.5
    q = dict(p)
    for name in ("conv1_w", "conv2_w", "proj_w"):
        q[name] = p[name].astype(dtype)
    q["blocks"] = []
    for blk in p["blocks"]:
        nb = dict(blk)
        qkv_w = blk["qkv_w"].at[:, :n_state].multiply(scale)
        qkv_b = blk["qkv_b"].at[:n_state].multiply(scale)
        nb["qkv_w"] = qkv_w.astype(dtype)
        nb["qkv_b"] = qkv_b
        for name in ("out_w", "fc1_w", "fc2_w"):
            nb[name] = blk[name].astype(dtype)
        q["blocks"].append(nb)
    return q


def audio_encoder_forward(params, x, n_head):
    """x: (B, n_mels, T) float32 mel spectrogram (same convention as the torch module)."""
    B, n_mels, T = x.shape
    x = jnp.transpose(x, (0, 2, 1)).astype(jnp.float32)      # channels-last (B, T, n_mels)
    n_state = params["conv1_w"].shape[2]

    # conv1 (k=3, s=1, p=1) + GELU  -> bf16
    xp = jnp.pad(x, ((0, 0), (1, 1), (0, 0)))
    h = conv1d_gelu_s1(xp, params["conv1_w"], params["conv1_b"], t_out=T)

    # conv2 (k=3, s=2, p=1) + GELU, positional embedding fused into the epilogue -> bf16
    hp = jnp.pad(h, ((0, 0), (1, 1), (0, 0)))
    xe = hp[:, 0::2, :]
    xo = hp[:, 1::2, :]
    T2 = (T - 1) // 2 + 1
    assert params["pos_emb"].shape[0] >= T2, (params["pos_emb"].shape, T2)
    pos = params["pos_emb"][:T2]
    h = conv1d_gelu_s2_pos(xe, xo, params["conv2_w"], params["conv2_b"], pos, t_out=T2)

    M = B * T2
    h2 = h.reshape(M, n_state)                                # residual stream, bf16

    for blk in params["blocks"]:
        # --- self attention: fused LN + QKV matmul, attention, out_proj (+residual) ---
        qkv = ln_linear(h2, blk["attn_ln_g"], blk["attn_ln_b"], blk["qkv_w"], blk["qkv_b"])
        o = attention_from_qkv(qkv, B, T2, n_state, n_head).reshape(M, n_state)
        h2 = linear(o, blk["out_w"], blk["out_b"], residual=h2)

        # --- MLP: fused LN + fc1 + GELU, then fc2 (+residual) ---
        m1 = ln_linear(h2, blk["mlp_ln_g"], blk["mlp_ln_b"],
                       blk["fc1_w"], blk["fc1_b"], activation="gelu")
        h2 = linear(m1, blk["fc2_w"], blk["fc2_b"], residual=h2)

    # AvgPool1d(2, stride=2) + ln_post + proj, fused in one kernel -> f32
    Tp = T2 // 2
    x2 = h2.reshape(B, T2, n_state)[:, :2 * Tp, :].reshape(B * Tp, 2 * n_state)
    out = pool_ln_proj(x2, params["ln_post_g"], params["ln_post_b"],
                       params["proj_w"], params["proj_b"]).reshape(B, Tp, -1)

    bos = params["bos_eos"][0][None, :]
    eos = params["bos_eos"][1][None, :]
    return out, bos, eos


if __name__ == "__main__":
    # Small shapes consistent with the module: input length T = 2 * n_ctx.
    B, n_mels, T = 2, 8, 32
    n_ctx, n_state, n_head, n_layer, output_dim = 16, 32, 4, 2, 32

    root = jax.random.PRNGKey(0)
    k_params, k_x = jax.random.split(root)
    params = prepare_params(
        init_params(k_params, n_mels, n_ctx, n_state, n_head, n_layer, output_dim),
        n_head=n_head)
    x = jax.random.normal(k_x, (B, n_mels, T), jnp.float32)

    fwd = jax.jit(functools.partial(audio_encoder_forward, n_head=n_head))
    out, bos, eos = fwd(params, x)
    jax.block_until_ready(out)
    jax.block_until_ready(bos)
    jax.block_until_ready(eos)

    assert out.shape == (B, T // 2 // 2, output_dim), out.shape
    assert bos.shape == (1, output_dim) and eos.shape == (1, output_dim)
    assert bool(jnp.all(jnp.isfinite(out)))
    print("KERNEL_OK")
</pallas_src>

<mosaic_0001>
module attributes {stable_mosaic.version = 11 : i64} {
  func.func @_conv_s1_kernel(%arg0: i32, %arg1: i32, %arg2: memref<1x34x8xf32, #tpu.memory_space<vmem>>, %arg3: memref<3x8x32xbf16, #tpu.memory_space<vmem>>, %arg4: memref<1x32xf32, #tpu.memory_space<vmem>>, %arg5: memref<1x32x32xbf16, #tpu.memory_space<vmem>>) attributes {dimension_semantics = [#tpu.dimension_semantics<parallel>, #tpu.dimension_semantics<parallel>], iteration_bounds = array<i64: 2, 1>, scalar_prefetch = 0 : i64, scratch_operands = 0 : i64, tpu.core_type = #tpu.core_type<tc>, window_params = [{transform_indices = @transform_0, window_bounds = array<i64: 1, 34, 8>}, {transform_indices = @transform_1, window_bounds = array<i64: 3, 8, 32>}, {transform_indices = @transform_2, window_bounds = array<i64: 1, 32>}, {transform_indices = @transform_3, window_bounds = array<i64: 1, 32, 32>}]} {
    %c0 = arith.constant 0 : index
    %c0_0 = arith.constant 0 : index
    %c0_1 = arith.constant 0 : index
    %0 = vector.load %arg2[%c0, %c0_0, %c0_1] : memref<1x34x8xf32, #tpu.memory_space<vmem>>, vector<1x34x8xf32>
    %1 = vector.shape_cast %0 : vector<1x34x8xf32> to vector<34x8xf32>
    %2 = arith.truncf %1 : vector<34x8xf32> to vector<34x8xbf16>
    %3 = vector.extract_strided_slice %2 {offsets = [0, 0], sizes = [32, 8], strides = [1, 1]} : vector<34x8xbf16> to vector<32x8xbf16>
    %c0_2 = arith.constant 0 : index
    %c0_3 = arith.constant 0 : index
    %c0_4 = arith.constant 0 : index
    %4 = vector.load %arg3[%c0_2, %c0_3, %c0_4] : memref<3x8x32xbf16, #tpu.memory_space<vmem>>, vector<1x8x32xbf16>
    %5 = vector.shape_cast %4 : vector<1x8x32xbf16> to vector<8x32xbf16>
    %cst = arith.constant dense<0.000000e+00> : vector<32x32xf32>
    %6 = tpu.matmul %3, %5, %cst {dimension_numbers = #tpu.dot_dimension_numbers<[1], [0], [0], [1], [0, 0, 1, 1], [], []>} : vector<32x8xbf16>, vector<8x32xbf16>, vector<32x32xf32> -> vector<32x32xf32>
    %7 = vector.extract_strided_slice %2 {offsets = [1, 0], sizes = [32, 8], strides = [1, 1]} : vector<34x8xbf16> to vector<32x8xbf16>
    %c1 = arith.constant 1 : index
    %c0_5 = arith.constant 0 : index
    %c0_6 = arith.constant 0 : index
    %8 = vector.load %arg3[%c1, %c0_5, %c0_6] : memref<3x8x32xbf16, #tpu.memory_space<vmem>>, vector<1x8x32xbf16>
    %9 = vector.shape_cast %8 : vector<1x8x32xbf16> to vector<8x32xbf16>
    %cst_7 = arith.constant dense<0.000000e+00> : vector<32x32xf32>
    %10 = tpu.matmul %7, %9, %cst_7 {dimension_numbers = #tpu.dot_dimension_numbers<[1], [0], [0], [1], [0, 0, 1, 1], [], []>} : vector<32x8xbf16>, vector<8x32xbf16>, vector<32x32xf32> -> vector<32x32xf32>
    %11 = arith.addf %6, %10 : vector<32x32xf32>
    %12 = vector.extract_strided_slice %2 {offsets = [2, 0], sizes = [32, 8], strides = [1, 1]} : vector<34x8xbf16> to vector<32x8xbf16>
    %c2 = arith.constant 2 : index
    %c0_8 = arith.constant 0 : index
    %c0_9 = arith.constant 0 : index
    %13 = vector.load %arg3[%c2, %c0_8, %c0_9] : memref<3x8x32xbf16, #tpu.memory_space<vmem>>, vector<1x8x32xbf16>
    %14 = vector.shape_cast %13 : vector<1x8x32xbf16> to vector<8x32xbf16>
    %cst_10 = arith.constant dense<0.000000e+00> : vector<32x32xf32>
    %15 = tpu.matmul %12, %14, %cst_10 {dimension_numbers = #tpu.dot_dimension_numbers<[1], [0], [0], [1], [0, 0, 1, 1], [], []>} : vector<32x8xbf16>, vector<8x32xbf16>, vector<32x32xf32> -> vector<32x32xf32>
    %16 = arith.addf %11, %15 : vector<32x32xf32>
    %c0_11 = arith.constant 0 : index
    %c0_12 = arith.constant 0 : index
    %17 = vector.load %arg4[%c0_11, %c0_12] : memref<1x32xf32, #tpu.memory_space<vmem>>, vector<1x32xf32>
    %18 = vector.broadcast %17 : vector<1x32xf32> to vector<32x32xf32>
    %19 = arith.addf %16, %18 : vector<32x32xf32>
    %cst_13 = arith.constant 5.000000e-01 : f32
    %20 = vector.broadcast %cst_13 : f32 to vector<32x32xf32>
    %21 = arith.mulf %20, %19 : vector<32x32xf32>
    %cst_14 = arith.constant 4.471500e-02 : f32
    %22 = vector.broadcast %cst_14 : f32 to vector<32x32xf32>
    %23 = arith.mulf %22, %19 : vector<32x32xf32>
    %24 = arith.mulf %23, %19 : vector<32x32xf32>
    %25 = arith.mulf %24, %19 : vector<32x32xf32>
    %26 = arith.addf %19, %25 : vector<32x32xf32>
    %cst_15 = arith.constant 0.797884583 : f32
    %27 = vector.broadcast %cst_15 : f32 to vector<32x32xf32>
    %28 = arith.mulf %27, %26 : vector<32x32xf32>
    %29 = math.tanh %28 : vector<32x32xf32>
    %cst_16 = arith.constant 1.000000e+00 : f32
    %30 = vector.broadcast %cst_16 : f32 to vector<32x32xf32>
    %31 = arith.addf %30, %29 : vector<32x32xf32>
    %32 = arith.mulf %21, %31 : vector<32x32xf32>
    %33 = arith.truncf %32 : vector<32x32xf32> to vector<32x32xbf16>
    %c0_17 = arith.constant 0 : index
    %c0_18 = arith.constant 0 : index
    %c0_19 = arith.constant 0 : index
    %34 = vector.load %arg5[%c0_17, %c0_18, %c0_19] : memref<1x32x32xbf16, #tpu.memory_space<vmem>>, vector<1x32x32xbf16>
    %35 = vector.shape_cast %34 : vector<1x32x32xbf16> to vector<32x32xbf16>
    %36 = vector.shape_cast %33 : vector<32x32xbf16> to vector<1x32x32xbf16>
    tpu.vector_store %arg5[%c0_17, %c0_18, %c0_19], %36 {strides = array<i32>} : memref<1x32x32xbf16, #tpu.memory_space<vmem>>, vector<1x32x32xbf16>,
    return
  }
  func.func @transform_0(%arg0: i32, %arg1: i32) -> (i32, i32, i32) {
    %c0_i32 = arith.constant 0 : i32
    %c0_i32_0 = arith.constant 0 : i32
    %c0_i32_1 = arith.constant 0 : i32
    return %arg0, %c0_i32, %c0_i32_0 : i32, i32, i32
  }
  func.func @transform_1(%arg0: i32, %arg1: i32) -> (i32, i32, i32) {
    %c0_i32 = arith.constant 0 : i32
    %c0_i32_0 = arith.constant 0 : i32
    %c0_i32_1 = arith.constant 0 : i32
    return %c0_i32, %c0_i32_0, %arg1 : i32, i32, i32
  }
  func.func @transform_2(%arg0: i32, %arg1: i32) -> (i32, i32) {
    %c0_i32 = arith.constant 0 : i32
    %c0_i32_0 = arith.constant 0 : i32
    return %c0_i32, %arg1 : i32, i32
  }
  func.func @transform_3(%arg0: i32, %arg1: i32) -> (i32, i32, i32) {
    %c0_i32 = arith.constant 0 : i32
    %c0_i32_0 = arith.constant 0 : i32
    return %arg0, %c0_i32, %arg1 : i32, i32, i32
  }
}

module attributes {stable_mosaic.version = 11 : i64} {
  func.func @_conv_s2_kernel(%arg0: i32, %arg1: i32, %arg2: memref<1x17x32xbf16, #tpu.memory_space<vmem>>, %arg3: memref<1x17x32xbf16, #tpu.memory_space<vmem>>, %arg4: memref<3x32x32xbf16, #tpu.memory_space<vmem>>, %arg5: memref<1x32xf32, #tpu.memory_space<vmem>>, %arg6: memref<16x32xf32, #tpu.memory_space<vmem>>, %arg7: memref<1x16x32xbf16, #tpu.memory_space<vmem>>) attributes {dimension_semantics = [#tpu.dimension_semantics<parallel>, #tpu.dimension_semantics<parallel>], iteration_bounds = array<i64: 2, 1>, scalar_prefetch = 0 : i64, scratch_operands = 0 : i64, tpu.core_type = #tpu.core_type<tc>, window_params = [{transform_indices = @transform_0, window_bounds = array<i64: 1, 17, 32>}, {transform_indices = @transform_1, window_bounds = array<i64: 1, 17, 32>}, {transform_indices = @transform_2, window_bounds = array<i64: 3, 32, 32>}, {transform_indices = @transform_3, window_bounds = array<i64: 1, 32>}, {transform_indices = @transform_4, window_bounds = array<i64: 16, 32>}, {transform_indices = @transform_5, window_bounds = array<i64: 1, 16, 32>}]} {
    %c0 = arith.constant 0 : index
    %c0_0 = arith.constant 0 : index
    %c0_1 = arith.constant 0 : index
    %0 = vector.load %arg2[%c0, %c0_0, %c0_1] : memref<1x17x32xbf16, #tpu.memory_space<vmem>>, vector<1x17x32xbf16>
    %1 = vector.shape_cast %0 : vector<1x17x32xbf16> to vector<17x32xbf16>
    %c0_2 = arith.constant 0 : index
    %c0_3 = arith.constant 0 : index
    %c0_4 = arith.constant 0 : index
    %2 = vector.load %arg3[%c0_2, %c0_3, %c0_4] : memref<1x17x32xbf16, #tpu.memory_space<vmem>>, vector<1x17x32xbf16>
    %3 = vector.shape_cast %2 : vector<1x17x32xbf16> to vector<17x32xbf16>
    %c0_5 = arith.constant 0 : index
    %c0_6 = arith.constant 0 : index
    %c0_7 = arith.constant 0 : index
    %4 = vector.load %arg4[%c0_5, %c0_6, %c0_7] : memref<3x32x32xbf16, #tpu.memory_space<vmem>>, vector<1x32x32xbf16>
    %5 = vector.shape_cast %4 : vector<1x32x32xbf16> to vector<32x32xbf16>
    %cst = arith.constant dense<0.000000e+00> : vector<17x32xf32>
    %6 = tpu.matmul %1, %5, %cst {dimension_numbers = #tpu.dot_dimension_numbers<[1], [0], [0], [1], [0, 0, 1, 1], [], []>} : vector<17x32xbf16>, vector<32x32xbf16>, vector<17x32xf32> -> vector<17x32xf32>
    %c1 = arith.constant 1 : index
    %c0_8 = arith.constant 0 : index
    %c0_9 = arith.constant 0 : index
    %7 = vector.load %arg4[%c1, %c0_8, %c0_9] : memref<3x32x32xbf16, #tpu.memory_space<vmem>>, vector<1x32x32xbf16>
    %8 = vector.shape_cast %7 : vector<1x32x32xbf16> to vector<32x32xbf16>
    %cst_10 = arith.constant dense<0.000000e+00> : vector<17x32xf32>
    %9 = tpu.matmul %3, %8, %cst_10 {dimension_numbers = #tpu.dot_dimension_numbers<[1], [0], [0], [1], [0, 0, 1, 1], [], []>} : vector<17x32xbf16>, vector<32x32xbf16>, vector<17x32xf32> -> vector<17x32xf32>
    %c2 = arith.constant 2 : index
    %c0_11 = arith.constant 0 : index
    %c0_12 = arith.constant 0 : index
    %10 = vector.load %arg4[%c2, %c0_11, %c0_12] : memref<3x32x32xbf16, #tpu.memory_space<vmem>>, vector<1x32x32xbf16>
    %11 = vector.shape_cast %10 : vector<1x32x32xbf16> to vector<32x32xbf16>
    %cst_13 = arith.constant dense<0.000000e+00> : vector<17x32xf32>
    %12 = tpu.matmul %1, %11, %cst_13 {dimension_numbers = #tpu.dot_dimension_numbers<[1], [0], [0], [1], [0, 0, 1, 1], [], []>} : vector<17x32xbf16>, vector<32x32xbf16>, vector<17x32xf32> -> vector<17x32xf32>
    %13 = vector.extract_strided_slice %6 {offsets = [0, 0], sizes = [16, 32], strides = [1, 1]} : vector<17x32xf32> to vector<16x32xf32>
    %14 = vector.extract_strided_slice %9 {offsets = [0, 0], sizes = [16, 32], strides = [1, 1]} : vector<17x32xf32> to vector<16x32xf32>
    %15 = arith.addf %13, %14 : vector<16x32xf32>
    %16 = vector.extract_strided_slice %12 {offsets = [1, 0], sizes = [16, 32], strides = [1, 1]} : vector<17x32xf32> to vector<16x32xf32>
    %17 = arith.addf %15, %16 : vector<16x32xf32>
    %c0_14 = arith.constant 0 : index
    %c0_15 = arith.constant 0 : index
    %18 = vector.load %arg5[%c0_14, %c0_15] : memref<1x32xf32, #tpu.memory_space<vmem>>, vector<1x32xf32>
    %19 = vector.broadcast %18 : vector<1x32xf32> to vector<16x32xf32>
    %20 = arith.addf %17, %19 : vector<16x32xf32>
    %cst_16 = arith.constant 5.000000e-01 : f32
    %21 = vector.broadcast %cst_16 : f32 to vector<16x32xf32>
    %22 = arith.mulf %21, %20 : vector<16x32xf32>
    %cst_17 = arith.constant 4.471500e-02 : f32
    %23 = vector.broadcast %cst_17 : f32 to vector<16x32xf32>
    %24 = arith.mulf %23, %20 : vector<16x32xf32>
    %25 = arith.mulf %24, %20 : vector<16x32xf32>
    %26 = arith.mulf %25, %20 : vector<16x32xf32>
    %27 = arith.addf %20, %26 : vector<16x32xf32>
    %cst_18 = arith.constant 0.797884583 : f32
    %28 = vector.broadcast %cst_18 : f32 to vector<16x32xf32>
    %29 = arith.mulf %28, %27 : vector<16x32xf32>
    %30 = math.tanh %29 : vector<16x32xf32>
    %cst_19 = arith.constant 1.000000e+00 : f32
    %31 = vector.broadcast %cst_19 : f32 to vector<16x32xf32>
    %32 = arith.addf %31, %30 : vector<16x32xf32>
    %33 = arith.mulf %22, %32 : vector<16x32xf32>
    %c0_20 = arith.constant 0 : index
    %c0_21 = arith.constant 0 : index
    %34 = vector.load %arg6[%c0_20, %c0_21] : memref<16x32xf32, #tpu.memory_space<vmem>>, vector<16x32xf32>
    %35 = arith.addf %33, %34 : vector<16x32xf32>
    %36 = arith.truncf %35 : vector<16x32xf32> to vector<16x32xbf16>
    %c0_22 = arith.constant 0 : index
    %c0_23 = arith.constant 0 : index
    %c0_24 = arith.constant 0 : index
    %37 = vector.load %arg7[%c0_22, %c0_23, %c0_24] : memref<1x16x32xbf16, #tpu.memory_space<vmem>>, vector<1x16x32xbf16>
    %38 = vector.shape_cast %37 : vector<1x16x32xbf16> to vector<16x32xbf16>
    %39 = vector.shape_cast %36 : vector<16x32xbf16> to vector<1x16x32xbf16>
    tpu.vector_store %arg7[%c0_22, %c0_23, %c0_24], %39 {strides = array<i32>} : memref<1x16x32xbf16, #tpu.memory_space<vmem>>, vector<1x16x32xbf16>,
    return
  }
  func.func @transform_0(%arg0: i32, %arg1: i32) -> (i32, i32, i32) {
    %c0_i32 = arith.constant 0 : i32
    %c0_i32_0 = arith.constant 0 : i32
    %c0_i32_1 = arith.constant 0 : i32
    return %arg0, %c0_i32, %c0_i32_0 : i32, i32, i32
  }
  func.func @transform_1(%arg0: i32, %arg1: i32) -> (i32, i32, i32) {
    %c0_i32 = arith.constant 0 : i32
    %c0_i32_0 = arith.constant 0 : i32
    %c0_i32_1 = arith.constant 0 : i32
    return %arg0, %c0_i32, %c0_i32_0 : i32, i32, i32
  }
  func.func @transform_2(%arg0: i32, %arg1: i32) -> (i32, i32, i32) {
    %c0_i32 = arith.constant 0 : i32
    %c0_i32_0 = arith.constant 0 : i32
    %c0_i32_1 = arith.constant 0 : i32
    return %c0_i32, %c0_i32_0, %arg1 : i32, i32, i32
  }
  func.func @transform_3(%arg0: i32, %arg1: i32) -> (i32, i32) {
    %c0_i32 = arith.constant 0 : i32
    %c0_i32_0 = arith.constant 0 : i32
    return %c0_i32, %arg1 : i32, i32
  }
  func.func @transform_4(%arg0: i32, %arg1: i32) -> (i32, i32) {
    %c0_i32 = arith.constant 0 : i32
    %c0_i32_0 = arith.constant 0 : i32
    return %c0_i32, %arg1 : i32, i32
  }
  func.func @transform_5(%arg0: i32, %arg1: i32) -> (i32, i32, i32) {
    %c0_i32 = arith.constant 0 : i32
    %c0_i32_0 = arith.constant 0 : i32
    return %arg0, %c0_i32, %arg1 : i32, i32, i32
  }
}

module attributes {stable_mosaic.version = 11 : i64} {
  func.func @_ln_linear_kernel(%arg0: i32, %arg1: i32, %arg2: memref<32x32xbf16, #tpu.memory_space<vmem>>, %arg3: memref<1x32xf32, #tpu.memory_space<vmem>>, %arg4: memref<1x32xf32, #tpu.memory_space<vmem>>, %arg5: memref<32x96xbf16, #tpu.memory_space<vmem>>, %arg6: memref<1x96xf32, #tpu.memory_space<vmem>>, %arg7: memref<32x96xbf16, #tpu.memory_space<vmem>>, %arg8: memref<32x32xbf16, #tpu.memory_space<vmem>>) attributes {dimension_semantics = [#tpu.dimension_semantics<parallel>, #tpu.dimension_semantics<arbitrary>], iteration_bounds = array<i64: 1, 1>, scalar_prefetch = 0 : i64, scratch_operands = 1 : i64, tpu.core_type = #tpu.core_type<tc>, window_params = [{transform_indices = @transform_0, window_bounds = array<i64: 32, 32>}, {pipeline_mode = #tpu.pipeline_mode<synchronous>, transform_indices = @transform_1, window_bounds = array<i64: 1, 32>}, {pipeline_mode = #tpu.pipeline_mode<synchronous>, transform_indices = @transform_2, window_bounds = array<i64: 1, 32>}, {transform_indices = @transform_3, window_bounds = array<i64: 32, 96>}, {transform_indices = @transform_4, window_bounds = array<i64: 1, 96>}, {transform_indices = @transform_5, window_bounds = array<i64: 32, 96>}]} {
    %c0_i32 = arith.constant 0 : i32
    %0 = arith.cmpi eq, %arg1, %c0_i32 : i32
    %1 = arith.extui %0 : i1 to i32
    %c0_i32_0 = arith.constant 0 : i32
    %2 = arith.cmpi ne, %1, %c0_i32_0 : i32
    scf.if %2 {
      %c0_8 = arith.constant 0 : index
      %c0_9 = arith.constant 0 : index
      %11 = vector.load %arg2[%c0_8, %c0_9] : memref<32x32xbf16, #tpu.memory_space<vmem>>, vector<32x32xbf16>
      %12 = arith.extf %11 : vector<32x32xbf16> to vector<32x32xf32>
      %cst_10 = arith.constant dense<0.000000e+00> : vector<32xf32>
      %13 = vector.multi_reduction <add>, %12, %cst_10 [1] : vector<32x32xf32> to vector<32xf32>
      %14 = vector.shape_cast %13 : vector<32xf32> to vector<32x1xf32>
      %cst_11 = arith.constant 3.200000e+01 : f32
      %15 = vector.broadcast %cst_11 : f32 to vector<32x1xf32>
      %16 = arith.divf %14, %15 : vector<32x1xf32>
      %17 = vector.broadcast %16 : vector<32x1xf32> to vector<32x32xf32>
      %18 = arith.subf %12, %17 : vector<32x32xf32>
      %19 = arith.mulf %18, %18 : vector<32x32xf32>
      %cst_12 = arith.constant dense<0.000000e+00> : vector<32xf32>
      %20 = vector.multi_reduction <add>, %19, %cst_12 [1] : vector<32x32xf32> to vector<32xf32>
      %21 = vector.shape_cast %20 : vector<32xf32> to vector<32x1xf32>
      %cst_13 = arith.constant 3.200000e+01 : f32
      %22 = vector.broadcast %cst_13 : f32 to vector<32x1xf32>
      %23 = arith.divf %21, %22 : vector<32x1xf32>
      %cst_14 = arith.constant 9.99999974E-6 : f32
      %24 = vector.broadcast %cst_14 : f32 to vector<32x1xf32>
      %25 = arith.addf %23, %24 : vector<32x1xf32>
      %26 = math.rsqrt %25 : vector<32x1xf32>
      %27 = vector.broadcast %26 : vector<32x1xf32> to vector<32x32xf32>
      %28 = arith.mulf %18, %27 : vector<32x32xf32>
      %c0_15 = arith.constant 0 : index
      %c0_16 = arith.constant 0 : index
      %29 = vector.load %arg3[%c0_15, %c0_16] : memref<1x32xf32, #tpu.memory_space<vmem>>, vector<1x32xf32>
      %30 = vector.broadcast %29 : vector<1x32xf32> to vector<32x32xf32>
      %31 = arith.mulf %28, %30 : vector<32x32xf32>
      %c0_17 = arith.constant 0 : index
      %c0_18 = arith.constant 0 : index
      %32 = vector.load %arg4[%c0_17, %c0_18] : memref<1x32xf32, #tpu.memory_space<vmem>>, vector<1x32xf32>
      %33 = vector.broadcast %32 : vector<1x32xf32> to vector<32x32xf32>
      %34 = arith.addf %31, %33 : vector<32x32xf32>
      %35 = arith.truncf %34 : vector<32x32xf32> to vector<32x32xbf16>
      %c0_19 = arith.constant 0 : index
      %c0_20 = arith.constant 0 : index
      %36 = vector.load %arg8[%c0_19, %c0_20] : memref<32x32xbf16, #tpu.memory_space<vmem>>, vector<32x32xbf16>
      tpu.vector_store %arg8[%c0_19, %c0_20], %35 {strides = array<i32>} : memref<32x32xbf16, #tpu.memory_space<vmem>>, vector<32x32xbf16>,
    } else {
    }
    %c0 = arith.constant 0 : index
    %c0_1 = arith.constant 0 : index
    %3 = vector.load %arg8[%c0, %c0_1] : memref<32x32xbf16, #tpu.memory_space<vmem>>, vector<32x32xbf16>
    %c0_2 = arith.constant 0 : index
    %c0_3 = arith.constant 0 : index
    %4 = vector.load %arg5[%c0_2, %c0_3] : memref<32x96xbf16, #tpu.memory_space<vmem>>, vector<32x96xbf16>
    %cst = arith.constant dense<0.000000e+00> : vector<32x96xf32>
    %5 = tpu.matmul %3, %4, %cst {dimension_numbers = #tpu.dot_dimension_numbers<[1], [0], [0], [1], [0, 0, 1, 1], [], []>} : vector<32x32xbf16>, vector<32x96xbf16>, vector<32x96xf32> -> vector<32x96xf32>
    %c0_4 = arith.constant 0 : index
    %c0_5 = arith.constant 0 : index
    %6 = vector.load %arg6[%c0_4, %c0_5] : memref<1x96xf32, #tpu.memory_space<vmem>>, vector<1x96xf32>
    %7 = vector.broadcast %6 : vector<1x96xf32> to vector<32x96xf32>
    %8 = arith.addf %5, %7 : vector<32x96xf32>
    %9 = arith.truncf %8 : vector<32x96xf32> to vector<32x96xbf16>
    %c0_6 = arith.constant 0 : index
    %c0_7 = arith.constant 0 : index
    %10 = vector.load %arg7[%c0_6, %c0_7] : memref<32x96xbf16, #tpu.memory_space<vmem>>, vector<32x96xbf16>
    tpu.vector_store %arg7[%c0_6, %c0_7], %9 {strides = array<i32>} : memref<32x96xbf16, #tpu.memory_space<vmem>>, vector<32x96xbf16>,
    return
  }
  func.func @transform_0(%arg0: i32, %arg1: i32) -> (i32, i32) {
    %c0_i32 = arith.constant 0 : i32
    %c0_i32_0 = arith.constant 0 : i32
    return %arg0, %c0_i32 : i32, i32
  }
  func.func @transform_1(%arg0: i32, %arg1: i32) -> (i32, i32) {
    %c0_i32 = arith.constant 0 : i32
    %c0_i32_0 = arith.constant 0 : i32
    %c0_i32_1 = arith.constant 0 : i32
    return %c0_i32, %c0_i32_0 : i32, i32
  }
  func.func @transform_2(%arg0: i32, %arg1: i32) -> (i32, i32) {
    %c0_i32 = arith.constant 0 : i32
    %c0_i32_0 = arith.constant 0 : i32
    %c0_i32_1 = arith.constant 0 : i32
    return %c0_i32, %c0_i32_0 : i32, i32
  }
  func.func @transform_3(%arg0: i32, %arg1: i32) -> (i32, i32) {
    %c0_i32 = arith.constant 0 : i32
    %c0_i32_0 = arith.constant 0 : i32
    return %c0_i32, %arg1 : i32, i32
  }
  func.func @transform_4(%arg0: i32, %arg1: i32) -> (i32, i32) {
    %c0_i32 = arith.constant 0 : i32
    %c0_i32_0 = arith.constant 0 : i32
    return %c0_i32, %arg1 : i32, i32
  }
  func.func @transform_5(%arg0: i32, %arg1: i32) -> (i32, i32) {
    %c0_i32 = arith.constant 0 : i32
    return %arg0, %arg1 : i32, i32
  }
}

module attributes {stable_mosaic.version = 11 : i64} {
  func.func @_attention_kernel(%arg0: i32, %arg1: i32, %arg2: i32, %arg3: memref<1x16x32xbf16, #tpu.memory_space<vmem>>, %arg4: memref<1x16x32xbf16, #tpu.memory_space<vmem>>, %arg5: memref<1x16x32xbf16, #tpu.memory_space<vmem>>, %arg6: memref<1x16x32xbf16, #tpu.memory_space<vmem>>) attributes {dimension_semantics = [#tpu.dimension_semantics<parallel>, #tpu.dimension_semantics<parallel>, #tpu.dimension_semantics<parallel>], iteration_bounds = array<i64: 2, 1, 1>, scalar_prefetch = 0 : i64, scratch_operands = 0 : i64, tpu.core_type = #tpu.core_type<tc>, window_params = [{transform_indices = @transform_0, window_bounds = array<i64: 1, 16, 32>}, {transform_indices = @transform_1, window_bounds = array<i64: 1, 16, 32>}, {transform_indices = @transform_2, window_bounds = array<i64: 1, 16, 32>}, {transform_indices = @transform_3, window_bounds = array<i64: 1, 16, 32>}]} {
    %c0 = arith.constant 0 : index
    %c0_0 = arith.constant 0 : index
    %c0_1 = arith.constant 0 : index
    %0 = vector.load %arg3[%c0, %c0_0, %c0_1] : memref<1x16x32xbf16, #tpu.memory_space<vmem>>, vector<1x16x8xbf16>
    %1 = vector.shape_cast %0 : vector<1x16x8xbf16> to vector<16x8xbf16>
    %c0_2 = arith.constant 0 : index
    %c0_3 = arith.constant 0 : index
    %c0_4 = arith.constant 0 : index
    %2 = vector.load %arg4[%c0_2, %c0_3, %c0_4] : memref<1x16x32xbf16, #tpu.memory_space<vmem>>, vector<1x16x8xbf16>
    %3 = vector.shape_cast %2 : vector<1x16x8xbf16> to vector<16x8xbf16>
    %c0_5 = arith.constant 0 : index
    %c0_6 = arith.constant 0 : index
    %c0_7 = arith.constant 0 : index
    %4 = vector.load %arg5[%c0_5, %c0_6, %c0_7] : memref<1x16x32xbf16, #tpu.memory_space<vmem>>, vector<1x16x8xbf16>
    %5 = vector.shape_cast %4 : vector<1x16x8xbf16> to vector<16x8xbf16>
    %cst = arith.constant dense<0.000000e+00> : vector<16x16xf32>
    %6 = tpu.matmul %1, %3, %cst {dimension_numbers = #tpu.dot_dimension_numbers<[1], [1], [0], [0], [0, 0, 1, 0], [], []>} : vector<16x8xbf16>, vector<16x8xbf16>, vector<16x16xf32> -> vector<16x16xf32>
    %cst_8 = arith.constant dense<0xFF800000> : vector<16xf32>
    %7 = vector.multi_reduction <maximumf>, %6, %cst_8 [1] : vector<16x16xf32> to vector<16xf32>
    %8 = vector.shape_cast %7 : vector<16xf32> to vector<16x1xf32>
    %9 = vector.broadcast %8 : vector<16x1xf32> to vector<16x16xf32>
    %10 = arith.subf %6, %9 : vector<16x16xf32>
    %11 = math.exp %10 : vector<16x16xf32>
    %cst_9 = arith.constant dense<0.000000e+00> : vector<16xf32>
    %12 = vector.multi_reduction <add>, %11, %cst_9 [1] : vector<16x16xf32> to vector<16xf32>
    %13 = vector.shape_cast %12 : vector<16xf32> to vector<16x1xf32>
    %14 = tpu.reciprocal %13 {approx = true} : vector<16x1xf32> -> vector<16x1xf32>
    %15 = vector.broadcast %14 : vector<16x1xf32> to vector<16x16xf32>
    %16 = arith.mulf %11, %15 : vector<16x16xf32>
    %17 = arith.truncf %16 : vector<16x16xf32> to vector<16x16xbf16>
    %cst_10 = arith.constant dense<0.000000e+00> : vector<16x8xf32>
    %18 = tpu.matmul %17, %5, %cst_10 {dimension_numbers = #tpu.dot_dimension_numbers<[1], [0], [0], [1], [0, 0, 1, 1], [], []>} : vector<16x16xbf16>, vector<16x8xbf16>, vector<16x8xf32> -> vector<16x8xf32>
    %c0_11 = arith.constant 0 : index
    %c0_12 = arith.constant 0 : index
    %c8 = arith.constant 8 : index
    %19 = vector.load %arg3[%c0_11, %c0_12, %c8] : memref<1x16x32xbf16, #tpu.memory_space<vmem>>, vector<1x16x8xbf16>
    %20 = vector.shape_cast %19 : vector<1x16x8xbf16> to vector<16x8xbf16>
    %c0_13 = arith.constant 0 : index
    %c0_14 = arith.constant 0 : index
    %c8_15 = arith.constant 8 : index
    %21 = vector.load %arg4[%c0_13, %c0_14, %c8_15] : memref<1x16x32xbf16, #tpu.memory_space<vmem>>, vector<1x16x8xbf16>
    %22 = vector.shape_cast %21 : vector<1x16x8xbf16> to vector<16x8xbf16>
    %c0_16 = arith.constant 0 : index
    %c0_17 = arith.constant 0 : index
    %c8_18 = arith.constant 8 : index
    %23 = vector.load %arg5[%c0_16, %c0_17, %c8_18] : memref<1x16x32xbf16, #tpu.memory_space<vmem>>, vector<1x16x8xbf16>
    %24 = vector.shape_cast %23 : vector<1x16x8xbf16> to vector<16x8xbf16>
    %cst_19 = arith.constant dense<0.000000e+00> : vector<16x16xf32>
    %25 = tpu.matmul %20, %22, %cst_19 {dimension_numbers = #tpu.dot_dimension_numbers<[1], [1], [0], [0], [0, 0, 1, 0], [], []>} : vector<16x8xbf16>, vector<16x8xbf16>, vector<16x16xf32> -> vector<16x16xf32>
    %cst_20 = arith.constant dense<0xFF800000> : vector<16xf32>
    %26 = vector.multi_reduction <maximumf>, %25, %cst_20 [1] : vector<16x16xf32> to vector<16xf32>
    %27 = vector.shape_cast %26 : vector<16xf32> to vector<16x1xf32>
    %28 = vector.broadcast %27 : vector<16x1xf32> to vector<16x16xf32>
    %29 = arith.subf %25, %28 : vector<16x16xf32>
    %30 = math.exp %29 : vector<16x16xf32>
    %cst_21 = arith.constant dense<0.000000e+00> : vector<16xf32>
    %31 = vector.multi_reduction <add>, %30, %cst_21 [1] : vector<16x16xf32> to vector<16xf32>
    %32 = vector.shape_cast %31 : vector<16xf32> to vector<16x1xf32>
    %33 = tpu.reciprocal %32 {approx = true} : vector<16x1xf32> -> vector<16x1xf32>
    %34 = vector.broadcast %33 : vector<16x1xf32> to vector<16x16xf32>
    %35 = arith.mulf %30, %34 : vector<16x16xf32>
    %36 = arith.truncf %35 : vector<16x16xf32> to vector<16x16xbf16>
    %cst_22 = arith.constant dense<0.000000e+00> : vector<16x8xf32>
    %37 = tpu.matmul %36, %24, %cst_22 {dimension_numbers = #tpu.dot_dimension_numbers<[1], [0], [0], [1], [0, 0, 1, 1], [], []>} : vector<16x16xbf16>, vector<16x8xbf16>, vector<16x8xf32> -> vector<16x8xf32>
    %c0_23 = arith.constant 0 : index
    %c0_24 = arith.constant 0 : index
    %c16 = arith.constant 16 : index
    %38 = vector.load %arg3[%c0_23, %c0_24, %c16] : memref<1x16x32xbf16, #tpu.memory_space<vmem>>, vector<1x16x8xbf16>
    %39 = vector.shape_cast %38 : vector<1x16x8xbf16> to vector<16x8xbf16>
    %c0_25 = arith.constant 0 : index
    %c0_26 = arith.constant 0 : index
    %c16_27 = arith.constant 16 : index
    %40 = vector.load %arg4[%c0_25, %c0_26, %c16_27] : memref<1x16x32xbf16, #tpu.memory_space<vmem>>, vector<1x16x8xbf16>
    %41 = vector.shape_cast %40 : vector<1x16x8xbf16> to vector<16x8xbf16>
    %c0_28 = arith.constant 0 : index
    %c0_29 = arith.constant 0 : index
    %c16_30 = arith.constant 16 : index
    %42 = vector.load %arg5[%c0_28, %c0_29, %c16_30] : memref<1x16x32xbf16, #tpu.memory_space<vmem>>, vector<1x16x8xbf16>
    %43 = vector.shape_cast %42 : vector<1x16x8xbf16> to vector<16x8xbf16>
    %cst_31 = arith.constant dense<0.000000e+00> : vector<16x16xf32>
    %44 = tpu.matmul %39, %41, %cst_31 {dimension_numbers = #tpu.dot_dimension_numbers<[1], [1], [0], [0], [0, 0, 1, 0], [], []>} : vector<16x8xbf16>, vector<16x8xbf16>, vector<16x16xf32> -> vector<16x16xf32>
    %cst_32 = arith.constant dense<0xFF800000> : vector<16xf32>
    %45 = vector.multi_reduction <maximumf>, %44, %cst_32 [1] : vector<16x16xf32> to vector<16xf32>
    %46 = vector.shape_cast %45 : vector<16xf32> to vector<16x1xf32>
    %47 = vector.broadcast %46 : vector<16x1xf32> to vector<16x16xf32>
    %48 = arith.subf %44, %47 : vector<16x16xf32>
    %49 = math.exp %48 : vector<16x16xf32>
    %cst_33 = arith.constant dense<0.000000e+00> : vector<16xf32>
    %50 = vector.multi_reduction <add>, %49, %cst_33 [1] : vector<16x16xf32> to vector<16xf32>
    %51 = vector.shape_cast %50 : vector<16xf32> to vector<16x1xf32>
    %52 = tpu.reciprocal %51 {approx = true} : vector<16x1xf32> -> vector<16x1xf32>
    %53 = vector.broadcast %52 : vector<16x1xf32> to vector<16x16xf32>
    %54 = arith.mulf %49, %53 : vector<16x16xf32>
    %55 = arith.truncf %54 : vector<16x16xf32> to vector<16x16xbf16>
    %cst_34 = arith.constant dense<0.000000e+00> : vector<16x8xf32>
    %56 = tpu.matmul %55, %43, %cst_34 {dimension_numbers = #tpu.dot_dimension_numbers<[1], [0], [0], [1], [0, 0, 1, 1], [], []>} : vector<16x16xbf16>, vector<16x8xbf16>, vector<16x8xf32> -> vector<16x8xf32>
    %c0_35 = arith.constant 0 : index
    %c0_36 = arith.constant 0 : index
    %c24 = arith.constant 24 : index
    %57 = vector.load %arg3[%c0_35, %c0_36, %c24] : memref<1x16x32xbf16, #tpu.memory_space<vmem>>, vector<1x16x8xbf16>
    %58 = vector.shape_cast %57 : vector<1x16x8xbf16> to vector<16x8xbf16>
    %c0_37 = arith.constant 0 : index
    %c0_38 = arith.constant 0 : index
    %c24_39 = arith.constant 24 : index
    %59 = vector.load %arg4[%c0_37, %c0_38, %c24_39] : memref<1x16x32xbf16, #tpu.memory_space<vmem>>, vector<1x16x8xbf16>
    %60 = vector.shape_cast %59 : vector<1x16x8xbf16> to vector<16x8xbf16>
    %c0_40 = arith.constant 0 : index
    %c0_41 = arith.constant 0 : index
    %c24_42 = arith.constant 24 : index
    %61 = vector.load %arg5[%c0_40, %c0_41, %c24_42] : memref<1x16x32xbf16, #tpu.memory_space<vmem>>, vector<1x16x8xbf16>
    %62 = vector.shape_cast %61 : vector<1x16x8xbf16> to vector<16x8xbf16>
    %cst_43 = arith.constant dense<0.000000e+00> : vector<16x16xf32>
    %63 = tpu.matmul %58, %60, %cst_43 {dimension_numbers = #tpu.dot_dimension_numbers<[1], [1], [0], [0], [0, 0, 1, 0], [], []>} : vector<16x8xbf16>, vector<16x8xbf16>, vector<16x16xf32> -> vector<16x16xf32>
    %cst_44 = arith.constant dense<0xFF800000> : vector<16xf32>
    %64 = vector.multi_reduction <maximumf>, %63, %cst_44 [1] : vector<16x16xf32> to vector<16xf32>
    %65 = vector.shape_cast %64 : vector<16xf32> to vector<16x1xf32>
    %66 = vector.broadcast %65 : vector<16x1xf32> to vector<16x16xf32>
    %67 = arith.subf %63, %66 : vector<16x16xf32>
    %68 = math.exp %67 : vector<16x16xf32>
    %cst_45 = arith.constant dense<0.000000e+00> : vector<16xf32>
    %69 = vector.multi_reduction <add>, %68, %cst_45 [1] : vector<16x16xf32> to vector<16xf32>
    %70 = vector.shape_cast %69 : vector<16xf32> to vector<16x1xf32>
    %71 = tpu.reciprocal %70 {approx = true} : vector<16x1xf32> -> vector<16x1xf32>
    %72 = vector.broadcast %71 : vector<16x1xf32> to vector<16x16xf32>
    %73 = arith.mulf %68, %72 : vector<16x16xf32>
    %74 = arith.truncf %73 : vector<16x16xf32> to vector<16x16xbf16>
    %cst_46 = arith.constant dense<0.000000e+00> : vector<16x8xf32>
    %75 = tpu.matmul %74, %62, %cst_46 {dimension_numbers = #tpu.dot_dimension_numbers<[1], [0], [0], [1], [0, 0, 1, 1], [], []>} : vector<16x16xbf16>, vector<16x8xbf16>, vector<16x8xf32> -> vector<16x8xf32>
    %76 = tpu.concatenate %18, %37, %56, %75 in 1 : vector<16x8xf32>, vector<16x8xf32>, vector<16x8xf32>, vector<16x8xf32> -> vector<16x32xf32>
    %77 = arith.truncf %76 : vector<16x32xf32> to vector<16x32xbf16>
    %c0_47 = arith.constant 0 : index
    %c0_48 = arith.constant 0 : index
    %c0_49 = arith.constant 0 : index
    %78 = vector.load %arg6[%c0_47, %c0_48, %c0_49] : memref<1x16x32xbf16, #tpu.memory_space<vmem>>, vector<1x16x32xbf16>
    %79 = vector.shape_cast %78 : vector<1x16x32xbf16> to vector<16x32xbf16>
    %80 = vector.shape_cast %77 : vector<16x32xbf16> to vector<1x16x32xbf16>
    tpu.vector_store %arg6[%c0_47, %c0_48, %c0_49], %80 {strides = array<i32>} : memref<1x16x32xbf16, #tpu.memory_space<vmem>>, vector<1x16x32xbf16>,
    return
  }
  func.func @transform_0(%arg0: i32, %arg1: i32, %arg2: i32) -> (i32, i32, i32) {
    %c0_i32 = arith.constant 0 : i32
    return %arg0, %arg2, %arg1 : i32, i32, i32
  }
  func.func @transform_1(%arg0: i32, %arg1: i32, %arg2: i32) -> (i32, i32, i32) {
    %c0_i32 = arith.constant 0 : i32
    %c0_i32_0 = arith.constant 0 : i32
    return %arg0, %c0_i32, %arg1 : i32, i32, i32
  }
  func.func @transform_2(%arg0: i32, %arg1: i32, %arg2: i32) -> (i32, i32, i32) {
    %c0_i32 = arith.constant 0 : i32
    %c0_i32_0 = arith.constant 0 : i32
    return %arg0, %c0_i32, %arg1 : i32, i32, i32
  }
  func.func @transform_3(%arg0: i32, %arg1: i32, %arg2: i32) -> (i32, i32, i32) {
    %c0_i32 = arith.constant 0 : i32
    return %arg0, %arg2, %arg1 : i32, i32, i32
  }
}

module attributes {stable_mosaic.version = 11 : i64} {
  func.func @_linear_kernel(%arg0: i32, %arg1: i32, %arg2: i32, %arg3: memref<32x32xbf16, #tpu.memory_space<vmem>>, %arg4: memref<32x32xbf16, #tpu.memory_space<vmem>>, %arg5: memref<1x32xf32, #tpu.memory_space<vmem>>, %arg6: memref<32x32xbf16, #tpu.memory_space<vmem>>, %arg7: memref<32x32xbf16, #tpu.memory_space<vmem>>, %arg8: memref<32x32xf32, #tpu.memory_space<vmem>>) attributes {dimension_semantics = [#tpu.dimension_semantics<parallel>, #tpu.dimension_semantics<parallel>, #tpu.dimension_semantics<arbitrary>], iteration_bounds = array<i64: 1, 1, 1>, scalar_prefetch = 0 : i64, scratch_operands = 1 : i64, tpu.core_type = #tpu.core_type<tc>, window_params = [{transform_indices = @transform_0, window_bounds = array<i64: 32, 32>}, {transform_indices = @transform_1, window_bounds = array<i64: 32, 32>}, {transform_indices = @transform_2, window_bounds = array<i64: 1, 32>}, {transform_indices = @transform_3, window_bounds = array<i64: 32, 32>}, {transform_indices = @transform_4, window_bounds = array<i64: 32, 32>}]} {
    %c0_i32 = arith.constant 0 : i32
    %0 = arith.cmpi eq, %arg2, %c0_i32 : i32
    %1 = arith.extui %0 : i1 to i32
    %c0_i32_0 = arith.constant 0 : i32
    %2 = arith.cmpi ne, %1, %c0_i32_0 : i32
    scf.if %2 {
      %cst_10 = arith.constant 0.000000e+00 : f32
      %12 = vector.broadcast %cst_10 : f32 to vector<32x32xf32>
      %c0_11 = arith.constant 0 : index
      %c0_12 = arith.constant 0 : index
      %13 = vector.load %arg8[%c0_11, %c0_12] : memref<32x32xf32, #tpu.memory_space<vmem>>, vector<32x32xf32>
      tpu.vector_store %arg8[%c0_11, %c0_12], %12 {strides = array<i32>} : memref<32x32xf32, #tpu.memory_space<vmem>>, vector<32x32xf32>,
    } else {
    }
    %c0 = arith.constant 0 : index
    %c0_1 = arith.constant 0 : index
    %3 = vector.load %arg8[%c0, %c0_1] : memref<32x32xf32, #tpu.memory_space<vmem>>, vector<32x32xf32>
    %c0_2 = arith.constant 0 : index
    %c0_3 = arith.constant 0 : index
    %4 = vector.load %arg3[%c0_2, %c0_3] : memref<32x32xbf16, #tpu.memory_space<vmem>>, vector<32x32xbf16>
    %c0_4 = arith.constant 0 : index
    %c0_5 = arith.constant 0 : index
    %5 = vector.load %arg4[%c0_4, %c0_5] : memref<32x32xbf16, #tpu.memory_space<vmem>>, vector<32x32xbf16>
    %cst = arith.constant dense<0.000000e+00> : vector<32x32xf32>
    %6 = tpu.matmul %4, %5, %cst {dimension_numbers = #tpu.dot_dimension_numbers<[1], [0], [0], [1], [0, 0, 1, 1], [], []>} : vector<32x32xbf16>, vector<32x32xbf16>, vector<32x32xf32> -> vector<32x32xf32>
    %7 = arith.addf %3, %6 : vector<32x32xf32>
    %c0_6 = arith.constant 0 : index
    %c0_7 = arith.constant 0 : index
    %8 = vector.load %arg8[%c0_6, %c0_7] : memref<32x32xf32, #tpu.memory_space<vmem>>, vector<32x32xf32>
    tpu.vector_store %arg8[%c0_6, %c0_7], %7 {strides = array<i32>} : memref<32x32xf32, #tpu.memory_space<vmem>>, vector<32x32xf32>,
    %c0_i32_8 = arith.constant 0 : i32
    %9 = arith.cmpi eq, %arg2, %c0_i32_8 : i32
    %10 = arith.extui %9 : i1 to i32
    %c0_i32_9 = arith.constant 0 : i32
    %11 = arith.cmpi ne, %10, %c0_i32_9 : i32
    scf.if %11 {
      %c0_10 = arith.constant 0 : index
      %c0_11 = arith.constant 0 : index
      %12 = vector.load %arg8[%c0_10, %c0_11] : memref<32x32xf32, #tpu.memory_space<vmem>>, vector<32x32xf32>
      %c0_12 = arith.constant 0 : index
      %c0_13 = arith.constant 0 : index
      %13 = vector.load %arg5[%c0_12, %c0_13] : memref<1x32xf32, #tpu.memory_space<vmem>>, vector<1x32xf32>
      %14 = vector.broadcast %13 : vector<1x32xf32> to vector<32x32xf32>
      %15 = arith.addf %12, %14 : vector<32x32xf32>
      %c0_14 = arith.constant 0 : index
      %c0_15 = arith.constant 0 : index
      %16 = vector.load %arg6[%c0_14, %c0_15] : memref<32x32xbf16, #tpu.memory_space<vmem>>, vector<32x32xbf16>
      %17 = arith.extf %16 : vector<32x32xbf16> to vector<32x32xf32>
      %18 = arith.addf %15, %17 : vector<32x32xf32>
      %19 = arith.truncf %18 : vector<32x32xf32> to vector<32x32xbf16>
      %c0_16 = arith.constant 0 : index
      %c0_17 = arith.constant 0 : index
      %20 = vector.load %arg7[%c0_16, %c0_17] : memref<32x32xbf16, #tpu.memory_space<vmem>>, vector<32x32xbf16>
      tpu.vector_store %arg7[%c0_16, %c0_17], %19 {strides = array<i32>} : memref<32x32xbf16, #tpu.memory_space<vmem>>, vector<32x32xbf16>,
    } else {
    }
    return
  }
  func.func @transform_0(%arg0: i32, %arg1: i32, %arg2: i32) -> (i32, i32) {
    %c0_i32 = arith.constant 0 : i32
    return %arg0, %arg2 : i32, i32
  }
  func.func @transform_1(%arg0: i32, %arg1: i32, %arg2: i32) -> (i32, i32) {
    %c0_i32 = arith.constant 0 : i32
    return %arg2, %arg1 : i32, i32
  }
  func.func @transform_2(%arg0: i32, %arg1: i32, %arg2: i32) -> (i32, i32) {
    %c0_i32 = arith.constant 0 : i32
    %c0_i32_0 = arith.constant 0 : i32
    return %c0_i32, %arg1 : i32, i32
  }
  func.func @transform_3(%arg0: i32, %arg1: i32, %arg2: i32) -> (i32, i32) {
    %c0_i32 = arith.constant 0 : i32
    return %arg0, %arg1 : i32, i32
  }
  func.func @transform_4(%arg0: i32, %arg1: i32, %arg2: i32) -> (i32, i32) {
    %c0_i32 = arith.constant 0 : i32
    return %arg0, %arg1 : i32, i32
  }
}

module attributes {stable_mosaic.version = 11 : i64} {
  func.func @_ln_linear_kernel(%arg0: i32, %arg1: i32, %arg2: memref<32x32xbf16, #tpu.memory_space<vmem>>, %arg3: memref<1x32xf32, #tpu.memory_space<vmem>>, %arg4: memref<1x32xf32, #tpu.memory_space<vmem>>, %arg5: memref<32x128xbf16, #tpu.memory_space<vmem>>, %arg6: memref<1x128xf32, #tpu.memory_space<vmem>>, %arg7: memref<32x128xbf16, #tpu.memory_space<vmem>>, %arg8: memref<32x32xbf16, #tpu.memory_space<vmem>>) attributes {dimension_semantics = [#tpu.dimension_semantics<parallel>, #tpu.dimension_semantics<arbitrary>], iteration_bounds = array<i64: 1, 1>, scalar_prefetch = 0 : i64, scratch_operands = 1 : i64, tpu.core_type = #tpu.core_type<tc>, window_params = [{transform_indices = @transform_0, window_bounds = array<i64: 32, 32>}, {pipeline_mode = #tpu.pipeline_mode<synchronous>, transform_indices = @transform_1, window_bounds = array<i64: 1, 32>}, {pipeline_mode = #tpu.pipeline_mode<synchronous>, transform_indices = @transform_2, window_bounds = array<i64: 1, 32>}, {transform_indices = @transform_3, window_bounds = array<i64: 32, 128>}, {transform_indices = @transform_4, window_bounds = array<i64: 1, 128>}, {transform_indices = @transform_5, window_bounds = array<i64: 32, 128>}]} {
    %c0_i32 = arith.constant 0 : i32
    %0 = arith.cmpi eq, %arg1, %c0_i32 : i32
    %1 = arith.extui %0 : i1 to i32
    %c0_i32_0 = arith.constant 0 : i32
    %2 = arith.cmpi ne, %1, %c0_i32_0 : i32
    scf.if %2 {
      %c0_12 = arith.constant 0 : index
      %c0_13 = arith.constant 0 : index
      %24 = vector.load %arg2[%c0_12, %c0_13] : memref<32x32xbf16, #tpu.memory_space<vmem>>, vector<32x32xbf16>
      %25 = arith.extf %24 : vector<32x32xbf16> to vector<32x32xf32>
      %cst_14 = arith.constant dense<0.000000e+00> : vector<32xf32>
      %26 = vector.multi_reduction <add>, %25, %cst_14 [1] : vector<32x32xf32> to vector<32xf32>
      %27 = vector.shape_cast %26 : vector<32xf32> to vector<32x1xf32>
      %cst_15 = arith.constant 3.200000e+01 : f32
      %28 = vector.broadcast %cst_15 : f32 to vector<32x1xf32>
      %29 = arith.divf %27, %28 : vector<32x1xf32>
      %30 = vector.broadcast %29 : vector<32x1xf32> to vector<32x32xf32>
      %31 = arith.subf %25, %30 : vector<32x32xf32>
      %32 = arith.mulf %31, %31 : vector<32x32xf32>
      %cst_16 = arith.constant dense<0.000000e+00> : vector<32xf32>
      %33 = vector.multi_reduction <add>, %32, %cst_16 [1] : vector<32x32xf32> to vector<32xf32>
      %34 = vector.shape_cast %33 : vector<32xf32> to vector<32x1xf32>
      %cst_17 = arith.constant 3.200000e+01 : f32
      %35 = vector.broadcast %cst_17 : f32 to vector<32x1xf32>
      %36 = arith.divf %34, %35 : vector<32x1xf32>
      %cst_18 = arith.constant 9.99999974E-6 : f32
      %37 = vector.broadcast %cst_18 : f32 to vector<32x1xf32>
      %38 = arith.addf %36, %37 : vector<32x1xf32>
      %39 = math.rsqrt %38 : vector<32x1xf32>
      %40 = vector.broadcast %39 : vector<32x1xf32> to vector<32x32xf32>
      %41 = arith.mulf %31, %40 : vector<32x32xf32>
      %c0_19 = arith.constant 0 : index
      %c0_20 = arith.constant 0 : index
      %42 = vector.load %arg3[%c0_19, %c0_20] : memref<1x32xf32, #tpu.memory_space<vmem>>, vector<1x32xf32>
      %43 = vector.broadcast %42 : vector<1x32xf32> to vector<32x32xf32>
      %44 = arith.mulf %41, %43 : vector<32x32xf32>
      %c0_21 = arith.constant 0 : index
      %c0_22 = arith.constant 0 : index
      %45 = vector.load %arg4[%c0_21, %c0_22] : memref<1x32xf32, #tpu.memory_space<vmem>>, vector<1x32xf32>
      %46 = vector.broadcast %45 : vector<1x32xf32> to vector<32x32xf32>
      %47 = arith.addf %44, %46 : vector<32x32xf32>
      %48 = arith.truncf %47 : vector<32x32xf32> to vector<32x32xbf16>
      %c0_23 = arith.constant 0 : index
      %c0_24 = arith.constant 0 : index
      %49 = vector.load %arg8[%c0_23, %c0_24] : memref<32x32xbf16, #tpu.memory_space<vmem>>, vector<32x32xbf16>
      tpu.vector_store %arg8[%c0_23, %c0_24], %48 {strides = array<i32>} : memref<32x32xbf16, #tpu.memory_space<vmem>>, vector<32x32xbf16>,
    } else {
    }
    %c0 = arith.constant 0 : index
    %c0_1 = arith.constant 0 : index
    %3 = vector.load %arg8[%c0, %c0_1] : memref<32x32xbf16, #tpu.memory_space<vmem>>, vector<32x32xbf16>
    %c0_2 = arith.constant 0 : index
    %c0_3 = arith.constant 0 : index
    %4 = vector.load %arg5[%c0_2, %c0_3] : memref<32x128xbf16, #tpu.memory_space<vmem>>, vector<32x128xbf16>
    %cst = arith.constant dense<0.000000e+00> : vector<32x128xf32>
    %5 = tpu.matmul %3, %4, %cst {dimension_numbers = #tpu.dot_dimension_numbers<[1], [0], [0], [1], [0, 0, 1, 1], [], []>} : vector<32x32xbf16>, vector<32x128xbf16>, vector<32x128xf32> -> vector<32x128xf32>
    %c0_4 = arith.constant 0 : index
    %c0_5 = arith.constant 0 : index
    %6 = vector.load %arg6[%c0_4, %c0_5] : memref<1x128xf32, #tpu.memory_space<vmem>>, vector<1x128xf32>
    %7 = vector.broadcast %6 : vector<1x128xf32> to vector<32x128xf32>
    %8 = arith.addf %5, %7 : vector<32x128xf32>
    %cst_6 = arith.constant 5.000000e-01 : f32
    %9 = vector.broadcast %cst_6 : f32 to vector<32x128xf32>
    %10 = arith.mulf %9, %8 : vector<32x128xf32>
    %cst_7 = arith.constant 4.471500e-02 : f32
    %11 = vector.broadcast %cst_7 : f32 to vector<32x128xf32>
    %12 = arith.mulf %11, %8 : vector<32x128xf32>
    %13 = arith.mulf %12, %8 : vector<32x128xf32>
    %14 = arith.mulf %13, %8 : vector<32x128xf32>
    %15 = arith.addf %8, %14 : vector<32x128xf32>
    %cst_8 = arith.constant 0.797884583 : f32
    %16 = vector.broadcast %cst_8 : f32 to vector<32x128xf32>
    %17 = arith.mulf %16, %15 : vector<32x128xf32>
    %18 = math.tanh %17 : vector<32x128xf32>
    %cst_9 = arith.constant 1.000000e+00 : f32
    %19 = vector.broadcast %cst_9 : f32 to vector<32x128xf32>
    %20 = arith.addf %19, %18 : vector<32x128xf32>
    %21 = arith.mulf %10, %20 : vector<32x128xf32>
    %22 = arith.truncf %21 : vector<32x128xf32> to vector<32x128xbf16>
    %c0_10 = arith.constant 0 : index
    %c0_11 = arith.constant 0 : index
    %23 = vector.load %arg7[%c0_10, %c0_11] : memref<32x128xbf16, #tpu.memory_space<vmem>>, vector<32x128xbf16>
    tpu.vector_store %arg7[%c0_10, %c0_11], %22 {strides = array<i32>} : memref<32x128xbf16, #tpu.memory_space<vmem>>, vector<32x128xbf16>,
    return
  }
  func.func @transform_0(%arg0: i32, %arg1: i32) -> (i32, i32) {
    %c0_i32 = arith.constant 0 : i32
    %c0_i32_0 = arith.constant 0 : i32
    return %arg0, %c0_i32 : i32, i32
  }
  func.func @transform_1(%arg0: i32, %arg1: i32) -> (i32, i32) {
    %c0_i32 = arith.constant 0 : i32
    %c0_i32_0 = arith.constant 0 : i32
    %c0_i32_1 = arith.constant 0 : i32
    return %c0_i32, %c0_i32_0 : i32, i32
  }
  func.func @transform_2(%arg0: i32, %arg1: i32) -> (i32, i32) {
    %c0_i32 = arith.constant 0 : i32
    %c0_i32_0 = arith.constant 0 : i32
    %c0_i32_1 = arith.constant 0 : i32
    return %c0_i32, %c0_i32_0 : i32, i32
  }
  func.func @transform_3(%arg0: i32, %arg1: i32) -> (i32, i32) {
    %c0_i32 = arith.constant 0 : i32
    %c0_i32_0 = arith.constant 0 : i32
    return %c0_i32, %arg1 : i32, i32
  }
  func.func @transform_4(%arg0: i32, %arg1: i32) -> (i32, i32) {
    %c0_i32 = arith.constant 0 : i32
    %c0_i32_0 = arith.constant 0 : i32
    return %c0_i32, %arg1 : i32, i32
  }
  func.func @transform_5(%arg0: i32, %arg1: i32) -> (i32, i32) {
    %c0_i32 = arith.constant 0 : i32
    return %arg0, %arg1 : i32, i32
  }
}

module attributes {stable_mosaic.version = 11 : i64} {
  func.func @_linear_kernel(%arg0: i32, %arg1: i32, %arg2: i32, %arg3: memref<32x128xbf16, #tpu.memory_space<vmem>>, %arg4: memref<128x32xbf16, #tpu.memory_space<vmem>>, %arg5: memref<1x32xf32, #tpu.memory_space<vmem>>, %arg6: memref<32x32xbf16, #tpu.memory_space<vmem>>, %arg7: memref<32x32xbf16, #tpu.memory_space<vmem>>, %arg8: memref<32x32xf32, #tpu.memory_space<vmem>>) attributes {dimension_semantics = [#tpu.dimension_semantics<parallel>, #tpu.dimension_semantics<parallel>, #tpu.dimension_semantics<arbitrary>], iteration_bounds = array<i64: 1, 1, 1>, scalar_prefetch = 0 : i64, scratch_operands = 1 : i64, tpu.core_type = #tpu.core_type<tc>, window_params = [{transform_indices = @transform_0, window_bounds = array<i64: 32, 128>}, {transform_indices = @transform_1, window_bounds = array<i64: 128, 32>}, {transform_indices = @transform_2, window_bounds = array<i64: 1, 32>}, {transform_indices = @transform_3, window_bounds = array<i64: 32, 32>}, {transform_indices = @transform_4, window_bounds = array<i64: 32, 32>}]} {
    %c0_i32 = arith.constant 0 : i32
    %0 = arith.cmpi eq, %arg2, %c0_i32 : i32
    %1 = arith.extui %0 : i1 to i32
    %c0_i32_0 = arith.constant 0 : i32
    %2 = arith.cmpi ne, %1, %c0_i32_0 : i32
    scf.if %2 {
      %cst_10 = arith.constant 0.000000e+00 : f32
      %12 = vector.broadcast %cst_10 : f32 to vector<32x32xf32>
      %c0_11 = arith.constant 0 : index
      %c0_12 = arith.constant 0 : index
      %13 = vector.load %arg8[%c0_11, %c0_12] : memref<32x32xf32, #tpu.memory_space<vmem>>, vector<32x32xf32>
      tpu.vector_store %arg8[%c0_11, %c0_12], %12 {strides = array<i32>} : memref<32x32xf32, #tpu.memory_space<vmem>>, vector<32x32xf32>,
    } else {
    }
    %c0 = arith.constant 0 : index
    %c0_1 = arith.constant 0 : index
    %3 = vector.load %arg8[%c0, %c0_1] : memref<32x32xf32, #tpu.memory_space<vmem>>, vector<32x32xf32>
    %c0_2 = arith.constant 0 : index
    %c0_3 = arith.constant 0 : index
    %4 = vector.load %arg3[%c0_2, %c0_3] : memref<32x128xbf16, #tpu.memory_space<vmem>>, vector<32x128xbf16>
    %c0_4 = arith.constant 0 : index
    %c0_5 = arith.constant 0 : index
    %5 = vector.load %arg4[%c0_4, %c0_5] : memref<128x32xbf16, #tpu.memory_space<vmem>>, vector<128x32xbf16>
    %cst = arith.constant dense<0.000000e+00> : vector<32x32xf32>
    %6 = tpu.matmul %4, %5, %cst {dimension_numbers = #tpu.dot_dimension_numbers<[1], [0], [0], [1], [0, 0, 1, 1], [], []>} : vector<32x128xbf16>, vector<128x32xbf16>, vector<32x32xf32> -> vector<32x32xf32>
    %7 = arith.addf %3, %6 : vector<32x32xf32>
    %c0_6 = arith.constant 0 : index
    %c0_7 = arith.constant 0 : index
    %8 = vector.load %arg8[%c0_6, %c0_7] : memref<32x32xf32, #tpu.memory_space<vmem>>, vector<32x32xf32>
    tpu.vector_store %arg8[%c0_6, %c0_7], %7 {strides = array<i32>} : memref<32x32xf32, #tpu.memory_space<vmem>>, vector<32x32xf32>,
    %c0_i32_8 = arith.constant 0 : i32
    %9 = arith.cmpi eq, %arg2, %c0_i32_8 : i32
    %10 = arith.extui %9 : i1 to i32
    %c0_i32_9 = arith.constant 0 : i32
    %11 = arith.cmpi ne, %10, %c0_i32_9 : i32
    scf.if %11 {
      %c0_10 = arith.constant 0 : index
      %c0_11 = arith.constant 0 : index
      %12 = vector.load %arg8[%c0_10, %c0_11] : memref<32x32xf32, #tpu.memory_space<vmem>>, vector<32x32xf32>
      %c0_12 = arith.constant 0 : index
      %c0_13 = arith.constant 0 : index
      %13 = vector.load %arg5[%c0_12, %c0_13] : memref<1x32xf32, #tpu.memory_space<vmem>>, vector<1x32xf32>
      %14 = vector.broadcast %13 : vector<1x32xf32> to vector<32x32xf32>
      %15 = arith.addf %12, %14 : vector<32x32xf32>
      %c0_14 = arith.constant 0 : index
      %c0_15 = arith.constant 0 : index
      %16 = vector.load %arg6[%c0_14, %c0_15] : memref<32x32xbf16, #tpu.memory_space<vmem>>, vector<32x32xbf16>
      %17 = arith.extf %16 : vector<32x32xbf16> to vector<32x32xf32>
      %18 = arith.addf %15, %17 : vector<32x32xf32>
      %19 = arith.truncf %18 : vector<32x32xf32> to vector<32x32xbf16>
      %c0_16 = arith.constant 0 : index
      %c0_17 = arith.constant 0 : index
      %20 = vector.load %arg7[%c0_16, %c0_17] : memref<32x32xbf16, #tpu.memory_space<vmem>>, vector<32x32xbf16>
      tpu.vector_store %arg7[%c0_16, %c0_17], %19 {strides = array<i32>} : memref<32x32xbf16, #tpu.memory_space<vmem>>, vector<32x32xbf16>,
    } else {
    }
    return
  }
  func.func @transform_0(%arg0: i32, %arg1: i32, %arg2: i32) -> (i32, i32) {
    %c0_i32 = arith.constant 0 : i32
    return %arg0, %arg2 : i32, i32
  }
  func.func @transform_1(%arg0: i32, %arg1: i32, %arg2: i32) -> (i32, i32) {
    %c0_i32 = arith.constant 0 : i32
    return %arg2, %arg1 : i32, i32
  }
  func.func @transform_2(%arg0: i32, %arg1: i32, %arg2: i32) -> (i32, i32) {
    %c0_i32 = arith.constant 0 : i32
    %c0_i32_0 = arith.constant 0 : i32
    return %c0_i32, %arg1 : i32, i32
  }
  func.func @transform_3(%arg0: i32, %arg1: i32, %arg2: i32) -> (i32, i32) {
    %c0_i32 = arith.constant 0 : i32
    return %arg0, %arg1 : i32, i32
  }
  func.func @transform_4(%arg0: i32, %arg1: i32, %arg2: i32) -> (i32, i32) {
    %c0_i32 = arith.constant 0 : i32
    return %arg0, %arg1 : i32, i32
  }
}

module attributes {stable_mosaic.version = 11 : i64} {
  func.func @_ln_linear_kernel(%arg0: i32, %arg1: i32, %arg2: memref<32x32xbf16, #tpu.memory_space<vmem>>, %arg3: memref<1x32xf32, #tpu.memory_space<vmem>>, %arg4: memref<1x32xf32, #tpu.memory_space<vmem>>, %arg5: memref<32x96xbf16, #tpu.memory_space<vmem>>, %arg6: memref<1x96xf32, #tpu.memory_space<vmem>>, %arg7: memref<32x96xbf16, #tpu.memory_space<vmem>>, %arg8: memref<32x32xbf16, #tpu.memory_space<vmem>>) attributes {dimension_semantics = [#tpu.dimension_semantics<parallel>, #tpu.dimension_semantics<arbitrary>], iteration_bounds = array<i64: 1, 1>, scalar_prefetch = 0 : i64, scratch_operands = 1 : i64, tpu.core_type = #tpu.core_type<tc>, window_params = [{transform_indices = @transform_0, window_bounds = array<i64: 32, 32>}, {pipeline_mode = #tpu.pipeline_mode<synchronous>, transform_indices = @transform_1, window_bounds = array<i64: 1, 32>}, {pipeline_mode = #tpu.pipeline_mode<synchronous>, transform_indices = @transform_2, window_bounds = array<i64: 1, 32>}, {transform_indices = @transform_3, window_bounds = array<i64: 32, 96>}, {transform_indices = @transform_4, window_bounds = array<i64: 1, 96>}, {transform_indices = @transform_5, window_bounds = array<i64: 32, 96>}]} {
    %c0_i32 = arith.constant 0 : i32
    %0 = arith.cmpi eq, %arg1, %c0_i32 : i32
    %1 = arith.extui %0 : i1 to i32
    %c0_i32_0 = arith.constant 0 : i32
    %2 = arith.cmpi ne, %1, %c0_i32_0 : i32
    scf.if %2 {
      %c0_8 = arith.constant 0 : index
      %c0_9 = arith.constant 0 : index
      %11 = vector.load %arg2[%c0_8, %c0_9] : memref<32x32xbf16, #tpu.memory_space<vmem>>, vector<32x32xbf16>
      %12 = arith.extf %11 : vector<32x32xbf16> to vector<32x32xf32>
      %cst_10 = arith.constant dense<0.000000e+00> : vector<32xf32>
      %13 = vector.multi_reduction <add>, %12, %cst_10 [1] : vector<32x32xf32> to vector<32xf32>
      %14 = vector.shape_cast %13 : vector<32xf32> to vector<32x1xf32>
      %cst_11 = arith.constant 3.200000e+01 : f32
      %15 = vector.broadcast %cst_11 : f32 to vector<32x1xf32>
      %16 = arith.divf %14, %15 : vector<32x1xf32>
      %17 = vector.broadcast %16 : vector<32x1xf32> to vector<32x32xf32>
      %18 = arith.subf %12, %17 : vector<32x32xf32>
      %19 = arith.mulf %18, %18 : vector<32x32xf32>
      %cst_12 = arith.constant dense<0.000000e+00> : vector<32xf32>
      %20 = vector.multi_reduction <add>, %19, %cst_12 [1] : vector<32x32xf32> to vector<32xf32>
      %21 = vector.shape_cast %20 : vector<32xf32> to vector<32x1xf32>
      %cst_13 = arith.constant 3.200000e+01 : f32
      %22 = vector.broadcast %cst_13 : f32 to vector<32x1xf32>
      %23 = arith.divf %21, %22 : vector<32x1xf32>
      %cst_14 = arith.constant 9.99999974E-6 : f32
      %24 = vector.broadcast %cst_14 : f32 to vector<32x1xf32>
      %25 = arith.addf %23, %24 : vector<32x1xf32>
      %26 = math.rsqrt %25 : vector<32x1xf32>
      %27 = vector.broadcast %26 : vector<32x1xf32> to vector<32x32xf32>
      %28 = arith.mulf %18, %27 : vector<32x32xf32>
      %c0_15 = arith.constant 0 : index
      %c0_16 = arith.constant 0 : index
      %29 = vector.load %arg3[%c0_15, %c0_16] : memref<1x32xf32, #tpu.memory_space<vmem>>, vector<1x32xf32>
      %30 = vector.broadcast %29 : vector<1x32xf32> to vector<32x32xf32>
      %31 = arith.mulf %28, %30 : vector<32x32xf32>
      %c0_17 = arith.constant 0 : index
      %c0_18 = arith.constant 0 : index
      %32 = vector.load %arg4[%c0_17, %c0_18] : memref<1x32xf32, #tpu.memory_space<vmem>>, vector<1x32xf32>
      %33 = vector.broadcast %32 : vector<1x32xf32> to vector<32x32xf32>
      %34 = arith.addf %31, %33 : vector<32x32xf32>
      %35 = arith.truncf %34 : vector<32x32xf32> to vector<32x32xbf16>
      %c0_19 = arith.constant 0 : index
      %c0_20 = arith.constant 0 : index
      %36 = vector.load %arg8[%c0_19, %c0_20] : memref<32x32xbf16, #tpu.memory_space<vmem>>, vector<32x32xbf16>
      tpu.vector_store %arg8[%c0_19, %c0_20], %35 {strides = array<i32>} : memref<32x32xbf16, #tpu.memory_space<vmem>>, vector<32x32xbf16>,
    } else {
    }
    %c0 = arith.constant 0 : index
    %c0_1 = arith.constant 0 : index
    %3 = vector.load %arg8[%c0, %c0_1] : memref<32x32xbf16, #tpu.memory_space<vmem>>, vector<32x32xbf16>
    %c0_2 = arith.constant 0 : index
    %c0_3 = arith.constant 0 : index
    %4 = vector.load %arg5[%c0_2, %c0_3] : memref<32x96xbf16, #tpu.memory_space<vmem>>, vector<32x96xbf16>
    %cst = arith.constant dense<0.000000e+00> : vector<32x96xf32>
    %5 = tpu.matmul %3, %4, %cst {dimension_numbers = #tpu.dot_dimension_numbers<[1], [0], [0], [1], [0, 0, 1, 1], [], []>} : vector<32x32xbf16>, vector<32x96xbf16>, vector<32x96xf32> -> vector<32x96xf32>
    %c0_4 = arith.constant 0 : index
    %c0_5 = arith.constant 0 : index
    %6 = vector.load %arg6[%c0_4, %c0_5] : memref<1x96xf32, #tpu.memory_space<vmem>>, vector<1x96xf32>
    %7 = vector.broadcast %6 : vector<1x96xf32> to vector<32x96xf32>
    %8 = arith.addf %5, %7 : vector<32x96xf32>
    %9 = arith.truncf %8 : vector<32x96xf32> to vector<32x96xbf16>
    %c0_6 = arith.constant 0 : index
    %c0_7 = arith.constant 0 : index
    %10 = vector.load %arg7[%c0_6, %c0_7] : memref<32x96xbf16, #tpu.memory_space<vmem>>, vector<32x96xbf16>
    tpu.vector_store %arg7[%c0_6, %c0_7], %9 {strides = array<i32>} : memref<32x96xbf16, #tpu.memory_space<vmem>>, vector<32x96xbf16>,
    return
  }
  func.func @transform_0(%arg0: i32, %arg1: i32) -> (i32, i32) {
    %c0_i32 = arith.constant 0 : i32
    %c0_i32_0 = arith.constant 0 : i32
    return %arg0, %c0_i32 : i32, i32
  }
  func.func @transform_1(%arg0: i32, %arg1: i32) -> (i32, i32) {
    %c0_i32 = arith.constant 0 : i32
    %c0_i32_0 = arith.constant 0 : i32
    %c0_i32_1 = arith.constant 0 : i32
    return %c0_i32, %c0_i32_0 : i32, i32
  }
  func.func @transform_2(%arg0: i32, %arg1: i32) -> (i32, i32) {
    %c0_i32 = arith.constant 0 : i32
    %c0_i32_0 = arith.constant 0 : i32
    %c0_i32_1 = arith.constant 0 : i32
    return %c0_i32, %c0_i32_0 : i32, i32
  }
  func.func @transform_3(%arg0: i32, %arg1: i32) -> (i32, i32) {
    %c0_i32 = arith.constant 0 : i32
    %c0_i32_0 = arith.constant 0 : i32
    return %c0_i32, %arg1 : i32, i32
  }
  func.func @transform_4(%arg0: i32, %arg1: i32) -> (i32, i32) {
    %c0_i32 = arith.constant 0 : i32
    %c0_i32_0 = arith.constant 0 : i32
    return %c0_i32, %arg1 : i32, i32
  }
  func.func @transform_5(%arg0: i32, %arg1: i32) -> (i32, i32) {
    %c0_i32 = arith.constant 0 : i32
    return %arg0, %arg1 : i32, i32
  }
}

module attributes {stable_mosaic.version = 11 : i64} {
  func.func @_pool_ln_proj_kernel(%arg0: i32, %arg1: i32, %arg2: memref<16x64xbf16, #tpu.memory_space<vmem>>, %arg3: memref<1x32xf32, #tpu.memory_space<vmem>>, %arg4: memref<1x32xf32, #tpu.memory_space<vmem>>, %arg5: memref<32x32xbf16, #tpu.memory_space<vmem>>, %arg6: memref<1x32xf32, #tpu.memory_space<vmem>>, %arg7: memref<16x32xf32, #tpu.memory_space<vmem>>) attributes {dimension_semantics = [#tpu.dimension_semantics<parallel>, #tpu.dimension_semantics<parallel>], iteration_bounds = array<i64: 1, 1>, scalar_prefetch = 0 : i64, scratch_operands = 0 : i64, tpu.core_type = #tpu.core_type<tc>, window_params = [{transform_indices = @transform_0, window_bounds = array<i64: 16, 64>}, {pipeline_mode = #tpu.pipeline_mode<synchronous>, transform_indices = @transform_1, window_bounds = array<i64: 1, 32>}, {pipeline_mode = #tpu.pipeline_mode<synchronous>, transform_indices = @transform_2, window_bounds = array<i64: 1, 32>}, {transform_indices = @transform_3, window_bounds = array<i64: 32, 32>}, {transform_indices = @transform_4, window_bounds = array<i64: 1, 32>}, {transform_indices = @transform_5, window_bounds = array<i64: 16, 32>}]} {
    %c0 = arith.constant 0 : index
    %c0_0 = arith.constant 0 : index
    %0 = vector.load %arg2[%c0, %c0_0] : memref<16x64xbf16, #tpu.memory_space<vmem>>, vector<16x64xbf16>
    %1 = arith.extf %0 : vector<16x64xbf16> to vector<16x64xf32>
    %2 = vector.extract_strided_slice %1 {offsets = [0, 0], sizes = [16, 32], strides = [1, 1]} : vector<16x64xf32> to vector<16x32xf32>
    %3 = vector.extract_strided_slice %1 {offsets = [0, 32], sizes = [16, 32], strides = [1, 1]} : vector<16x64xf32> to vector<16x32xf32>
    %4 = arith.addf %2, %3 : vector<16x32xf32>
    %cst = arith.constant 5.000000e-01 : f32
    %5 = vector.broadcast %cst : f32 to vector<16x32xf32>
    %6 = arith.mulf %4, %5 : vector<16x32xf32>
    %cst_1 = arith.constant dense<0.000000e+00> : vector<16xf32>
    %7 = vector.multi_reduction <add>, %6, %cst_1 [1] : vector<16x32xf32> to vector<16xf32>
    %8 = vector.shape_cast %7 : vector<16xf32> to vector<16x1xf32>
    %cst_2 = arith.constant 3.200000e+01 : f32
    %9 = vector.broadcast %cst_2 : f32 to vector<16x1xf32>
    %10 = arith.divf %8, %9 : vector<16x1xf32>
    %11 = vector.broadcast %10 : vector<16x1xf32> to vector<16x32xf32>
    %12 = arith.subf %6, %11 : vector<16x32xf32>
    %13 = arith.mulf %12, %12 : vector<16x32xf32>
    %cst_3 = arith.constant dense<0.000000e+00> : vector<16xf32>
    %14 = vector.multi_reduction <add>, %13, %cst_3 [1] : vector<16x32xf32> to vector<16xf32>
    %15 = vector.shape_cast %14 : vector<16xf32> to vector<16x1xf32>
    %cst_4 = arith.constant 3.200000e+01 : f32
    %16 = vector.broadcast %cst_4 : f32 to vector<16x1xf32>
    %17 = arith.divf %15, %16 : vector<16x1xf32>
    %cst_5 = arith.constant 9.99999974E-6 : f32
    %18 = vector.broadcast %cst_5 : f32 to vector<16x1xf32>
    %19 = arith.addf %17, %18 : vector<16x1xf32>
    %20 = math.rsqrt %19 : vector<16x1xf32>
    %21 = vector.broadcast %20 : vector<16x1xf32> to vector<16x32xf32>
    %22 = arith.mulf %12, %21 : vector<16x32xf32>
    %c0_6 = arith.constant 0 : index
    %c0_7 = arith.constant 0 : index
    %23 = vector.load %arg3[%c0_6, %c0_7] : memref<1x32xf32, #tpu.memory_space<vmem>>, vector<1x32xf32>
    %24 = vector.broadcast %23 : vector<1x32xf32> to vector<16x32xf32>
    %25 = arith.mulf %22, %24 : vector<16x32xf32>
    %c0_8 = arith.constant 0 : index
    %c0_9 = arith.constant 0 : index
    %26 = vector.load %arg4[%c0_8, %c0_9] : memref<1x32xf32, #tpu.memory_space<vmem>>, vector<1x32xf32>
    %27 = vector.broadcast %26 : vector<1x32xf32> to vector<16x32xf32>
    %28 = arith.addf %25, %27 : vector<16x32xf32>
    %29 = arith.truncf %28 : vector<16x32xf32> to vector<16x32xbf16>
    %c0_10 = arith.constant 0 : index
    %c0_11 = arith.constant 0 : index
    %30 = vector.load %arg5[%c0_10, %c0_11] : memref<32x32xbf16, #tpu.memory_space<vmem>>, vector<32x32xbf16>
    %cst_12 = arith.constant dense<0.000000e+00> : vector<16x32xf32>
    %31 = tpu.matmul %29, %30, %cst_12 {dimension_numbers = #tpu.dot_dimension_numbers<[1], [0], [0], [1], [0, 0, 1, 1], [], []>} : vector<16x32xbf16>, vector<32x32xbf16>, vector<16x32xf32> -> vector<16x32xf32>
    %c0_13 = arith.constant 0 : index
    %c0_14 = arith.constant 0 : index
    %32 = vector.load %arg6[%c0_13, %c0_14] : memref<1x32xf32, #tpu.memory_space<vmem>>, vector<1x32xf32>
    %33 = vector.broadcast %32 : vector<1x32xf32> to vector<16x32xf32>
    %34 = arith.addf %31, %33 : vector<16x32xf32>
    %c0_15 = arith.constant 0 : index
    %c0_16 = arith.constant 0 : index
    %35 = vector.load %arg7[%c0_15, %c0_16] : memref<16x32xf32, #tpu.memory_space<vmem>>, vector<16x32xf32>
    tpu.vector_store %arg7[%c0_15, %c0_16], %34 {strides = array<i32>} : memref<16x32xf32, #tpu.memory_space<vmem>>, vector<16x32xf32>,
    return
  }
  func.func @transform_0(%arg0: i32, %arg1: i32) -> (i32, i32) {
    %c0_i32 = arith.constant 0 : i32
    %c0_i32_0 = arith.constant 0 : i32
    return %arg0, %c0_i32 : i32, i32
  }
  func.func @transform_1(%arg0: i32, %arg1: i32) -> (i32, i32) {
    %c0_i32 = arith.constant 0 : i32
    %c0_i32_0 = arith.constant 0 : i32
    %c0_i32_1 = arith.constant 0 : i32
    return %c0_i32, %c0_i32_0 : i32, i32
  }
  func.func @transform_2(%arg0: i32, %arg1: i32) -> (i32, i32) {
    %c0_i32 = arith.constant 0 : i32
    %c0_i32_0 = arith.constant 0 : i32
    %c0_i32_1 = arith.constant 0 : i32
    return %c0_i32, %c0_i32_0 : i32, i32
  }
  func.func @transform_3(%arg0: i32, %arg1: i32) -> (i32, i32) {
    %c0_i32 = arith.constant 0 : i32
    %c0_i32_0 = arith.constant 0 : i32
    return %c0_i32, %arg1 : i32, i32
  }
  func.func @transform_4(%arg0: i32, %arg1: i32) -> (i32, i32) {
    %c0_i32 = arith.constant 0 : i32
    %c0_i32_0 = arith.constant 0 : i32
    return %c0_i32, %arg1 : i32, i32
  }
  func.func @transform_5(%arg0: i32, %arg1: i32) -> (i32, i32) {
    %c0_i32 = arith.constant 0 : i32
    return %arg0, %arg1 : i32, i32
  }
}

</mosaic_0001>

<bundles_post_ra>
// kernel: audio_encoder_forward.14
= control target key start
LH: loop header
LB: loop body
LE: loop exit
PB: predicated region body
PF: predicated region fallthrough
CT: control target
= control target key end

     0   :  { %s1621_s0 = inlined_call_operand.hbm [shape: bf16[2,17,32], index: 0, kind: input, shape index: {}]   ;;  %s1622_s1 = inlined_call_operand.hbm [shape: bf16[2,17,32], index: 1, kind: input, shape index: {}]   ;;  %s1623_s2 = inlined_call_operand.hbm [shape: bf16[3,32,32], index: 2, kind: input, shape index: {}]   ;;  %s1624_s3 = inlined_call_operand.hbm [shape: f32[1,32], index: 3, kind: input, shape index: {}]   ;;  %s1625_s4 = inlined_call_operand.hbm [shape: f32[16,32], index: 4, kind: input, shape index: {}]   ;;  %s1626_s5 = inlined_call_operand.hbm [shape: bf16[2,16,32], index: 5, kind: output, shape index: {}]  }
   0x1   :  { %1636 = sst [smem:[#allocation18_spill]] %s1621_s0 }
   0x2   :  { %1637 = sst [smem:[#allocation19_spill]] %s1623_s2 }
   0x3   :  { %1638 = sst [smem:[#allocation20_spill]] %s1624_s3 }
   0x4   :  { %10 = vsyncpa [#allocation3], 0 }
   0x5   :  { %12 = vsyncpa [#allocation3 + $0x1], 0 }
   0x6   :  { %13 = vsyncpa [#allocation6], 0 }
   0x7   :  { %15 = vsyncpa [#allocation6 + $0x1], 0 }
   0x8   :  { %16 = vsyncpa [#allocation9], 0 }
   0x9   :  { %17 = vsyncpa [#allocation4], 0 }
   0xa   :  { %19 = vsyncpa [#allocation4 + $0x1], 0  ;;  %s1281_s18 = smov 0   ;;  %s1283_s19 = smov 0  }
   0xb   :  { %s1285_s20 = smov 0   ;;  %s1287_s21 = smov 0  }
   0xc   :  { %s1289_s22 = smov 0   ;;  %s1291_s23 = smov 0  }
   0xd LB: > { %s1312_s24 = sadd.s32 4294967295, %s1237_s23   ;;  %s800_s25 = sadd.s32 4294967294, %s1237_s23   ;;  %s1237_s23 = sphi %s1291_s23, %s25_s23   ;;  %s1233_s22 = sphi %s1289_s22, %s1667_s22   ;;  %s1229_s21 = sphi %s1287_s21, %s1666_s21   ;;  %s1225_s20 = sphi %s1285_s20, %s1665_s20   ;;  %s1221_s19 = sphi %s1283_s19, %s1664_s19   ;;  %s1217_s18 = sphi %s1281_s18, %s1663_s18  }
   0xe   : > { %p57_p0 = scmp.ne.s32.totalorder %s1221_s19, %s1217_s18  ;;  %p1627_p1 = scmp.eq.s32.totalorder %s1312_s24, 0 }
   0xf   : > { %p193_p3 = scmp.eq.s32.totalorder %s800_s25, 1  ;;  %p801_p5 = scmp.ge.s32.totalorder %s1237_s23, 1 }
  0x10   : > { %p1321_p4 = por %p1627_p1, %p57_p0  ;;  %p200_p7 = scmp.lt.s32.totalorder %s1237_s23, 3 }
  0x11   : > { %p1326_p6 = por %p193_p3, %p57_p0  ;;  %s1239_s29 = smov [#allocation7]  }
  0x12   : > { %s1639_s26 = scalar_select %p1321_p4, 1, 0 }
  0x13   : > { %s1640_s27 = scalar_select %p1326_p6, 1, 0 }
  0x14   : > { %p1331_p8 = pnand %p801_p5, %p200_p7  ;;  %s214_s30 = sshll.u32 %s1239_s29, 4  ;;  %s1335_s30 = int_to_ptr.vmem [resolvable:$true] %s214_s30 }
  0x15   : > { %1641 = sst [smem:[#allocation17_spill]] %s1640_s27  ;;  %s1240_s7 = smov [#allocation8]  }
  0x16   : > { %s1642_s28 = scalar_select %p1331_p8, 1, 0 }
  0x17   : > { %p899_p9 = pneg %p1331_p8  ;;  %s230_s8 = sshll.u32 %s1240_s7, 4  ;;  %s1346_s8 = int_to_ptr.vmem [resolvable:$true] %s230_s8 }
  0x18   : > { %s1241_s9 = smov [#allocation10]   ;;  %s1644_s2 = sld [smem:[#allocation19_spill]] }
  0x19   : > { %p1342_p11 = pnand %p899_p9, %p1627_p1  ;;  %s1348_s10 = sshll.u32 %s1241_s9, 4  ;;  %s243_s10 = int_to_ptr.vmem [resolvable:$true] %s1348_s10 }
  0x1b   : > { %p1358_p13 = pneg %p1342_p11 }
  0x1e   : > { %s999_s13 = scalar_lea.hbm %s1644_s2, 768 }
  0x1f   : > { %p1000_p12 = scmp.ne.s32.totalorder %s1644_s2, %s999_s13  ;;  %p1006_p5 = scmp.lt.u32.totalorder %s999_s13, %s1644_s2 }
  0x21   : > { %p1002_p0 = pnand %p1358_p13, %p1000_p12 }
  0x23   : > { %p1003_p3 = pneg %p1002_p0 }
  0x25   : > { %p1008_p7 = pnand %p1006_p5, %p1003_p3 }
  0x27   : > { %1011 = shalt.err (!%p1008_p7)
}
  0x28   : > { %s1012_s29 = scalar_lea.vmem %s1335_s30, 768  ;;  %p1020_p2 = scmp.lt.s32.totalorder %s1335_s30, %s1335_s30 }
  0x29   : > { %p1013_p9 = scmp.ne.s32.totalorder %s1335_s30, %s1012_s29  ;;  %p1021_p6 = scmp.lt.s32.totalorder %s1012_s29, %s1012_s29 }
  0x2b   : > { %p1015_p10 = pnand %p1013_p9, %p1358_p13  ;;  %p1022_p12 = por %p1021_p6, %p1020_p2 }
  0x2d   : > { %p1016_p1 = pneg %p1015_p10 }
  0x2f   : > { %p1023_p0 = pnand %p1022_p12, %p1016_p1 }
  0x31   : > { %1026 = shalt.err (!%p1023_p0)
}
  0x32   : > { %s1631_s7 = smov 64   ;;  %s1633_s9 = smov 4  }
  0x33   : > { %902 = dma.hbm_to_vmem [thread:$0]  (!%p1342_p11), %s1644_s2, 768, %s1335_s30, [#allocation6], %s1631_s7, %s1631_s7, %s1633_s9  }
  0x34   : > { %s1646_s3 = sld [smem:[#allocation20_spill]] }
  0x3a   : > { %s1027_s15 = scalar_lea.hbm %s1646_s3, 16 }
  0x3b   : > { %p1028_p1 = scmp.ne.s32.totalorder %s1646_s3, %s1027_s15  ;;  %p1034_p10 = scmp.lt.u32.totalorder %s1027_s15, %s1646_s3 }
  0x3d   : > { %p1030_p2 = pnand %p1028_p1, %p1358_p13 }
  0x3f   : > { %p1031_p6 = pneg %p1030_p2 }
  0x41   : > { %p1036_p3 = pnand %p1034_p10, %p1031_p6 }
  0x43   : > { %1039 = shalt.err (!%p1036_p3)
}
  0x44   : > { %s1040_s30 = scalar_lea.vmem %s1346_s8, 16  ;;  %s1047_s11 = scalar_lea.vmem %s1346_s8, 32 }
  0x45   : > { %p1041_p5 = scmp.ne.s32.totalorder %s1346_s8, %s1040_s30  ;;  %p1048_p12 = scmp.lt.s32.totalorder %s1346_s8, %s1346_s8 }
  0x46   : > { %p1049_p0 = scmp.lt.s32.totalorder %s1047_s11, %s1040_s30 }
  0x47   : > { %p1043_p7 = pnand %p1041_p5, %p1358_p13 }
  0x48   : > { %p1050_p1 = por %p1049_p0, %p1048_p12 }
  0x49   : > { %p1044_p9 = pneg %p1043_p7 }
  0x4b   : > { %p1051_p2 = pnand %p1050_p1, %p1044_p9 }
  0x4d   : > { %1054 = shalt.err (!%p1051_p2)
}
  0x4e   : > { %905 = dma.hbm_to_vmem [thread:$0]  (!%p1342_p11), %s1646_s3, 16, %s1346_s8, [#allocation9]  }
  0x4f   : > { %s1055_s15 = scalar_lea.hbm %s1625_s4, 256 }
  0x50   : > { %p1056_p6 = scmp.ne.s32.totalorder %s1625_s4, %s1055_s15  ;;  %p1062_p5 = scmp.lt.u32.totalorder %s1055_s15, %s1625_s4 }
  0x52   : > { %p1058_p10 = pnand %p1056_p6, %p1358_p13 }
  0x54   : > { %p1059_p3 = pneg %p1058_p10 }
  0x56   : > { %p1064_p7 = pnand %p1062_p5, %p1059_p3 }
  0x58   : > { %1067 = shalt.err (!%p1064_p7)
}
  0x59   : > { %s1068_s11 = scalar_lea.vmem %s243_s10, 256  ;;  %p1076_p1 = scmp.lt.s32.totalorder %s243_s10, %s243_s10 }
  0x5a   : > { %p1069_p9 = scmp.ne.s32.totalorder %s243_s10, %s1068_s11  ;;  %p1077_p2 = scmp.lt.s32.totalorder %s1068_s11, %s1068_s11 }
  0x5c   : > { %p1071_p12 = pnand %p1069_p9, %p1358_p13  ;;  %p1078_p4 = por %p1077_p2, %p1076_p1 }
  0x5e   : > { %p1072_p0 = pneg %p1071_p12 }
  0x60   : > { %p1079_p8 = pnand %p1078_p4, %p1072_p0 }
  0x62   : > { %1082 = shalt.err (!%p1079_p8)
}
  0x63   : > { %s1244_s8 = smov 128   ;;  %s1245_s16 = smov 8  }
  0x64   : > { %908 = dma.hbm_to_vmem [thread:$0]  (!%p1342_p11), %s1625_s4, 256, %s243_s10, [#allocation9], %s1244_s8, %s1244_s8, %s1245_s16  }
  0x65   : > { %s44_s13 = sadd.s32 1, %s1225_s20  ;;  %s37_s14 = sadd.s32 1, %s1233_s22 }
  0x66   : > { %p51_p4 = scmp.ne.s32.totalorder %s1225_s20, %s1221_s19  ;;  %p39_p8 = scmp.ge.s32.totalorder %s37_s14, 2 }
  0x67   : > { %p52_p13 = scmp.eq.s32.totalorder %s1237_s23, 0  ;;  %p1647_p6 = scmp.eq.s32.totalorder %s1312_s24, 1 }
  0x68   : > { %p923_p3 = scmp.lt.s32.totalorder %s1237_s23, 2  ;;  %s1669_s14 = smov (%p39_p8, %s37_s14), 0 }
  0x69   : > { %p1432_p10 = por %p1647_p6, %p51_p4  ;;  %p53_p5 = por %p52_p13, %p51_p4 }
  0x6a   : > { %s256_s6 = sand.u32 1, %s1225_s20   ;;  %s41_s10 = ssub.s32 %s1233_s22, %s1669_s14 }
  0x6b   : > { %p42_p11 = scmp.eq.s32.totalorder %s41_s10, 0  ;;  %s1442_s17 = smul.u32 12, %s256_s6 }
  0x6c   : > { %s1635_s25 = smul.u32 192, %s1233_s22  ;;  %p1445_p7 = pnand %p923_p3, %p53_p5 }
  0x6d   : > { %s1450_s30 = scalar_select %p42_p11, %s1225_s20, %s44_s13  }
  0x6e   : > { %s1650_s0 = sld [smem:[#allocation18_spill]]  ;;  %s260_s27 = scalar_lea.vmem [#allocation2], %s1442_s17 }
  0x6f   : > { %s267_s12 = sshll.u32 %s260_s27, 4  ;;  %s277_s10 = sand.u32 1, %s1237_s23   ;;  %s1460_s12 = int_to_ptr.vmem [resolvable:$true] %s267_s12 }
  0x70   : > { %s1463_s7 = scalar_lea.sflag [#allocation3], %s256_s6  ;;  %p1085_p12 = pneg %p1445_p7 }
  0x74   : > { %s1457_s16 = scalar_lea.hbm %s1650_s0, %s1635_s25  ;;  %s1088_s8 = scalar_lea.hbm %s1650_s0, 384 }
  0x75   : > { %s1083_s9 = scalar_lea.hbm %s1457_s16, 192  ;;  %p1089_p2 = scmp.lt.u32.totalorder %s1457_s16, %s1650_s0 }
  0x76   : > { %p1084_p9 = scmp.ne.s32.totalorder %s1457_s16, %s1083_s9  ;;  %p1090_p4 = scmp.lt.u32.totalorder %s1088_s8, %s1083_s9 }
  0x77   : > { %p1092_p13 = scmp.lt.u32.totalorder %s1083_s9, %s1457_s16 }
  0x78   : > { %p1086_p0 = pnand %p1085_p12, %p1084_p9  ;;  %p1091_p8 = por %p1090_p4, %p1089_p2 }
  0x7a   : > { %p1087_p1 = pneg %p1086_p0  ;;  %p1093_p6 = por %p1092_p13, %p1091_p8 }
  0x7c   : > { %p1094_p3 = pnand %p1093_p6, %p1087_p1 }
  0x7e   : > { %1097 = shalt.err (!%p1094_p3)
}
  0x7f   : > { %s1098_s6 = scalar_lea.vmem %s1460_s12, 192  ;;  %s1246_s27 = smov [#allocation2]  }
  0x80   : > { %p1099_p5 = scmp.ne.s32.totalorder %s1460_s12, %s1098_s6  ;;  %s1103_s13 = sshll.u32 %s1246_s27, 4  ;;  %s1104_s13 = int_to_ptr.vmem [resolvable:$false] %s1103_s13 }
  0x81   : > { %s1105_s2 = scalar_lea.vmem %s1104_s13, 384  ;;  %p1106_p0 = scmp.lt.s32.totalorder %s1460_s12, %s1104_s13 }
  0x82   : > { %p1101_p11 = pnand %p1099_p5, %p1085_p12  ;;  %p1107_p2 = scmp.lt.s32.totalorder %s1105_s2, %s1098_s6 }
  0x84   : > { %p1102_p9 = pneg %p1101_p11  ;;  %p1108_p4 = por %p1107_p2, %p1106_p0 }
  0x86   : > { %p1109_p8 = pnand %p1108_p4, %p1102_p9 }
  0x88   : > { %1112 = shalt.err (!%p1109_p8)
}
  0x89   : > { %s1651_s9 = smov 4   ;;  %s1652_s25 = smov 64  }
  0x8a   : > { %912 = dma.hbm_to_vmem [thread:$0]  (!%p1445_p7), %s1457_s16, 192, %s1460_s12, %s1463_s7, %s1652_s25, %s1652_s25, %s1651_s9  }
  0x8b   : > { %s1653_s11 = smul.u32 192, %s1233_s22  ;;  %s281_s13 = scalar_lea.vmem [#allocation5], %s1442_s17 }
  0x8c   : > { %s288_s2 = sshll.u32 %s281_s13, 4  ;;  %s1506_s0 = scalar_lea.sflag [#allocation6], %s277_s10  ;;  %s1502_s2 = int_to_ptr.vmem [resolvable:$true] %s288_s2 }
  0x8d   : > { %s1499_s6 = scalar_lea.hbm %s1622_s1, %s1653_s11  ;;  %s1118_s12 = scalar_lea.hbm %s1622_s1, 384 }
  0x8e   : > { %s1113_s3 = scalar_lea.hbm %s1499_s6, 192  ;;  %p1119_p3 = scmp.lt.u32.totalorder %s1499_s6, %s1622_s1 }
  0x8f   : > { %p1114_p1 = scmp.ne.s32.totalorder %s1499_s6, %s1113_s3  ;;  %p1120_p5 = scmp.lt.u32.totalorder %s1118_s12, %s1113_s3 }
  0x90   : > { %p1122_p9 = scmp.lt.u32.totalorder %s1113_s3, %s1499_s6 }
  0x91   : > { %p1116_p13 = pnand %p1114_p1, %p1085_p12  ;;  %p1121_p11 = por %p1120_p5, %p1119_p3 }
  0x93   : > { %p1117_p6 = pneg %p1116_p13  ;;  %p1123_p0 = por %p1122_p9, %p1121_p11 }
  0x95   : > { %p1124_p2 = pnand %p1123_p0, %p1117_p6 }
  0x97   : > { %1127 = shalt.err (!%p1124_p2)
}
  0x98   : > { %s1128_s17 = scalar_lea.vmem %s1502_s2, 192  ;;  %s1247_s10 = smov [#allocation5]  }
  0x99   : > { %p1129_p4 = scmp.ne.s32.totalorder %s1502_s2, %s1128_s17  ;;  %s1133_s27 = sshll.u32 %s1247_s10, 4  ;;  %s1134_s27 = int_to_ptr.vmem [resolvable:$false] %s1133_s27 }
  0x9a   : > { %s1135_s13 = scalar_lea.vmem %s1134_s27, 384  ;;  %p1136_p13 = scmp.lt.s32.totalorder %s1502_s2, %s1134_s27 }
  0x9b   : > { %p1131_p8 = pnand %p1129_p4, %p1085_p12  ;;  %p1137_p3 = scmp.lt.s32.totalorder %s1135_s13, %s1128_s17 }
  0x9d   : > { %p1132_p1 = pneg %p1131_p8  ;;  %p1138_p5 = por %p1137_p3, %p1136_p13 }
  0x9f   : > { %p1139_p11 = pnand %p1138_p5, %p1132_p1 }
  0xa1   : > { %1142 = shalt.err (!%p1139_p11)
}
  0xa2   : > { %915 = dma.hbm_to_vmem [thread:$0]  (!%p1445_p7), %s1499_s6, 192, %s1502_s2, %s1506_s0, %s1652_s25, %s1652_s25, %s1651_s9  }
  0xa3   : > { %p1654_p12 = scmp.ne.s32.totalorder %s1642_s28, 0 }
  0xa4   : > { %s1538_s3 = sand.u32 (!%p1654_p12), 1, %s1221_s19   ;;  %p1655_p6 = scmp.ne.s32.totalorder (!%p1654_p12), %s1639_s26, 0 }
  0xa5   : > { %300 = sbr.rel (%p1654_p12) target bundleno = 466 (0x1d2), region = 40  ;;  %s303_s16 = scalar_lea.sflag (!%p1654_p12), [#allocation3], %s1538_s3 }
  0xa6   : > { %s880_s7 = smul.u32 (!%p1654_p12), 12, %s1538_s3 }
  0xa8   : > { %s306_s12 = scalar_lea.vmem (!%p1654_p12), [#allocation2], %s880_s7 }
  0xac   : > { %1196 = dma.done.wait (%p1655_p6), %s303_s16, 192  }
  0xad   : > { %1198 = vsyncadd (%p1655_p6), %s303_s16, 4294967104  ;;  %s311_s0 = sand.u32 1, %s1312_s24   ;;  %s315_s28 = scalar_lea.vmem [#allocation5], %s880_s7 }
  0xae   : > { %s312_s29 = scalar_lea.sflag [#allocation6], %s311_s0 }
  0xaf   : > { %1200 = dma.done.wait (%p1655_p6), %s312_s29, 192  }
  0xb0   : > { %1202 = vsyncadd (%p1655_p6), %s312_s29, 4294967104  ;;  %p1656_p7 = scmp.eq.s32.totalorder %s1312_s24, 0 }
  0xb2   : > { %1204 = dma.done.wait (%p1656_p7), [#allocation6], 768   ;;  %p1657_p9 = pmov %p1656_p7 }
  0xb3   : > { %p1658_p0 = pmov %p1656_p7 }
  0xb4   : > { %1206 = vsyncadd (%p1657_p9), [#allocation6], 4294966528 }
  0xb5   : > { %1208 = dma.done.wait (%p1658_p0), [#allocation9], 272   ;;  %p1659_p2 = pmov %p1658_p0 }
  0xb6   : > { %v985_v0 = vld [vmem:[#allocation7] sm:$0xff]   ;;  %v986_v1 = vld [vmem:[#allocation7 + $0x10] sm:$0xff]   ;;  %v987_v2 = vld [vmem:[#allocation7 + $0x8] sm:$0xff]   ;;  %vm390_vm0 = vcmask 261120   ;;  %vm592_vm1 = vcmask 1046528   ;;  %s812_s24 = sshll.u32 %s1538_s3, 3 }
  0xb7   : > { %1210 = vsyncadd (%p1659_p2), [#allocation9], 4294967024  ;;  %852 = vmatprep.subr.bf16.mxu0 %v985_v0  ;;  %860 = vmatprep.subr.bf16.mxu1 %v986_v1  ;;  %v988_v3 = vld [vmem:[#allocation7 + $0x18] sm:$0xff]   ;;  %v993_v7 = vld [vmem:[#allocation7 + $0x20] sm:$0xff]   ;;  %s839_s26 = sshll.u32 %s1229_s21, 7  ;;  %s358_s9 = scalar_lea.vmem [#allocation11], %s812_s24 }
  0xb8   : > { %853 = vmatpush3.bf16.msra.mxu0 %v985_v0  ;;  %861 = vmatpush3.bf16.msra.mxu1 %v986_v1  ;;  %v989_v4 = vld [vmem:[%s306_s12] sm:$0xff]   ;;  %v990_v5 = vld [vmem:[%s315_s28] sm:$0xff]   ;;  %v991_v6 = vld [vmem:[%s306_s12 + $0x8] ss:$0 sps:$4 sm:$0x11]   ;;  %s659_s25 = sshll.u32 %s358_s9, 4  ;;  %s1570_s11 = scalar_lea.hbm %s1626_s5, %s839_s26  ;;  %s1572_s25 = int_to_ptr.vmem [resolvable:$true] %s659_s25 }
  0xb9   : > { %854 = vmatprep.subr.bf16.mxu0 %v987_v2  ;;  %862 = vmatprep.subr.bf16.mxu1 %v988_v3  ;;  %v992_v8 = vld [vmem:[%s315_s28 + $0x8] ss:$0 sps:$4 sm:$0x11]   ;;  %v994_v9 = vld [vmem:[#allocation7 + $0x28] sm:$0xff]   ;;  %v629_v50 = vld [vmem:[#allocation10] sm:$0xff]  ;;  %vm641_vm2 = vcmask 257024  }
  0xba   : > { %856 = vmatprep.mubr.msk.bf16.mxu0 %vm390_vm0, %v989_v4  ;;  %864 = vmatprep.mubr.msk.bf16.mxu1 %vm390_vm0, %v990_v5  ;;  %v829_v29 = vld [vmem:[#allocation8] ss:$0 sm:$0xff]  ;;  %v630_v52 = vld [vmem:[#allocation10 + $0x8] sm:$0xff]  ;;  %s645_s21 = scalar_lea.sflag [#allocation4], %s1538_s3  ;;  %s1143_s8 = scalar_lea.vmem %s1572_s25, 128 }
  0xbb   : > { %p1144_p4 = scmp.ne.s32.totalorder %s1572_s25, %s1143_s8  ;;  %s1248_s17 = smov [#allocation11]  }
  0xbc   : > { %855 = vmatpush3.bf16.msra.mxu0 %v987_v2  ;;  %863 = vmatpush3.bf16.msra.mxu1 %v988_v3  ;;  %s1147_s10 = sshll.u32 %s1248_s17, 4  ;;  %s1148_s10 = int_to_ptr.vmem [resolvable:$false] %s1147_s10 }
  0xbd   : > { %868 = vmatprep.subr.bf16.mxu0 %v993_v7  ;;  %p1145_p8 = pnand %p1144_p4, %p1432_p10  ;;  %s1149_s27 = scalar_lea.vmem %s1148_s10, 256 }
  0xbe   : > { %p1150_p13 = scmp.lt.s32.totalorder %s1572_s25, %s1148_s10  ;;  %p1151_p3 = scmp.lt.s32.totalorder %s1149_s27, %s1143_s8 }
  0xbf   : > { %857 = vmatmul.mubr.msk.bf16.vlgmr.msra.gmra.mrb[0].mxu0 %vm390_vm0, %v991_v6  ;;  %865 = vmatmul.mubr.msk.bf16.vlgmr.msra.gmra.mrb[0].mxu1 %vm390_vm0, %v992_v8  ;;  %p1146_p1 = pneg %p1145_p8 }
  0xc0   : > { %869 = vmatpush3.bf16.msra.mxu0 %v993_v7  ;;  %872 = vmatprep.mubr.msk.bf16.mxu0 %vm390_vm0, %v989_v4  ;;  %p1152_p5 = por %p1151_p3, %p1150_p13 }
  0xc1   : > { %870 = vmatprep.subr.bf16.mxu0 %v994_v9 }
  0xc2   : > { %p1153_p11 = pnand %p1152_p5, %p1146_p1 }
  0xc4   : > { %871 = vmatpush3.bf16.msra.mxu0 %v994_v9 }
  0xc7   : > { %873 = vmatmul.mubr.msk.bf16.vlgmr.msra.gmra.mrb[4].mxu0 %vm390_vm0, %v991_v6 }
 0x192   : > { %v858_v10 = vpop.f32.mrb[0].mxu0  ;;  %v866_v11 = vpop.f32.mrb[0].mxu1 }
 0x193   : > { %v431_v12 = vpop.f32.mrb[1].mxu0  ;;  %v509_v13 = vpop.f32.mrb[1].mxu1 }
 0x194   : > { %v859_v14 = vpop.f32.mrb[2].mxu0  ;;  %v587_v15 = vadd.f32 %v509_v13, %v431_v12  ;;  %v867_v16 = vpop.f32.mrb[2].mxu1 }
 0x195   : > { %v434_v17 = vpop.f32.mrb[3].mxu0  ;;  %v512_v18 = vpop.f32.mrb[3].mxu1 }
 0x196   : > { %v588_v19 = vadd.f32 %v512_v18, %v434_v17 }
 0x19a   : > { %v874_v20 = vpop.f32.mrb[4].mxu0 }
 0x19b   : > { %v573_v21 = vpop.f32.mrb[5].mxu0  ;;  %v596_v24 = vrot.slane %v874_v20, 1 }
 0x19c   : > { %v875_v22 = vpop.f32.mrb[6].mxu0  ;;  %v593_v25 = vrot.slane %v573_v21, 1 }
 0x19d   : > { %v576_v23 = vpop.f32.mrb[7].mxu0 }
 0x19e   : > { %v594_v26 = vrot.slane %v576_v23, 1 }
 0x1a0   : > { %v595_v27 = vsel %vm592_vm1, %v593_v25, %v594_v26  ;;  %v597_v28 = vsel %vm592_vm1, %v594_v26, %v596_v24 }
 0x1a1   : > { %v600_v30 = vadd.f32 %v595_v27, %v587_v15  ;;  %v601_v31 = vadd.f32 %v597_v28, %v588_v19 }
 0x1a3   : > { %v609_v32 = vadd.f32 %v829_v29, %v600_v30  ;;  %v610_v33 = vadd.f32 %v829_v29, %v601_v31 }
 0x1a5   : > { %v613_v34 = vmul.f32 0.044715, %v609_v32  ;;  %v614_v35 = vmul.f32 0.044715, %v610_v33  ;;  %v611_v46 = vmul.f32 0.5, %v609_v32  ;;  %v612_v48 = vmul.f32 0.5, %v610_v33 }
 0x1a7   : > { %v615_v36 = vmul.f32 %v613_v34, %v609_v32  ;;  %v616_v37 = vmul.f32 %v614_v35, %v610_v33 }
 0x1a9   : > { %v617_v38 = vmul.f32 %v615_v36, %v609_v32  ;;  %v618_v39 = vmul.f32 %v616_v37, %v610_v33 }
 0x1ab   : > { %v619_v40 = vadd.f32 %v617_v38, %v609_v32  ;;  %v620_v41 = vadd.f32 %v618_v39, %v610_v33 }
 0x1ad   : > { %v621_v42 = vmul.f32 0.7978846, %v619_v40  ;;  %v622_v43 = vmul.f32 0.7978846, %v620_v41 }
 0x1af   : > { %995 = vtanh.f32 %v621_v42 }
 0x1b0   : > { %997 = vtanh.f32 %v622_v43 }
 0x1b9   : > { %v996_v44 = vpop.eup %995 }
 0x1ba   : > { %v998_v45 = vpop.eup %997  ;;  %v625_v47 = vadd.f32 1.0, %v996_v44 }
 0x1bb   : > { %v626_v49 = vadd.f32 1.0, %v998_v45 }
 0x1bc   : > { %v627_v51 = vmul.f32 %v625_v47, %v611_v46 }
 0x1bd   : > { %v628_v53 = vmul.f32 %v626_v49, %v612_v48 }
 0x1be   : > { %v631_v54 = vadd.f32 %v629_v50, %v627_v51 }
 0x1bf   : > { %v632_v55 = vadd.f32 %v630_v52, %v628_v53 }
 0x1c0   : > { %v837_v56 = vpack.c.bf16 %v631_v54, %v631_v54 }
 0x1c1   : > { %v838_v57 = vpack.c.bf16 %v632_v55, %v632_v55 }
 0x1c2   : > { %642 = vst.msk [vmem:[%s358_s9] sm:$0xf] %vm641_vm2, %v837_v56 }
 0x1c3   : > { %643 = vst.msk [vmem:[%s358_s9 + $0x4] sm:$0xf] %vm641_vm2, %v838_v57 }
 0x1c4   : > { %1156 = shalt.err (!%p1153_p11)
}
 0x1c5   : > { %s1157_s13 = scalar_lea.hbm %s1570_s11, 128  ;;  %s1161_s12 = scalar_lea.hbm %s1626_s5, 256 }
 0x1c6   : > { %p1158_p12 = scmp.ne.s32.totalorder %s1570_s11, %s1157_s13  ;;  %p1162_p9 = scmp.lt.u32.totalorder %s1570_s11, %s1626_s5 }
 0x1c7   : > { %p1163_p0 = scmp.lt.u32.totalorder %s1161_s12, %s1157_s13  ;;  %p1165_p4 = scmp.lt.u32.totalorder %s1157_s13, %s1570_s11 }
 0x1c8   : > { %p1159_p6 = pnand %p1158_p12, %p1432_p10 }
 0x1c9   : > { %p1164_p2 = por %p1163_p0, %p1162_p9 }
 0x1ca   : > { %p1160_p7 = pneg %p1159_p6 }
 0x1cb   : > { %p1166_p8 = por %p1165_p4, %p1164_p2 }
 0x1cd   : > { %p1167_p1 = pnand %p1166_p8, %p1160_p7 }
 0x1cf   : > { %1170 = shalt.err (!%p1167_p1)
}
 0x1d0   : > { %s1249_s28 = smov 64   ;;  %s1250_s24 = smov 4  }
 0x1d1   : > { %897 = dma.vmem_to_hbm [thread:$0]  (%p1432_p10), %s1572_s25, 128, %s1570_s11, %s645_s21, %s1249_s28, %s1249_s28, %s1250_s24  }
 0x1d2 PF: > { %s1660_s26 = sld [smem:[#allocation17_spill]]  ;;  %s674_s9 = sand.u32 1, %s1217_s18  }
 0x1d3   : > { %p1662_p3 = scmp.ge.s32.totalorder %s1237_s23, 2  ;;  %s675_s6 = scalar_lea.sflag [#allocation4], %s674_s9 }
 0x1d8   : > { %p1661_p13 = scmp.ne.s32.totalorder %s1660_s26, 0 }
 0x1da   : > { %p917_p5 = pnand %p1662_p3, %p1661_p13 }
 0x1dc   : > { %1212 = dma.done.wait (!%p917_p5), %s675_s6, 128  }
 0x1dd   : > { %1214 = vsyncadd (!%p917_p5), %s675_s6, 4294967168  ;;  %s25_s23 = sadd.s32 1, %s1237_s23   ;;  %s1663_s18 = smov %s1221_s19 }
 0x1de   : > { %p22_p11 = scmp.ge.s32.totalorder %s25_s23, 4   ;;  %s1664_s19 = smov %s1225_s20 }
 0x1df   : > { %s1665_s20 = smov %s1450_s30  ;;  %s1666_s21 = smov %s1233_s22 }
 0x1e0   : > { %s1667_s22 = smov %s1669_s14  ;;  %24 = sbr.rel (!%p22_p11) target bundleno = 13 (0xd), region = 115 }
 0x1e7   :  { %680 = vsyncpa [#allocation3], 1 }
 0x1e8   :  { %682 = vsyncpa [#allocation3 + $0x1], 1 }
 0x1e9   :  { %683 = vsyncpa [#allocation6], 1 }
 0x1ea   :  { %685 = vsyncpa [#allocation6 + $0x1], 1 }
 0x1eb   :  { %686 = vsyncpa [#allocation9], 1 }
 0x1ec   :  { %687 = vsyncpa [#allocation4], 1 }
 0x1ed   :  { %689 = vsyncpa [#allocation4 + $0x1], 1 }

// kernel: audio_encoder_forward.13
= control target key start
LH: loop header
LB: loop body
LE: loop exit
PB: predicated region body
PF: predicated region fallthrough
CT: control target
= control target key end

     0   :  { %8 = vsyncpa [#allocation3], 0  ;;  %s1298_s0 = inlined_call_operand.hbm [shape: f32[2,34,8], index: 0, kind: input, shape index: {}]   ;;  %s1299_s1 = inlined_call_operand.hbm [shape: bf16[3,8,32], index: 1, kind: input, shape index: {}]   ;;  %s1300_s2 = inlined_call_operand.hbm [shape: f32[1,32], index: 2, kind: input, shape index: {}]   ;;  %s1301_s3 = inlined_call_operand.hbm [shape: bf16[2,32,32], index: 3, kind: output, shape index: {}]  }
   0x1   :  { %10 = vsyncpa [#allocation3 + $0x1], 0 }
   0x2   :  { %11 = vsyncpa [#allocation6], 0 }
   0x3   :  { %12 = vsyncpa [#allocation4], 0 }
   0x4   :  { %14 = vsyncpa [#allocation4 + $0x1], 0  ;;  %s1029_s12 = smov 0   ;;  %s1031_s13 = smov 0  }
   0x5   :  { %s1033_s14 = smov 0   ;;  %s1035_s15 = smov 0  }
   0x6   :  { %s1037_s16 = smov 0   ;;  %s1039_s17 = smov 0  }
   0x7 LB: > { %s655_s18 = sadd.s32 4294967295, %s997_s17   ;;  %s656_s19 = sadd.s32 4294967294, %s997_s17   ;;  %s997_s17 = sphi %s1039_s17, %s20_s17   ;;  %s993_s16 = sphi %s1037_s16, %s1323_s16   ;;  %s989_s15 = sphi %s1035_s15, %s1322_s15   ;;  %s985_s14 = sphi %s1033_s14, %s1321_s14   ;;  %s981_s13 = sphi %s1031_s13, %s1320_s13   ;;  %s977_s12 = sphi %s1029_s12, %s1319_s12  }
   0x8   : > { %p52_p0 = scmp.ne.s32.totalorder %s981_s13, %s977_s12  ;;  %p1063_p1 = scmp.eq.s32.totalorder %s655_s18, 0 }
   0x9   : > { %p1067_p2 = scmp.eq.s32.totalorder %s655_s18, 1  ;;  %p136_p3 = scmp.eq.s32.totalorder %s656_s19, 1 }
   0xa   : > { %s1306_s20 = scalar_select %p1063_p1, 1, 0 }
   0xb   : > { %p1073_p4 = por %p1063_p1, %p52_p0  ;;  %p657_p5 = scmp.ge.s32.totalorder %s997_s17, 1 }
   0xc   : > { %p1078_p6 = por %p136_p3, %p52_p0  ;;  %p143_p7 = scmp.lt.s32.totalorder %s997_s17, 3 }
   0xd   : > { %s1308_s22 = scalar_select %p1073_p4, 1, 0 }
   0xe   : > { %s1309_s23 = scalar_select %p1078_p6, 1, 0 }
   0xf   : > { %p1083_p8 = pnand %p657_p5, %p143_p7  ;;  %s999_s25 = smov [#allocation5]  }
  0x10   : > { %s157_s26 = sshll.u32 %s999_s25, 4  ;;  %s1000_s28 = smov [#allocation7]   ;;  %s1087_s26 = int_to_ptr.vmem [resolvable:$true] %s157_s26 }
  0x11   : > { %p740_p9 = pneg %p1083_p8  ;;  %s173_s29 = sshll.u32 %s1000_s28, 4  ;;  %s1098_s29 = int_to_ptr.vmem [resolvable:$true] %s173_s29 }
  0x12   : > { %s825_s5 = scalar_lea.hbm %s1299_s1, 192 }
  0x13   : > { %p1094_p11 = pnand %p740_p9, %p1063_p1  ;;  %p826_p12 = scmp.ne.s32.totalorder %s1299_s1, %s825_s5 }
  0x14   : > { %p832_p5 = scmp.lt.u32.totalorder %s825_s5, %s1299_s1 }
  0x15   : > { %p827_p13 = pneg %p1094_p11 }
  0x17   : > { %p828_p0 = pnand %p827_p13, %p826_p12 }
  0x19   : > { %p829_p3 = pneg %p828_p0 }
  0x1b   : > { %p834_p7 = pnand %p832_p5, %p829_p3 }
  0x1d   : > { %837 = shalt.err (!%p834_p7)
}
  0x1e   : > { %s838_s10 = scalar_lea.vmem %s1087_s26, 192  ;;  %p846_p1 = scmp.lt.s32.totalorder %s1087_s26, %s1087_s26 }
  0x1f   : > { %p839_p9 = scmp.ne.s32.totalorder %s1087_s26, %s838_s10  ;;  %p847_p12 = scmp.lt.s32.totalorder %s838_s10, %s838_s10 }
  0x21   : > { %p841_p10 = pnand %p839_p9, %p827_p13  ;;  %p848_p0 = por %p847_p12, %p846_p1 }
  0x23   : > { %p842_p6 = pneg %p841_p10 }
  0x25   : > { %p849_p4 = pnand %p848_p0, %p842_p6 }
  0x27   : > { %852 = shalt.err (!%p849_p4)
}
  0x28   : > { %s1001_s11 = smov 64   ;;  %s1002_s18 = smov 4  }
  0x29   : > { %743 = dma.hbm_to_vmem [thread:$0]  (!%p1094_p11), %s1299_s1, 192, %s1087_s26, [#allocation6], %s1001_s11, %s1001_s11, %s1002_s18  }
  0x2a   : > { %s853_s4 = scalar_lea.hbm %s1300_s2, 16 }
  0x2b   : > { %p854_p1 = scmp.ne.s32.totalorder %s1300_s2, %s853_s4  ;;  %p860_p10 = scmp.lt.u32.totalorder %s853_s4, %s1300_s2 }
  0x2d   : > { %p856_p4 = pnand %p854_p1, %p827_p13 }
  0x2f   : > { %p857_p6 = pneg %p856_p4 }
  0x31   : > { %p862_p3 = pnand %p860_p10, %p857_p6 }
  0x33   : > { %865 = shalt.err (!%p862_p3)
}
  0x34   : > { %s866_s26 = scalar_lea.vmem %s1098_s29, 16  ;;  %s873_s9 = scalar_lea.vmem %s1098_s29, 32 }
  0x35   : > { %p867_p5 = scmp.ne.s32.totalorder %s1098_s29, %s866_s26  ;;  %p874_p12 = scmp.lt.s32.totalorder %s1098_s29, %s1098_s29 }
  0x36   : > { %p875_p0 = scmp.lt.s32.totalorder %s873_s9, %s866_s26 }
  0x37   : > { %p869_p7 = pnand %p867_p5, %p827_p13 }
  0x38   : > { %p876_p1 = por %p875_p0, %p874_p12 }
  0x39   : > { %p870_p9 = pneg %p869_p7 }
  0x3b   : > { %p877_p4 = pnand %p876_p1, %p870_p9 }
  0x3d   : > { %880 = shalt.err (!%p877_p4)
}
  0x3e   : > { %746 = dma.hbm_to_vmem [thread:$0]  (!%p1094_p11), %s1300_s2, 16, %s1098_s29, [#allocation6]  }
  0x3f   : > { %s32_s18 = sadd.s32 1, %s993_s16  ;;  %s39_s19 = sadd.s32 1, %s985_s14 }
  0x40   : > { %p34_p13 = scmp.ge.s32.totalorder %s32_s18, 2  ;;  %p46_p6 = scmp.ne.s32.totalorder %s985_s14, %s981_s13 }
  0x41   : > { %p47_p10 = scmp.eq.s32.totalorder %s997_s17, 0  ;;  %p757_p3 = scmp.lt.s32.totalorder %s997_s17, 2 }
  0x42   : > { %s1325_s18 = smov (%p34_p13, %s32_s18), 0  ;;  %p1163_p7 = por %p1067_p2, %p46_p6 }
  0x43   : > { %p48_p5 = por %p47_p10, %p46_p6  ;;  %s36_s25 = ssub.s32 %s993_s16, %s1325_s18 }
  0x44   : > { %s1312_s27 = scalar_select %p1163_p7, 1, 0 }
  0x45   : > { %s184_s28 = sand.u32 1, %s985_s14   ;;  %p37_p9 = scmp.eq.s32.totalorder %s36_s25, 0 }
  0x46   : > { %s725_s29 = smul.u32 40, %s184_s28  ;;  %p1170_p11 = pnand %p757_p3, %p48_p5 }
  0x47   : > { %s1175_s4 = scalar_select %p37_p9, %s985_s14, %s39_s19  }
  0x48   : > { %s726_s5 = smul.u32 640, %s993_s16  ;;  %s188_s6 = scalar_lea.vmem [#allocation2], %s725_s29 }
  0x49   : > { %s195_s7 = sshll.u32 %s188_s6, 4  ;;  %s1185_s9 = scalar_lea.sflag [#allocation3], %s184_s28  ;;  %s1183_s7 = int_to_ptr.vmem [resolvable:$true] %s195_s7 }
  0x4a   : > { %s1181_s26 = scalar_lea.hbm %s1298_s0, %s726_s5  ;;  %p883_p12 = pneg %p1170_p11 }
  0x4b   : > { %s881_s10 = scalar_lea.hbm %s1181_s26, 640  ;;  %s886_s25 = scalar_lea.hbm %s1298_s0, 1280 }
  0x4c   : > { %p882_p2 = scmp.ne.s32.totalorder %s1181_s26, %s881_s10  ;;  %p887_p4 = scmp.lt.u32.totalorder %s1181_s26, %s1298_s0 }
  0x4d   : > { %p888_p13 = scmp.lt.u32.totalorder %s886_s25, %s881_s10  ;;  %p890_p10 = scmp.lt.u32.totalorder %s881_s10, %s1181_s26 }
  0x4e   : > { %p884_p0 = pnand %p883_p12, %p882_p2 }
  0x4f   : > { %p889_p6 = por %p888_p13, %p887_p4 }
  0x50   : > { %p885_p1 = pneg %p884_p0 }
  0x51   : > { %p891_p3 = por %p890_p10, %p889_p6 }
  0x53   : > { %p892_p5 = pnand %p891_p3, %p885_p1 }
  0x55   : > { %895 = shalt.err (!%p892_p5)
}
  0x56   : > { %s896_s28 = scalar_lea.vmem %s1183_s7, 640  ;;  %s1003_s6 = smov [#allocation2]  }
  0x57   : > { %p897_p9 = scmp.ne.s32.totalorder %s1183_s7, %s896_s28  ;;  %s901_s21 = sshll.u32 %s1003_s6, 4  ;;  %s902_s21 = int_to_ptr.vmem [resolvable:$false] %s901_s21 }
  0x58   : > { %s903_s8 = scalar_lea.vmem %s902_s21, 1280  ;;  %p904_p7 = scmp.lt.s32.totalorder %s1183_s7, %s902_s21 }
  0x59   : > { %p899_p2 = pnand %p897_p9, %p883_p12  ;;  %p905_p4 = scmp.lt.s32.totalorder %s903_s8, %s896_s28 }
  0x5b   : > { %p900_p0 = pneg %p899_p2  ;;  %p906_p13 = por %p905_p4, %p904_p7 }
  0x5d   : > { %p907_p6 = pnand %p906_p13, %p900_p0 }
  0x5f   : > { %910 = shalt.err (!%p907_p6)
}
  0x60   : > { %s1004_s10 = smov 128   ;;  %s1005_s11 = smov 8  }
  0x61   : > { %750 = dma.hbm_to_vmem [thread:$0]  (!%p1170_p11), %s1181_s26, 640, %s1183_s7, %s1185_s9, %s1004_s10, %s1004_s10, %s1005_s11  }
  0x62   : > { %207 = sbr.rel (%p1083_p8) target bundleno = 387 (0x183), region = 32  ;;  %s1216_s19 = sand.u32 (!%p1083_p8), 1, %s981_s13  }
  0x63   : > { %s727_s25 = smul.u32 (!%p1083_p8), 40, %s1216_s19  ;;  %s210_s29 = scalar_lea.sflag (!%p1083_p8), [#allocation3], %s1216_s19 }
  0x64   : > { %p1314_p7 = scmp.ne.s32.totalorder (!%p1083_p8), %s1308_s22, 0 }
  0x65   : > { %s213_s5 = scalar_lea.vmem (!%p1083_p8), [#allocation2], %s727_s25 }
  0x69   : > { %964 = dma.done.wait (%p1314_p7), %s210_s29, 640  }
  0x6a   : > { %966 = vsyncadd (%p1314_p7), %s210_s29, 4294966656  ;;  %p1315_p12 = scmp.ne.s32.totalorder %s1306_s20, 0 }
  0x6c   : > { %968 = dma.done.wait (%p1315_p12), [#allocation6], 208  }
  0x6d   : > { %970 = vsyncadd (%p1315_p12), [#allocation6], 4294967088  ;;  %vm284_vm0 = vcmask 1043456   ;;  %v253_v0 = vld [vmem:[#allocation5] sm:$0xf]  ;;  %v245_v1 = vld [vmem:[%s213_s5] sm:$0xff] }
  0x6e   : > { %v246_v2 = vld [vmem:[%s213_s5 + $0x8] sm:$0xff]  ;;  %vm277_vm1 = vcmask 64512   ;;  %723 = vmatprep.subr.msk.bf16.mxu0 %vm284_vm0, %v253_v0  ;;  %v342_v3 = vsel %vm284_vm0, %v253_v0, 0  ;;  %v247_v5 = vld [vmem:[%s213_s5 + $0x10] sm:$0xff]  ;;  %v248_v6 = vld [vmem:[%s213_s5 + $0x18] sm:$0xff]  ;;  %vm398_vm2 = vcmask 1046528  }
  0x6f   : > { %v250_v4 = vpack.c.bf16 %v246_v2, %v245_v1  ;;  %v394_v7 = vld [vmem:[#allocation5 + $0x8] sm:$0xf]  ;;  %703 = vmatpush3.bf16.msra.mxu0 %v342_v3  ;;  %v251_v8 = vpack.c.bf16 %v248_v6, %v247_v5  ;;  %v255_v10 = vld [vmem:[#allocation5 + $0x4] sm:$0xf]  ;;  %v249_v11 = vld [vmem:[%s213_s5 + $0x20] sm:$0x3] }
  0x70   : > { %v411_v9 = vsel %vm284_vm0, %v394_v7, 0  ;;  %724 = vmatprep.subr.msk.bf16.mxu0 %vm284_vm0, %v394_v7  ;;  %v286_v12 = vsel %vm284_vm0, %v255_v10, 0  ;;  %v252_v15 = vpack.c.bf16 %v249_v11, %v249_v11  ;;  %722 = vmatprep.subr.msk.bf16.mxu1 %vm284_vm0, %v255_v10  ;;  %vm256_vm3 = vsmask.f32 7424  ;;  %v672_v36 = vld [vmem:[#allocation7] ss:$0 sm:$0xff] }
  0x71   : > { %704 = vmatprep.mubr.msk.bf16.mxu0 %vm277_vm1, %v250_v4  ;;  %v258_v13 = vshrl.u32 %v250_v4, 16  ;;  %v260_v14 = vshll.u32 %v250_v4, 16  ;;  %v265_v16 = vshll.u32 %v251_v8, 16  ;;  %v269_v17 = vshrl.u32 %v251_v8, 16  ;;  %697 = vmatpush3.bf16.msra.mxu1 %v286_v12  ;;  %s665_s20 = sshll.u32 %s1216_s19, 4  ;;  %s686_s22 = sshll.u32 %s989_s15, 8 }
  0x72   : > { %v399_v18 = vrot.slane %v250_v4, 1  ;;  %v400_v19 = vrot.slane %v251_v8, 1  ;;  %705 = vmatmul.mubr.msk.bf16.vlgmr.msra.gmra.mrb[0].mxu0 %vm277_vm1, %v251_v8  ;;  %v273_v21 = vshll.u32 %v252_v15, 16  ;;  %v402_v29 = vrot.slane %v252_v15, 1  ;;  %s243_s24 = scalar_lea.vmem [#allocation8], %s665_s20  ;;  %s1247_s9 = scalar_lea.hbm %s1301_s3, %s686_s22 }
  0x73   : > { %v262_v20 = vrot.slane %v260_v14, 1  ;;  %709 = vmatpush3.bf16.msra.mxu0 %v411_v9  ;;  %v267_v22 = vrot.slane %v265_v16, 1  ;;  %vm529_vm4 = vcmask 257024   ;;  %s549_s30 = sshll.u32 %s243_s24, 4  ;;  %s535_s15 = scalar_lea.sflag [#allocation4], %s1216_s19  ;;  %s1249_s30 = int_to_ptr.vmem [resolvable:$true] %s549_s30 }
  0x74   : > { %v401_v23 = vsel %vm398_vm2, %v399_v18, %v400_v19  ;;  %v275_v25 = vrot.slane %v273_v21, 1  ;;  %v403_v30 = vsel %vm398_vm2, %v400_v19, %v402_v29  ;;  %s911_s28 = scalar_lea.vmem %s1249_s30, 256  ;;  %p1316_p11 = scmp.ne.s32.totalorder %s1312_s27, 0 }
  0x75   : > { %v263_v24 = vor.u32 %v262_v20, %v258_v13  ;;  %710 = vmatprep.mubr.msk.bf16.mxu0 %vm277_vm1, %v401_v23  ;;  %v271_v26 = vor.u32 %v269_v17, %v267_v22  ;;  %p912_p8 = scmp.ne.s32.totalorder %s1249_s30, %s911_s28  ;;  %s1006_s6 = smov [#allocation8]  }
  0x76   : > { %s915_s21 = sshll.u32 %s1006_s6, 4  ;;  %s916_s21 = int_to_ptr.vmem [resolvable:$false] %s915_s21 }
  0x77   : > { %v268_v27 = vsel %vm256_vm3, %v263_v24, %v267_v22  ;;  %v276_v28 = vsel %vm256_vm3, %v271_v26, %v275_v25  ;;  %p913_p1 = pnand %p912_p8, %p1316_p11  ;;  %s917_s8 = scalar_lea.vmem %s916_s21, 512 }
  0x78   : > { %698 = vmatprep.mubr.msk.bf16.mxu1 %vm277_vm1, %v268_v27  ;;  %p918_p3 = scmp.lt.s32.totalorder %s1249_s30, %s916_s21  ;;  %p919_p5 = scmp.lt.s32.totalorder %s917_s8, %s911_s28 }
  0x79   : > { %699 = vmatmul.mubr.msk.bf16.vlgmr.msra.gmra.mrb[0].mxu1 %vm277_vm1, %v276_v28  ;;  %p914_p10 = pneg %p913_p1 }
  0x7a   : > { %p920_p9 = por %p919_p5, %p918_p3 }
  0x7c   : > { %p921_p2 = pnand %p920_p9, %p914_p10 }
  0x7e   : > { %711 = vmatmul.mubr.msk.bf16.vlgmr.msra.gmra.mrb[0].mxu0 %vm277_vm1, %v403_v30 }
 0x14c   : > { %v700_v31 = vpop.f32.mrb[0].mxu1 }
 0x14d   : > { %v322_v32 = vpop.f32.mrb[1].mxu1 }
 0x14e   : > { %v701_v33 = vpop.f32.mrb[2].mxu1 }
 0x14f   : > { %v325_v34 = vpop.f32.mrb[3].mxu1 }
 0x151   : > { %v712_v35 = vpop.f32.mrb[0].mxu0 }
 0x152   : > { %v714_v37 = vadd.f32 %v712_v35, %v700_v31  ;;  %v447_v38 = vpop.f32.mrb[1].mxu0 }
 0x153   : > { %v715_v39 = vadd.f32 %v447_v38, %v322_v32  ;;  %v713_v40 = vpop.f32.mrb[2].mxu0 }
 0x154   : > { %v475_v41 = vadd.f32 %v714_v37, %v672_v36  ;;  %v716_v42 = vadd.f32 %v713_v40, %v701_v33  ;;  %v450_v43 = vpop.f32.mrb[3].mxu0 }
 0x155   : > { %v473_v44 = vadd.f32 %v715_v39, %v672_v36  ;;  %v717_v45 = vadd.f32 %v450_v43, %v325_v34 }
 0x156   : > { %v483_v46 = vmul.f32 0.044715, %v475_v41  ;;  %v476_v47 = vadd.f32 %v716_v42, %v672_v36  ;;  %v479_v6 = vmul.f32 0.5, %v475_v41 }
 0x157   : > { %v481_v48 = vmul.f32 0.044715, %v473_v44  ;;  %v474_v49 = vadd.f32 %v717_v45, %v672_v36  ;;  %v477_v9 = vmul.f32 0.5, %v473_v44 }
 0x158   : > { %v487_v50 = vmul.f32 %v483_v46, %v475_v41  ;;  %v484_v51 = vmul.f32 0.044715, %v476_v47  ;;  %v480_v13 = vmul.f32 0.5, %v476_v47 }
 0x159   : > { %v485_v52 = vmul.f32 %v481_v48, %v473_v44  ;;  %v482_v53 = vmul.f32 0.044715, %v474_v49  ;;  %v478_v16 = vmul.f32 0.5, %v474_v49 }
 0x15a   : > { %v491_v54 = vmul.f32 %v487_v50, %v475_v41  ;;  %v488_v55 = vmul.f32 %v484_v51, %v476_v47 }
 0x15b   : > { %v489_v56 = vmul.f32 %v485_v52, %v473_v44  ;;  %v486_v57 = vmul.f32 %v482_v53, %v474_v49 }
 0x15c   : > { %v495_v58 = vadd.f32 %v491_v54, %v475_v41  ;;  %v492_v59 = vmul.f32 %v488_v55, %v476_v47 }
 0x15d   : > { %v493_v60 = vadd.f32 %v489_v56, %v473_v44  ;;  %v490_v61 = vmul.f32 %v486_v57, %v474_v49 }
 0x15e   : > { %v499_v62 = vmul.f32 0.7978846, %v495_v58  ;;  %v496_v63 = vadd.f32 %v492_v59, %v476_v47 }
 0x15f   : > { %v497_v0 = vmul.f32 0.7978846, %v493_v60  ;;  %v494_v1 = vadd.f32 %v490_v61, %v474_v49 }
 0x160   : > { %817 = vtanh.f32 %v499_v62  ;;  %v500_v2 = vmul.f32 0.7978846, %v496_v63 }
 0x161   : > { %819 = vtanh.f32 %v497_v0  ;;  %v498_v3 = vmul.f32 0.7978846, %v494_v1 }
 0x162   : > { %821 = vtanh.f32 %v500_v2 }
 0x163   : > { %823 = vtanh.f32 %v498_v3 }
 0x16a   : > { %v818_v4 = vpop.eup %817 }
 0x16b   : > { %v820_v5 = vpop.eup %819  ;;  %v507_v7 = vadd.f32 1.0, %v818_v4 }
 0x16c   : > { %v822_v8 = vpop.eup %821  ;;  %v505_v10 = vadd.f32 1.0, %v820_v5 }
 0x16d   : > { %v824_v11 = vpop.eup %823  ;;  %v511_v12 = vmul.f32 %v507_v7, %v479_v6  ;;  %v508_v14 = vadd.f32 1.0, %v822_v8 }
 0x16e   : > { %v509_v15 = vmul.f32 %v505_v10, %v477_v9  ;;  %v506_v17 = vadd.f32 1.0, %v824_v11 }
 0x16f   : > { %v684_v18 = vpack.c.bf16 %v511_v12, %v511_v12  ;;  %v512_v19 = vmul.f32 %v508_v14, %v480_v13 }
 0x170   : > { %v682_v20 = vpack.c.bf16 %v509_v15, %v509_v15  ;;  %v510_v21 = vmul.f32 %v506_v17, %v478_v16 }
 0x171   : > { %v685_v22 = vpack.c.bf16 %v512_v19, %v512_v19  ;;  %532 = vst.msk [vmem:[%s243_s24 + $0x8] sm:$0xf] %vm529_vm4, %v684_v18 }
 0x172   : > { %v683_v23 = vpack.c.bf16 %v510_v21, %v510_v21  ;;  %530 = vst.msk [vmem:[%s243_s24] sm:$0xf] %vm529_vm4, %v682_v20 }
 0x173   : > { %533 = vst.msk [vmem:[%s243_s24 + $0xc] sm:$0xf] %vm529_vm4, %v685_v22 }
 0x174   : > { %531 = vst.msk [vmem:[%s243_s24 + $0x4] sm:$0xf] %vm529_vm4, %v683_v23 }
 0x175   : > { %924 = shalt.err (!%p921_p2)
}
 0x176   : > { %s925_s10 = scalar_lea.hbm %s1247_s9, 256  ;;  %s929_s29 = scalar_lea.hbm %s1301_s3, 512 }
 0x177   : > { %p926_p0 = scmp.ne.s32.totalorder %s1247_s9, %s925_s10  ;;  %p930_p6 = scmp.lt.u32.totalorder %s1247_s9, %s1301_s3 }
 0x178   : > { %p931_p7 = scmp.lt.u32.totalorder %s929_s29, %s925_s10  ;;  %p933_p8 = scmp.lt.u32.totalorder %s925_s10, %s1247_s9 }
 0x179   : > { %p927_p4 = pnand %p926_p0, %p1316_p11 }
 0x17a   : > { %p932_p12 = por %p931_p7, %p930_p6 }
 0x17b   : > { %p928_p13 = pneg %p927_p4 }
 0x17c   : > { %p934_p1 = por %p933_p8, %p932_p12 }
 0x17e   : > { %p935_p10 = pnand %p934_p1, %p928_p13 }
 0x180   : > { %938 = shalt.err (!%p935_p10)
}
 0x181   : > { %s1007_s22 = smov 64   ;;  %s1008_s24 = smov 4  }
 0x182   : > { %738 = dma.vmem_to_hbm [thread:$0]  (%p1316_p11), %s1249_s30, 256, %s1247_s9, %s535_s15, %s1007_s22, %s1007_s22, %s1008_s24  }
 0x183 PF: > { %s564_s7 = sand.u32 1, %s977_s12   ;;  %p1317_p3 = scmp.ne.s32.totalorder %s1309_s23, 0 }
 0x184   : > { %p1318_p5 = scmp.ge.s32.totalorder %s997_s17, 2  ;;  %s565_s26 = scalar_lea.sflag [#allocation4], %s564_s7 }
 0x186   : > { %p752_p9 = pnand %p1318_p5, %p1317_p3 }
 0x188   : > { %972 = dma.done.wait (!%p752_p9), %s565_s26, 256  }
 0x189   : > { %974 = vsyncadd (!%p752_p9), %s565_s26, 4294967040  ;;  %s20_s17 = sadd.s32 1, %s997_s17   ;;  %s1319_s12 = smov %s981_s13 }
 0x18a   : > { %p17_p2 = scmp.ge.s32.totalorder %s20_s17, 4   ;;  %s1320_s13 = smov %s985_s14 }
 0x18b   : > { %s1321_s14 = smov %s1175_s4  ;;  %s1322_s15 = smov %s993_s16 }
 0x18c   : > { %s1323_s16 = smov %s1325_s18  ;;  %19 = sbr.rel (!%p17_p2) target bundleno = 7 (0x7), region = 89 }
 0x193   :  { %570 = vsyncpa [#allocation3], 1 }
 0x194   :  { %572 = vsyncpa [#allocation3 + $0x1], 1 }
 0x195   :  { %573 = vsyncpa [#allocation6], 1 }
 0x196   :  { %574 = vsyncpa [#allocation4], 1 }
 0x197   :  { %576 = vsyncpa [#allocation4 + $0x1], 1 }

// kernel: audio_encoder_forward.15
= control target key start
LH: loop header
LB: loop body
LE: loop exit
PB: predicated region body
PF: predicated region fallthrough
CT: control target
= control target key end

     0   :  { %10 = vsyncpa [#allocation4], 0  ;;  %s438_s0 = inlined_call_operand.hbm [shape: bf16[32,32], index: 0, kind: input, shape index: {}]   ;;  %s439_s1 = inlined_call_operand.vmem [shape: f32[1,32], index: 1, kind: input, shape index: {}]   ;;  %s440_s2 = inlined_call_operand.vmem [shape: f32[1,32], index: 2, kind: input, shape index: {}]   ;;  %s441_s3 = inlined_call_operand.hbm [shape: bf16[32,96], index: 3, kind: input, shape index: {}]   ;;  %s442_s4 = inlined_call_operand.vmem [shape: f32[1,96], index: 4, kind: input, shape index: {}]   ;;  %s443_s5 = inlined_call_operand.vmem [shape: bf16[32,96], index: 5, kind: output, shape index: {}]  }
   0x1   :  { %11 = vsyncpa [#allocation6], 0  ;;  %s347_s18 = smov [#allocation3]   ;;  %s299_s22 = scalar_lea.hbm %s438_s0, 256 }
   0x2   :  { %s17_s19 = sshll.u32 %s347_s18, 4  ;;  %p300_p0 = scmp.ne.s32.totalorder %s438_s0, %s299_s22  ;;  %s18_s19 = int_to_ptr.vmem [resolvable:$true] %s17_s19 }
   0x3   :  { %p303_p1 = scmp.lt.u32.totalorder %s299_s22, %s438_s0 }
   0x5   :  { %p305_p2 = pnand %p303_p1, %p300_p0 }
   0x7   :  { %308 = shalt.err (!%p305_p2)
}
   0x8   :  { %s309_s27 = scalar_lea.vmem %s18_s19, 256  ;;  %p314_p4 = scmp.lt.s32.totalorder %s18_s19, %s18_s19 }
   0x9   :  { %p310_p3 = scmp.ne.s32.totalorder %s18_s19, %s309_s27  ;;  %p315_p5 = scmp.lt.s32.totalorder %s309_s27, %s309_s27 }
   0xb   :  { %p316_p6 = por %p315_p5, %p314_p4 }
   0xd   :  { %p317_p7 = pnand %p316_p6, %p310_p3 }
   0xf   :  { %320 = shalt.err (!%p317_p7)
}
  0x10   :  { %s348_s28 = smov 64   ;;  %s349_s29 = smov 4  }
  0x11   :  { %23 = dma.hbm_to_vmem [thread:$0]  %s438_s0, 256, %s18_s19, [#allocation4], %s348_s28, %s348_s28, %s349_s29  }
  0x12   :  { %s350_s7 = smov [#allocation5]   ;;  %s321_s11 = scalar_lea.hbm %s441_s3, 256 }
  0x13   :  { %s33_s8 = sshll.u32 %s350_s7, 4  ;;  %p322_p8 = scmp.ne.s32.totalorder %s441_s3, %s321_s11  ;;  %s34_s8 = int_to_ptr.vmem [resolvable:$true] %s33_s8 }
  0x14   :  { %p325_p9 = scmp.lt.u32.totalorder %s321_s11, %s441_s3 }
  0x16   :  { %p327_p10 = pnand %p325_p9, %p322_p8 }
  0x18   :  { %330 = shalt.err (!%p327_p10)
}
  0x19   :  { %s331_s16 = scalar_lea.vmem %s34_s8, 256  ;;  %p336_p12 = scmp.lt.s32.totalorder %s34_s8, %s34_s8 }
  0x1a   :  { %p332_p11 = scmp.ne.s32.totalorder %s34_s8, %s331_s16  ;;  %p337_p13 = scmp.lt.s32.totalorder %s331_s16, %s331_s16 }
  0x1c   :  { %p338_p0 = por %p337_p13, %p336_p12 }
  0x1e   :  { %p339_p1 = pnand %p338_p0, %p332_p11 }
  0x20   :  { %342 = shalt.err (!%p339_p1)
}
  0x21   :  { %39 = dma.hbm_to_vmem [thread:$0]  %s441_s3, 256, %s34_s8, [#allocation6], %s348_s28, %s348_s28, %s349_s29  }
  0x22   :  { %343 = dma.done.wait [#allocation4], 256  }
  0x23   :  { %344 = vsyncadd [#allocation4], 4294967040 }
  0x24   :  { %345 = dma.done.wait [#allocation6], 256  }
  0x25   :  { %346 = vsyncadd [#allocation6], 4294967040  ;;  %v265_v0 = vld [vmem:[#allocation3] sm:$0xff]   ;;  %vm61_vm0 = vcmask 261120   ;;  %v272_v1 = vld [vmem:[#allocation3 + $0x8] sm:$0xff]   ;;  %vm238_vm1 = vcmask 781312  }
  0x26   :  { %v266_v2 = vunpack.c.l.bf16 %v265_v0  ;;  %v270_v3 = vunpack.c.l.bf16 %v272_v1  ;;  %v267_v4 = vunpack.c.h.bf16 %v265_v0  ;;  %v271_v5 = vunpack.c.h.bf16 %v272_v1  ;;  %v289_v30 = vld [vmem:[#allocation5] sm:$0xff]   ;;  %v290_v31 = vld [vmem:[#allocation5 + $0x8] sm:$0xff]  }
  0x27   :  { %277 = vmatprep.subr.bf16.mxu0 %v289_v30  ;;  %v249_v46 = vld [vmem:[%s439_s1] ss:$0 sm:$0xff] }
  0x28   :  { %v62_v6 = vsel %vm61_vm0, %v266_v2, 0.0  ;;  %v68_v7 = vsel %vm61_vm0, %v270_v3, 0.0  ;;  %v65_v8 = vsel %vm61_vm0, %v267_v4, 0.0  ;;  %v71_v9 = vsel %vm61_vm0, %v271_v5, 0.0  ;;  %278 = vmatpush3.bf16.msra.mxu0 %v289_v30  ;;  %v250_v51 = vld [vmem:[%s440_s2] ss:$0 sm:$0xff] }
  0x29   :  { %63 = vadd.xlane.f32.xlu0 %v62_v6  ;;  %69 = vadd.xlane.f32.xlu1 %v68_v7 }
  0x2a   :  { %279 = vmatprep.subr.bf16.mxu0 %v290_v31 }
  0x2c   :  { %280 = vmatpush3.bf16.msra.mxu0 %v290_v31 }
  0x2d   :  { %66 = vadd.xlane.f32.xlu0 %v65_v8  ;;  %72 = vadd.xlane.f32.xlu1 %v71_v9 }
  0xb6   :  { %v64_v10 = vpop.xlane.xlu0 %63  ;;  %v70_v11 = vpop.xlane.xlu1 %69 }
  0xb7   :  { %v75_v12 = vmul.f32 0.03125, %v64_v10  ;;  %v77_v13 = vmul.f32 0.03125, %v70_v11 }
  0xb9   :  { %v79_v14 = vsub.f32 %v266_v2, %v75_v12  ;;  %v81_v15 = vsub.f32 %v270_v3, %v77_v13  ;;  %v251_v2 = vld [vmem:[%s442_s4] ss:$0 sm:$0xff] }
  0xba   :  { %v67_v16 = vpop.xlane.xlu0 %66  ;;  %v73_v17 = vpop.xlane.xlu1 %72 }
  0xbb   :  { %v76_v18 = vmul.f32 0.03125, %v67_v16  ;;  %v78_v19 = vmul.f32 0.03125, %v73_v17  ;;  %v83_v20 = vmul.f32 %v79_v14, %v79_v14  ;;  %v85_v21 = vmul.f32 %v81_v15, %v81_v15 }
  0xbd   :  { %v80_v22 = vsub.f32 %v267_v4, %v76_v18  ;;  %v82_v23 = vsub.f32 %v271_v5, %v78_v19  ;;  %v87_v24 = vsel %vm61_vm0, %v83_v20, 0.0  ;;  %v93_v25 = vsel %vm61_vm0, %v85_v21, 0.0 }
  0xbe   :  { %88 = vadd.xlane.f32.xlu0 %v87_v24 }
  0xbf   :  { %v84_v26 = vmul.f32 %v80_v22, %v80_v22  ;;  %v86_v27 = vmul.f32 %v82_v23, %v82_v23 }
  0xc1   :  { %v90_v28 = vsel %vm61_vm0, %v84_v26, 0.0  ;;  %v96_v29 = vsel %vm61_vm0, %v86_v27, 0.0 }
  0xc2   :  { %94 = vadd.xlane.f32.xlu0 %v93_v25  ;;  %91 = vadd.xlane.f32.xlu1 %v90_v28 }
  0xc6   :  { %97 = vadd.xlane.f32.xlu1 %v96_v29 }
 0x14b   :  { %v89_v32 = vpop.xlane.xlu0 %88 }
 0x14c   :  { %v99_v33 = vmul.f32 0.03125, %v89_v32 }
 0x14e   :  { %v103_v34 = vadd.f32 1e-05, %v99_v33 }
 0x14f   :  { %v92_v35 = vpop.xlane.xlu1 %91  ;;  %v95_v36 = vpop.xlane.xlu0 %94 }
 0x150   :  { %291 = vrsqrt.f32 %v103_v34  ;;  %v100_v37 = vmul.f32 0.03125, %v92_v35  ;;  %v101_v38 = vmul.f32 0.03125, %v95_v36 }
 0x152   :  { %v104_v39 = vadd.f32 1e-05, %v100_v37  ;;  %v105_v40 = vadd.f32 1e-05, %v101_v38 }
 0x153   :  { %v98_v41 = vpop.xlane.xlu1 %97 }
 0x154   :  { %293 = vrsqrt.f32 %v104_v39  ;;  %v102_v42 = vmul.f32 0.03125, %v98_v41 }
 0x155   :  { %295 = vrsqrt.f32 %v105_v40 }
 0x156   :  { %v106_v43 = vadd.f32 1e-05, %v102_v42 }
 0x158   :  { %297 = vrsqrt.f32 %v106_v43 }
 0x15a   :  { %v292_v44 = vpop.eup %291 }
 0x15b   :  { %v111_v45 = vmul.f32 %v292_v44, %v79_v14 }
 0x15d   :  { %v122_v49 = vmul.f32 %v249_v46, %v111_v45 }
 0x15e   :  { %v294_v47 = vpop.eup %293 }
 0x15f   :  { %v296_v48 = vpop.eup %295  ;;  %v112_v50 = vmul.f32 %v294_v47, %v80_v22  ;;  %v133_v55 = vadd.f32 %v250_v51, %v122_v49 }
 0x160   :  { %v113_v52 = vmul.f32 %v296_v48, %v81_v15 }
 0x161   :  { %v123_v53 = vmul.f32 %v249_v46, %v112_v50 }
 0x162   :  { %v298_v54 = vpop.eup %297  ;;  %v124_v57 = vmul.f32 %v249_v46, %v113_v52 }
 0x163   :  { %v134_v56 = vadd.f32 %v250_v51, %v123_v53  ;;  %v114_v58 = vmul.f32 %v298_v54, %v82_v23 }
 0x164   :  { %v135_v61 = vadd.f32 %v250_v51, %v124_v57 }
 0x165   :  { %v137_v59 = vpack.c.bf16 %v134_v56, %v133_v55  ;;  %v125_v60 = vmul.f32 %v249_v46, %v114_v58 }
 0x167   :  { %139 = vst.msk [vmem:[#allocation2] sm:$0xff] %vm61_vm0, %v137_v59  ;;  %v136_v62 = vadd.f32 %v250_v51, %v125_v60 }
 0x169   :  { %v138_v63 = vpack.c.bf16 %v136_v62, %v135_v61 }
 0x16b   :  { %140 = vst.msk [vmem:[#allocation2 + $0x8] sm:$0xff] %vm61_vm0, %v138_v63 }
 0x16e   :  { %v141_v0 = vld [vmem:[#allocation2] sm:$0xff] }
 0x16f   :  { %281 = vmatprep.mubr.msk.bf16.mxu0 %vm61_vm0, %v141_v0 }
 0x172   :  { %v142_v1 = vld [vmem:[#allocation2 + $0x8] sm:$0xff] }
 0x173   :  { %282 = vmatmul.mubr.msk.bf16.vlgmr.msra.gmra.mrb[0].mxu0 %vm61_vm0, %v142_v1 }
 0x246   :  { %v283_v3 = vpop.f32.mrb[0].mxu0 }
 0x247   :  { %v216_v4 = vadd.f32 %v283_v3, %v251_v2  ;;  %v207_v5 = vpop.f32.mrb[1].mxu0 }
 0x248   :  { %v208_v6 = vadd.f32 %v251_v2, %v207_v5  ;;  %v284_v7 = vpop.f32.mrb[2].mxu0 }
 0x249   :  { %v262_v8 = vpack.c.bf16 %v216_v4, %v216_v4  ;;  %v219_v9 = vadd.f32 %v284_v7, %v251_v2  ;;  %v210_v10 = vpop.f32.mrb[3].mxu0 }
 0x24a   :  { %v260_v11 = vpack.c.bf16 %v208_v6, %v208_v6  ;;  %v211_v12 = vadd.f32 %v251_v2, %v210_v10 }
 0x24b   :  { %241 = vst.msk [vmem:[%s443_s5 + $0x8] sm:$0xf] %vm238_vm1, %v262_v8  ;;  %v263_v13 = vpack.c.bf16 %v219_v9, %v219_v9 }
 0x24c   :  { %239 = vst.msk [vmem:[%s443_s5] sm:$0xf] %vm238_vm1, %v260_v11  ;;  %v261_v14 = vpack.c.bf16 %v211_v12, %v211_v12 }
 0x24d   :  { %242 = vst.msk [vmem:[%s443_s5 + $0xc] sm:$0xf] %vm238_vm1, %v263_v13 }
 0x24e   :  { %240 = vst.msk [vmem:[%s443_s5 + $0x4] sm:$0xf] %vm238_vm1, %v261_v14 }
 0x24f   :  { %247 = vsyncpa [#allocation4], 1 }
 0x250   :  { %248 = vsyncpa [#allocation6], 1 }

// kernel: audio_encoder_forward.16
= control target key start
LH: loop header
LB: loop body
LE: loop exit
PB: predicated region body
PF: predicated region fallthrough
CT: control target
= control target key end

     0   :  { %s1819_s0 = inlined_call_operand.hbm [shape: bf16[2,16,32], index: 0, kind: input, shape index: {}]   ;;  %s1820_s1 = inlined_call_operand.hbm [shape: bf16[2,16,32], index: 1, kind: input, shape index: {}]   ;;  %s1821_s2 = inlined_call_operand.hbm [shape: bf16[2,16,32], index: 2, kind: input, shape index: {}]   ;;  %s1822_s3 = inlined_call_operand.hbm [shape: bf16[2,16,32], index: 3, kind: output, shape index: {}]  }
   0x1   :  { %1832 = sst [smem:[#allocation15_spill]] %s1820_s1 }
   0x2   :  { %8 = vsyncpa [#allocation3], 0 }
   0x3   :  { %10 = vsyncpa [#allocation3 + $0x1], 0 }
   0x4   :  { %11 = vsyncpa [#allocation6], 0 }
   0x5   :  { %13 = vsyncpa [#allocation6 + $0x1], 0 }
   0x6   :  { %14 = vsyncpa [#allocation4], 0 }
   0x7   :  { %16 = vsyncpa [#allocation4 + $0x1], 0  ;;  %s1458_s12 = smov 0   ;;  %s1460_s13 = smov 0  }
   0x8   :  { %s1462_s14 = smov 0   ;;  %s1464_s15 = smov 0  }
   0x9   :  { %s1466_s16 = smov 0   ;;  %s1468_s17 = smov 0  }
   0xa LB: > { %1833 = sst [smem:[#allocation12_spill]] %s1416_s16  ;;  %s1489_s18 = sadd.s32 4294967295, %s1420_s17   ;;  %s1420_s17 = sphi %s1468_s17, %s22_s17   ;;  %s1416_s16 = sphi %s1466_s16, %s1856_s16   ;;  %s1412_s15 = sphi %s1464_s15, %s1855_s15   ;;  %s1408_s14 = sphi %s1462_s14, %s1859_s14   ;;  %s1404_s13 = sphi %s1460_s13, %s1858_s13   ;;  %s1400_s12 = sphi %s1458_s12, %s1857_s12  }
   0xb   : > { %s1005_s19 = sadd.s32 4294967294, %s1420_s17   ;;  %s41_s20 = sadd.s32 1, %s1416_s16 }
   0xc   : > { %s52_s21 = sadd.s32 1, %s1408_s14  ;;  %p43_p0 = scmp.ge.s32.totalorder %s41_s20, 2 }
   0xd   : > { %p59_p1 = scmp.ne.s32.totalorder %s1408_s14, %s1404_s13  ;;  %p60_p2 = scmp.eq.s32.totalorder %s1420_s17, 0 }
   0xe   : > { %p65_p3 = scmp.ne.s32.totalorder %s1404_s13, %s1400_s12  ;;  %s1861_s20 = smov (%p43_p0, %s41_s20), 0 }
   0xf   : > { %1834 = sst [smem:[#allocation13_spill]] %s1861_s20  ;;  %p1501_p4 = por %p60_p2, %p59_p1 }
  0x10   : > { %p66_p5 = scmp.eq.s32.totalorder %s1489_s18, 0  ;;  %s45_s23 = ssub.s32 %s1416_s16, %s1861_s20 }
  0x11   : > { %p149_p6 = scmp.eq.s32.totalorder %s1489_s18, 1  ;;  %p50_p7 = scmp.eq.s32.totalorder %s45_s23, 0 }
  0x12   : > { %p1509_p8 = por %p66_p5, %p65_p3  ;;  %p155_p10 = scmp.eq.s32.totalorder %s1005_s19, 1 }
  0x13   : > { %p1513_p9 = por %p149_p6, %p59_p1  ;;  %p1132_p13 = scmp.lt.s32.totalorder %s1420_s17, 2 }
  0x14   : > { %s1836_s24 = scalar_select %p1509_p8, 1, 0 }
  0x15   : > { %s1837_s25 = scalar_select %p1513_p9, 1, 0 }
  0x16   : > { %s1518_s26 = scalar_select %p50_p7, %s1408_s14, %s52_s21  }
  0x17   : > { %p1520_p11 = por %p155_p10, %p65_p3  ;;  %s1825_s28 = sand.u32 1, %s1408_s14  }
  0x18   : > { %1838 = sst [smem:[#allocation14_spill]] %s1518_s26  ;;  %s1529_s29 = sshll.u32 %s1825_s28, 3 }
  0x19   : > { %s1839_s27 = scalar_select %p1520_p11, 1, 0 }
  0x1a   : > { %s1532_s30 = sshll.u32 %s1416_s16, 7  ;;  %p1536_p0 = pnand %p1132_p13, %p1501_p4 }
  0x1b   : > { %s199_s5 = sand.u32 1, %s1420_s17   ;;  %s1841_s1 = sld [smem:[#allocation15_spill]] }
  0x1c   : > { %s203_s9 = scalar_lea.vmem [#allocation5], %s1529_s29  ;;  %s1552_s11 = scalar_lea.sflag [#allocation6], %s199_s5 }
  0x1d   : > { %s211_s10 = sshll.u32 %s203_s9, 4  ;;  %p1558_p4 = pneg %p1536_p0  ;;  %s1549_s10 = int_to_ptr.vmem [resolvable:$true] %s211_s10 }
  0x21   : > { %s1545_s8 = scalar_lea.hbm %s1841_s1, %s1532_s30  ;;  %s1249_s6 = scalar_lea.hbm %s1841_s1, 256 }
  0x22   : > { %s1244_s19 = scalar_lea.hbm %s1545_s8, 128  ;;  %p1250_p7 = scmp.lt.u32.totalorder %s1545_s8, %s1841_s1 }
  0x23   : > { %p1245_p3 = scmp.ne.s32.totalorder %s1545_s8, %s1244_s19  ;;  %p1251_p10 = scmp.lt.u32.totalorder %s1249_s6, %s1244_s19 }
  0x24   : > { %p1253_p12 = scmp.lt.u32.totalorder %s1244_s19, %s1545_s8 }
  0x25   : > { %p1247_p5 = pnand %p1558_p4, %p1245_p3  ;;  %p1252_p13 = por %p1251_p10, %p1250_p7 }
  0x27   : > { %p1248_p6 = pneg %p1247_p5  ;;  %p1254_p1 = por %p1253_p12, %p1252_p13 }
  0x29   : > { %p1255_p2 = pnand %p1254_p1, %p1248_p6 }
  0x2b   : > { %1258 = shalt.err (!%p1255_p2)
}
  0x2c   : > { %s1259_s5 = scalar_lea.vmem %s1549_s10, 128  ;;  %s1422_s22 = smov [#allocation5]  }
  0x2d   : > { %p1260_p3 = scmp.ne.s32.totalorder %s1549_s10, %s1259_s5  ;;  %s1264_s23 = sshll.u32 %s1422_s22, 4  ;;  %s1265_s23 = int_to_ptr.vmem [resolvable:$false] %s1264_s23 }
  0x2e   : > { %s1266_s7 = scalar_lea.vmem %s1265_s23, 256  ;;  %p1267_p9 = scmp.lt.s32.totalorder %s1549_s10, %s1265_s23 }
  0x2f   : > { %p1262_p5 = pnand %p1260_p3, %p1558_p4  ;;  %p1268_p8 = scmp.lt.s32.totalorder %s1266_s7, %s1259_s5 }
  0x31   : > { %p1263_p11 = pneg %p1262_p5  ;;  %p1269_p7 = por %p1268_p8, %p1267_p9 }
  0x33   : > { %p1270_p10 = pnand %p1269_p7, %p1263_p11 }
  0x35   : > { %1273 = shalt.err (!%p1270_p10)
}
  0x36   : > { %s1826_s19 = smov 64   ;;  %s1828_s6 = smov 4  }
  0x37   : > { %1124 = dma.hbm_to_vmem [thread:$0]  (!%p1536_p0), %s1545_s8, 128, %s1549_s10, %s1552_s11, %s1826_s19, %s1826_s19, %s1828_s6  }
  0x38   : > { %p1843_p8 = scmp.lt.s32.totalorder %s1420_s17, 3  ;;  %p1844_p9 = scmp.ge.s32.totalorder %s1420_s17, 1 }
  0x39   : > { %s1597_s23 = scalar_lea.hbm %s1819_s0, %s1532_s30  ;;  %s179_s7 = scalar_lea.vmem [#allocation2], %s1529_s29 }
  0x3a   : > { %p1589_p11 = pnand %p1844_p9, %p1843_p8  ;;  %s189_s28 = sshll.u32 %s179_s7, 4  ;;  %s1600_s28 = int_to_ptr.vmem [resolvable:$true] %s189_s28 }
  0x3b   : > { %s1606_s19 = scalar_lea.hbm %s1821_s2, %s1532_s30  ;;  %s1846_s6 = sand.u32 1, %s1408_s14  }
  0x3c   : > { %s1845_s9 = scalar_select %p1589_p11, 1, 0 }
  0x3d   : > { %s1610_s1 = scalar_lea.sflag [#allocation3], %s1846_s6  ;;  %s1274_s20 = scalar_lea.hbm %s1597_s23, 128 }
  0x3e   : > { %p1275_p12 = scmp.ne.s32.totalorder %s1597_s23, %s1274_s20  ;;  %s1279_s16 = scalar_lea.hbm %s1819_s0, 256 }
  0x3f   : > { %p1280_p6 = scmp.lt.u32.totalorder %s1597_s23, %s1819_s0  ;;  %p1281_p13 = scmp.lt.u32.totalorder %s1279_s16, %s1274_s20 }
  0x40   : > { %p1277_p1 = pnand %p1275_p12, %p1558_p4  ;;  %p1283_p5 = scmp.lt.u32.totalorder %s1274_s20, %s1597_s23 }
  0x41   : > { %p1282_p3 = por %p1281_p13, %p1280_p6 }
  0x42   : > { %p1278_p2 = pneg %p1277_p1 }
  0x43   : > { %p1284_p7 = por %p1283_p5, %p1282_p3 }
  0x45   : > { %p1285_p10 = pnand %p1284_p7, %p1278_p2 }
  0x47   : > { %1288 = shalt.err (!%p1285_p10)
}
  0x48   : > { %s1289_s30 = scalar_lea.vmem %s1600_s28, 128  ;;  %s1425_s6 = smov [#allocation2]  }
  0x49   : > { %p1290_p8 = scmp.ne.s32.totalorder %s1600_s28, %s1289_s30  ;;  %s1294_s8 = sshll.u32 %s1425_s6, 4  ;;  %s1295_s8 = int_to_ptr.vmem [resolvable:$false] %s1294_s8 }
  0x4a   : > { %s1296_s26 = scalar_lea.vmem %s1295_s8, 256  ;;  %p1297_p1 = scmp.lt.s32.totalorder %s1600_s28, %s1295_s8 }
  0x4b   : > { %p1292_p9 = pnand %p1290_p8, %p1558_p4  ;;  %p1298_p11 = scmp.lt.s32.totalorder %s1296_s26, %s1289_s30 }
  0x4d   : > { %p1293_p12 = pneg %p1292_p9  ;;  %p1299_p6 = por %p1298_p11, %p1297_p1 }
  0x4f   : > { %p1300_p13 = pnand %p1299_p6, %p1293_p12 }
  0x51   : > { %1303 = shalt.err (!%p1300_p13)
}
  0x52   : > { %s1847_s16 = smov 4   ;;  %s1848_s20 = smov 64  }
  0x53   : > { %1121 = dma.hbm_to_vmem [thread:$0]  (!%p1536_p0), %s1597_s23, 128, %s1600_s28, %s1610_s1, %s1848_s20, %s1848_s20, %s1847_s16  }
  0x54   : > { %s225_s10 = scalar_lea.vmem [#allocation7], %s1529_s29  ;;  %s1304_s22 = scalar_lea.hbm %s1606_s19, 128 }
  0x55   : > { %s233_s5 = sshll.u32 %s225_s10, 4  ;;  %p1305_p11 = scmp.ne.s32.totalorder %s1606_s19, %s1304_s22  ;;  %s1638_s5 = int_to_ptr.vmem [resolvable:$true] %s233_s5 }
  0x56   : > { %s1309_s6 = scalar_lea.hbm %s1821_s2, 256  ;;  %p1310_p5 = scmp.lt.u32.totalorder %s1606_s19, %s1821_s2 }
  0x57   : > { %p1307_p2 = pnand %p1305_p11, %p1558_p4  ;;  %p1311_p7 = scmp.lt.u32.totalorder %s1309_s6, %s1304_s22 }
  0x58   : > { %p1313_p8 = scmp.lt.u32.totalorder %s1304_s22, %s1606_s19 }
  0x59   : > { %p1308_p3 = pneg %p1307_p2  ;;  %p1312_p10 = por %p1311_p7, %p1310_p5 }
  0x5b   : > { %p1314_p9 = por %p1313_p8, %p1312_p10 }
  0x5d   : > { %p1315_p12 = pnand %p1314_p9, %p1308_p3 }
  0x5f   : > { %1318 = shalt.err (!%p1315_p12)
}
  0x60   : > { %s1319_s1 = scalar_lea.vmem %s1638_s5, 128  ;;  %s1426_s28 = smov [#allocation7]  }
  0x61   : > { %p1320_p1 = scmp.ne.s32.totalorder %s1638_s5, %s1319_s1  ;;  %s1324_s29 = sshll.u32 %s1426_s28, 4  ;;  %s1325_s29 = int_to_ptr.vmem [resolvable:$false] %s1324_s29 }
  0x62   : > { %s1326_s23 = scalar_lea.vmem %s1325_s29, 256  ;;  %p1327_p11 = scmp.lt.s32.totalorder %s1638_s5, %s1325_s29 }
  0x63   : > { %p1322_p6 = pnand %p1320_p1, %p1558_p4  ;;  %p1328_p2 = scmp.lt.s32.totalorder %s1326_s23, %s1319_s1 }
  0x65   : > { %p1323_p13 = pneg %p1322_p6  ;;  %p1329_p5 = por %p1328_p2, %p1327_p11 }
  0x67   : > { %p1330_p7 = pnand %p1329_p5, %p1323_p13 }
  0x69   : > { %1333 = shalt.err (!%p1330_p7)
}
  0x6a   : > { %1127 = dma.hbm_to_vmem [thread:$0]  (!%p1536_p0), %s1606_s19, 128, %s1638_s5, %s1552_s11, %s1848_s20, %s1848_s20, %s1847_s16  }
  0x6b   : > { %p1849_p4 = scmp.ne.s32.totalorder %s1845_s9, 0 }
  0x6c   : > { %s1668_s21 = sand.u32 (!%p1849_p4), 1, %s1404_s13   ;;  %p1850_p3 = scmp.ne.s32.totalorder (!%p1849_p4), %s1836_s24, 0 }
  0x6d   : > { %245 = sbr.rel (%p1849_p4) target bundleno = 1614 (0x64e), region = 32  ;;  %s1671_s10 = sshll.u32 (!%p1849_p4), %s1668_s21, 3 }
  0x6e   : > { %s248_s4 = scalar_lea.sflag (!%p1849_p4), [#allocation3], %s1668_s21  ;;  %s251_s22 = scalar_lea.vmem (!%p1849_p4), [#allocation2], %s1671_s10 }
  0x74   : > { %1387 = dma.done.wait (%p1850_p3), %s248_s4, 128  }
  0x75   : > { %1389 = vsyncadd (%p1850_p3), %s248_s4, 4294967168  ;;  %s256_s11 = sand.u32 1, %s1489_s18   ;;  %s260_s9 = scalar_lea.vmem [#allocation5], %s1671_s10 }
  0x76   : > { %s257_s19 = scalar_lea.sflag [#allocation6], %s256_s11 }
  0x77   : > { %1391 = dma.done.wait (%p1850_p3), %s257_s19, 256  }
  0x78   : > { %1393 = vsyncadd (%p1850_p3), %s257_s19, 4294967040  ;;  %v1427_v0 = vmov 0.0   ;;  %vm1428_vm0 = vmmov 0   ;;  %vm321_vm1 = vcmask 64512   ;;  %v1209_v1 = vld [vmem:[%s260_s9] sm:$0xff]   ;;  %v1210_v3 = vld [vmem:[%s251_s22] sm:$0xff]  }
  0x79   : > { %1062 = vmatprep.subr.bf16.mxu0 %v1427_v0  ;;  %1064 = vmatprep.mubr.msk.bf16.mxu0 %vm1428_vm0, %v1427_v0  ;;  %v326_v2 = vsel %vm321_vm1, %v1209_v1, 0  ;;  %vm369_vm2 = vcmask 130048   ;;  %s1429_s18 = smov 120   ;;  %s1430_s24 = smov 104   ;;  %vm834_vm3 = vcmask 195584   ;;  %vm845_vm4 = vcmask 257024  }
  0x7a   : > { %1068 = vmatprep.subr.bf16.mxu1 %v1427_v0  ;;  %1070 = vmatprep.mubr.msk.bf16.mxu1 %vm1428_vm0, %v1427_v0  ;;  %s269_s16 = scalar_lea.vmem [#allocation7], %s1671_s10  ;;  %s1431_s20 = smov 112  }
  0x7b   : > { %1063 = vmatpush3.bf16.xpose.msra.mxu0 %v326_v2  ;;  %v1703_v20 = vld [vmem:[%s269_s16] sm:$0xff]   ;;  %s1432_s5 = smov 8   ;;  %s1433_s7 = smov 16  }
  0x7c   : > { %1080 = vmatprep.subr.bf16.mxu0 %v1427_v0  ;;  %1069 = vmatpush3.bf16.msra.mxu1 %v1703_v20  ;;  %s1434_s30 = smov 24   ;;  %s1045_s6 = sshll.u32 %s1412_s15, 7 }
  0x7d   : > { %1074 = vmatprep.subr.bf16.mxu1 %v1427_v0  ;;  %s301_s8 = scalar_lea.vmem [#allocation8], %s1671_s10  ;;  %s1768_s28 = scalar_lea.hbm %s1822_s3, %s1045_s6 }
  0x7e   : > { %s865_s26 = sshll.u32 %s301_s8, 4  ;;  %s849_s29 = scalar_lea.sflag [#allocation4], %s1668_s21  ;;  %s1770_s26 = int_to_ptr.vmem [resolvable:$true] %s865_s26 }
  0x7f   : > { %s1334_s23 = scalar_lea.vmem %s1770_s26, 128  ;;  %p1851_p10 = scmp.ne.s32.totalorder %s1837_s25, 0 }
  0x80   : > { %p1335_p0 = scmp.ne.s32.totalorder %s1770_s26, %s1334_s23  ;;  %s1435_s10 = smov [#allocation8]  }
  0x81   : > { %s1338_s4 = sshll.u32 %s1435_s10, 4  ;;  %s1339_s4 = int_to_ptr.vmem [resolvable:$false] %s1338_s4 }
  0x82   : > { %1065 = vmatmul.mubr.msk.bf16.vlgmr.msra.gmra.mrb[0].mxu0 %vm321_vm1, %v1210_v3  ;;  %p1336_p8 = pnand %p1335_p0, %p1851_p10  ;;  %s1340_s22 = scalar_lea.vmem %s1339_s4, 256 }
  0x83   : > { %1082 = vmatprep.mubr.msk.bf16.mxu0 %vm1428_vm0, %v1427_v0  ;;  %p1341_p12 = scmp.lt.s32.totalorder %s1770_s26, %s1339_s4  ;;  %p1342_p1 = scmp.lt.s32.totalorder %s1340_s22, %s1334_s23 }
  0x84   : > { %p1337_p9 = pneg %p1336_p8 }
  0x85   : > { %p1343_p6 = por %p1342_p1, %p1341_p12 }
  0x87   : > { %p1344_p13 = pnand %p1343_p6, %p1337_p9 }
 0x155   : > { %v362_v4 = vpop.f32.mrb[0].mxu0 }
 0x156   : > { %v1066_v5 = vpop.f32.mrb[1].mxu0  ;;  %v370_v6 = vsel %vm369_vm2, %v362_v4, -inf }
 0x157   : > { %371 = vmax.xlane.f32.xlu0 %v370_v6  ;;  %v365_v7 = vpop.f32.mrb[2].mxu0 }
 0x158   : > { %v1067_v8 = vpop.f32.mrb[3].mxu0  ;;  %v373_v9 = vsel %vm369_vm2, %v365_v7, -inf }
 0x15b   : > { %374 = vmax.xlane.f32.xlu0 %v373_v9 }
 0x171   : > { %445 = vrot.lane.b32.xlu0 %v1209_v1, %s1429_s18 }
 0x175   : > { %687 = vrot.lane.b32.xlu0 %v1209_v1, %s1430_s24 }
 0x1e4   : > { %v372_v10 = vpop.xlane.xlu0 %371 }
 0x1e5   : > { %v376_v11 = vsub.f32 %v362_v4, %v372_v10 }
 0x1e7   : > { %v378_v12 = vmul.f32 1.442695, %v376_v11 }
 0x1e8   : > { %v375_v13 = vpop.xlane.xlu0 %374 }
 0x1e9   : > { %1212 = vpow2.f32 %v378_v12  ;;  %v377_v14 = vsub.f32 %v365_v7, %v375_v13 }
 0x1eb   : > { %v380_v15 = vmul.f32 1.442695, %v377_v14 }
 0x1ec   : > { %v446_v25 = vpop.permute.xlu0 %445 }
 0x1ed   : > { %1214 = vpow2.f32 %v380_v15  ;;  %v451_v29 = vsel %vm321_vm1, %v446_v25, 0 }
 0x1f0   : > { %v688_v33 = vpop.permute.xlu0 %687 }
 0x1f1   : > { %v693_v35 = vsel %vm321_vm1, %v688_v33, 0 }
 0x1f3   : > { %v1213_v16 = vpop.eup %1212 }
 0x1f4   : > { %v382_v17 = vsel %vm369_vm2, %v1213_v16, 0.0 }
 0x1f5   : > { %383 = vadd.xlane.f32.xlu1 %v382_v17 }
 0x1f7   : > { %v1215_v18 = vpop.eup %1214 }
 0x1f8   : > { %v385_v19 = vsel %vm369_vm2, %v1215_v18, 0.0 }
 0x1f9   : > { %386 = vadd.xlane.f32.xlu1 %v385_v19 }
 0x20a   : > { %443 = vrot.lane.b32.xlu1 %v1210_v3, %s1429_s18 }
 0x20e   : > { %566 = vrot.lane.b32.xlu1 %v1209_v1, %s1431_s20 }
 0x212   : > { %564 = vrot.lane.b32.xlu1 %v1210_v3, %s1431_s20 }
 0x216   : > { %685 = vrot.lane.b32.xlu1 %v1210_v3, %s1430_s24 }
 0x282   : > { %v384_v21 = vpop.xlane.xlu1 %383 }
 0x283   : > { %1216 = vrcp.f32 %v384_v21 }
 0x286   : > { %v387_v22 = vpop.xlane.xlu1 %386 }
 0x287   : > { %1218 = vrcp.f32 %v387_v22 }
 0x28a   : > { %v444_v28 = vpop.permute.xlu1 %443 }
 0x28d   : > { %v1217_v23 = vpop.eup %1216 }
 0x28e   : > { %v390_v26 = vmul.f32 %v1217_v23, %v1213_v16  ;;  %v567_v31 = vpop.permute.xlu1 %566 }
 0x28f   : > { %v572_v32 = vsel %vm321_vm1, %v567_v31, 0 }
 0x291   : > { %v1219_v24 = vpop.eup %1218 }
 0x292   : > { %v391_v27 = vmul.f32 %v1219_v24, %v1215_v18  ;;  %v565_v34 = vpop.permute.xlu1 %564 }
 0x294   : > { %v392_v30 = vpack.c.bf16 %v391_v27, %v390_v26 }
 0x296   : > { %1071 = vmatmul.mubr.msk.bf16.vlgmr.msra.gmra.mrb[0].mxu1 %vm369_vm2, %v392_v30  ;;  %v686_v36 = vpop.permute.xlu1 %685 }
 0x297   : > { %1075 = vmatpush3.bf16.xpose.msra.mxu1 %v451_v29  ;;  %1076 = vmatprep.mubr.msk.bf16.mxu1 %vm1428_vm0, %v1427_v0 }
 0x298   : > { %1086 = vmatprep.subr.bf16.mxu1 %v1427_v0 }
 0x29e   : > { %1077 = vmatmul.mubr.msk.bf16.vlgmr.msra.gmra.mrb[4].mxu1 %vm321_vm1, %v444_v28 }
 0x29f   : > { %1087 = vmatpush3.bf16.xpose.msra.mxu1 %v572_v32  ;;  %1088 = vmatprep.mubr.msk.bf16.mxu1 %vm1428_vm0, %v1427_v0 }
 0x2a0   : > { %1098 = vmatprep.subr.bf16.mxu1 %v1427_v0 }
 0x2a6   : > { %1089 = vmatmul.mubr.msk.bf16.vlgmr.msra.gmra.mrb[8].mxu1 %vm321_vm1, %v565_v34 }
 0x2a7   : > { %1099 = vmatpush3.bf16.xpose.msra.mxu1 %v693_v35  ;;  %1100 = vmatprep.mubr.msk.bf16.mxu1 %vm1428_vm0, %v1427_v0 }
 0x2ae   : > { %1101 = vmatmul.mubr.msk.bf16.vlgmr.msra.gmra.mrb[12].mxu1 %vm321_vm1, %v686_v36 }
 0x369   : > { %v1726_v37 = vpop.f32.mrb[0].mxu1 }
 0x36a   : > { %v1072_v38 = vpop.f32.mrb[1].mxu1 }
 0x36b   : > { %v1728_v39 = vpop.f32.mrb[2].mxu1 }
 0x36c   : > { %v1073_v40 = vpop.f32.mrb[3].mxu1 }
 0x371   : > { %v487_v41 = vpop.f32.mrb[4].mxu1 }
 0x372   : > { %v1078_v42 = vpop.f32.mrb[5].mxu1  ;;  %v494_v43 = vsel %vm369_vm2, %v487_v41, -inf }
 0x373   : > { %495 = vmax.xlane.f32.xlu0 %v494_v43  ;;  %v490_v44 = vpop.f32.mrb[6].mxu1 }
 0x374   : > { %v1079_v45 = vpop.f32.mrb[7].mxu1  ;;  %v497_v46 = vsel %vm369_vm2, %v490_v44, -inf }
 0x375   : > { %498 = vmax.xlane.f32.xlu1 %v497_v46 }
 0x379   : > { %v608_v47 = vpop.f32.mrb[8].mxu1 }
 0x37a   : > { %v1090_v48 = vpop.f32.mrb[9].mxu1  ;;  %v615_v49 = vsel %vm369_vm2, %v608_v47, -inf }
 0x37b   : > { %616 = vmax.xlane.f32.xlu0 %v615_v49  ;;  %v611_v50 = vpop.f32.mrb[10].mxu1 }
 0x37c   : > { %v1091_v51 = vpop.f32.mrb[11].mxu1  ;;  %v618_v52 = vsel %vm369_vm2, %v611_v50, -inf }
 0x37f   : > { %619 = vmax.xlane.f32.xlu0 %v618_v52 }
 0x381   : > { %v729_v53 = vpop.f32.mrb[12].mxu1 }
 0x382   : > { %v1102_v54 = vpop.f32.mrb[13].mxu1  ;;  %v736_v55 = vsel %vm369_vm2, %v729_v53, -inf }
 0x383   : > { %737 = vmax.xlane.f32.xlu0 %v736_v55  ;;  %v732_v56 = vpop.f32.mrb[14].mxu1 }
 0x384   : > { %v739_v57 = vsel %vm369_vm2, %v732_v56, -inf  ;;  %v1103_v58 = vpop.f32.mrb[15].mxu1 }
 0x385   : > { %740 = vmax.xlane.f32.xlu1 %v739_v57 }
 0x400   : > { %v496_v59 = vpop.xlane.xlu0 %495 }
 0x401   : > { %v500_v60 = vsub.f32 %v487_v41, %v496_v59 }
 0x402   : > { %v499_v61 = vpop.xlane.xlu1 %498 }
 0x403   : > { %v502_v62 = vmul.f32 1.442695, %v500_v60  ;;  %v501_v63 = vsub.f32 %v490_v44, %v499_v61 }
 0x405   : > { %1220 = vpow2.f32 %v502_v62  ;;  %v504_v1 = vmul.f32 1.442695, %v501_v63 }
 0x407   : > { %1222 = vpow2.f32 %v504_v1 }
 0x408   : > { %v617_v2 = vpop.xlane.xlu0 %616 }
 0x409   : > { %v621_v3 = vsub.f32 %v608_v47, %v617_v2 }
 0x40b   : > { %v623_v4 = vmul.f32 1.442695, %v621_v3 }
 0x40c   : > { %v620_v5 = vpop.xlane.xlu0 %619 }
 0x40d   : > { %1224 = vpow2.f32 %v623_v4  ;;  %v622_v6 = vsub.f32 %v611_v50, %v620_v5 }
 0x40f   : > { %v1221_v7 = vpop.eup %1220  ;;  %v625_v8 = vmul.f32 1.442695, %v622_v6 }
 0x410   : > { %v738_v9 = vpop.xlane.xlu0 %737  ;;  %v506_v10 = vsel %vm369_vm2, %v1221_v7, 0.0 }
 0x411   : > { %v1223_v11 = vpop.eup %1222  ;;  %1226 = vpow2.f32 %v625_v8  ;;  %v742_v12 = vsub.f32 %v729_v53, %v738_v9  ;;  %507 = vadd.xlane.f32.xlu0 %v506_v10 }
 0x412   : > { %v509_v13 = vsel %vm369_vm2, %v1223_v11, 0.0  ;;  %v741_v22 = vpop.xlane.xlu1 %740 }
 0x413   : > { %v744_v14 = vmul.f32 1.442695, %v742_v12  ;;  %510 = vadd.xlane.f32.xlu1 %v509_v13  ;;  %v743_v23 = vsub.f32 %v732_v56, %v741_v22 }
 0x415   : > { %1228 = vpow2.f32 %v744_v14  ;;  %v746_v24 = vmul.f32 1.442695, %v743_v23 }
 0x417   : > { %v1225_v15 = vpop.eup %1224  ;;  %1230 = vpow2.f32 %v746_v24 }
 0x418   : > { %v627_v16 = vsel %vm369_vm2, %v1225_v15, 0.0 }
 0x419   : > { %628 = vadd.xlane.f32.xlu0 %v627_v16 }
 0x41b   : > { %v1227_v17 = vpop.eup %1226 }
 0x41c   : > { %v630_v18 = vsel %vm369_vm2, %v1227_v17, 0.0 }
 0x41d   : > { %631 = vadd.xlane.f32.xlu1 %v630_v18 }
 0x41f   : > { %v1229_v19 = vpop.eup %1228 }
 0x420   : > { %v748_v21 = vsel %vm369_vm2, %v1229_v19, 0.0 }
 0x421   : > { %749 = vadd.xlane.f32.xlu0 %v748_v21  ;;  %v1231_v25 = vpop.eup %1230 }
 0x422   : > { %v751_v26 = vsel %vm369_vm2, %v1231_v25, 0.0 }
 0x42e   : > { %638 = vrot.lane.b32.xlu1 %v1703_v20, %s1431_s20 }
 0x437   : > { %517 = vrot.lane.b32.xlu0 %v1703_v20, %s1429_s18 }
 0x452   : > { %752 = vadd.xlane.f32.xlu1 %v751_v26 }
 0x463   : > { %759 = vrot.lane.b32.xlu1 %v1703_v20, %s1430_s24 }
 0x49e   : > { %v508_v28 = vpop.xlane.xlu0 %507 }
 0x4a0   : > { %v511_v27 = vpop.xlane.xlu1 %510 }
 0x4a1   : > { %1232 = vrcp.f32 %v511_v27 }
 0x4a2   : > { %1234 = vrcp.f32 %v508_v28 }
 0x4a6   : > { %v629_v29 = vpop.xlane.xlu0 %628 }
 0x4aa   : > { %v632_v30 = vpop.xlane.xlu1 %631 }
 0x4ab   : > { %1236 = vrcp.f32 %v632_v30  ;;  %v1233_v31 = vpop.eup %1232 }
 0x4ac   : > { %1238 = vrcp.f32 %v629_v29  ;;  %v1235_v33 = vpop.eup %1234  ;;  %v515_v34 = vmul.f32 %v1233_v31, %v1223_v11 }
 0x4ad   : > { %v514_v35 = vmul.f32 %v1235_v33, %v1221_v7 }
 0x4ae   : > { %v750_v32 = vpop.xlane.xlu0 %749  ;;  %v639_v20 = vpop.permute.xlu1 %638 }
 0x4af   : > { %v516_v38 = vpack.c.bf16 %v515_v34, %v514_v35  ;;  %1240 = vrcp.f32 %v750_v32 }
 0x4b2   : > { %v518_v36 = vpop.permute.xlu0 %517 }
 0x4b3   : > { %1081 = vmatpush3.bf16.msra.mxu0 %v518_v36 }
 0x4b4   : > { %1092 = vmatprep.subr.bf16.mxu0 %v1427_v0 }
 0x4b5   : > { %v1237_v40 = vpop.eup %1236 }
 0x4b6   : > { %1083 = vmatmul.mubr.msk.bf16.vlgmr.msra.gmra.mrb[4].mxu0 %vm369_vm2, %v516_v38  ;;  %v1239_v41 = vpop.eup %1238  ;;  %v636_v42 = vmul.f32 %v1237_v40, %v1227_v17 }
 0x4b7   : > { %1093 = vmatpush3.bf16.msra.mxu0 %v639_v20  ;;  %1094 = vmatprep.mubr.msk.bf16.mxu0 %vm1428_vm0, %v1427_v0  ;;  %v635_v43 = vmul.f32 %v1239_v41, %v1225_v15 }
 0x4b8   : > { %1104 = vmatprep.subr.bf16.mxu0 %v1427_v0 }
 0x4b9   : > { %v637_v44 = vpack.c.bf16 %v636_v42, %v635_v43  ;;  %v1241_v47 = vpop.eup %1240 }
 0x4ba   : > { %v756_v49 = vmul.f32 %v1241_v47, %v1229_v19 }
 0x4be   : > { %1095 = vmatmul.mubr.msk.bf16.vlgmr.msra.gmra.mrb[8].mxu0 %vm369_vm2, %v637_v44 }
 0x4bf   : > { %1106 = vmatprep.mubr.msk.bf16.mxu0 %vm1428_vm0, %v1427_v0 }
 0x4df   : > { %v753_v45 = vpop.xlane.xlu1 %752 }
 0x4e0   : > { %1242 = vrcp.f32 %v753_v45 }
 0x4e3   : > { %v760_v46 = vpop.permute.xlu1 %759 }
 0x4e4   : > { %1105 = vmatpush3.bf16.msra.mxu0 %v760_v46 }
 0x4ea   : > { %v1243_v48 = vpop.eup %1242 }
 0x4eb   : > { %v757_v50 = vmul.f32 %v1243_v48, %v1231_v25 }
 0x4ed   : > { %v758_v51 = vpack.c.bf16 %v757_v50, %v756_v49 }
 0x4ef   : > { %1107 = vmatmul.mubr.msk.bf16.vlgmr.msra.gmra.mrb[12].mxu0 %vm369_vm2, %v758_v51 }
 0x589   : > { %v557_v52 = vpop.f32.mrb[4].mxu0 }
 0x58a   : > { %v1084_v53 = vpop.f32.mrb[5].mxu0 }
 0x58b   : > { %v560_v54 = vpop.f32.mrb[6].mxu0 }
 0x58c   : > { %v1194_v55 = vpack.i.bf16 %v560_v54, %v557_v52  ;;  %v1085_v56 = vpop.f32.mrb[7].mxu0 }
 0x58e   : > { %1195 = vrot.lane.b32.xlu1 %v1194_v55, %s1432_s5 }
 0x591   : > { %v678_v0 = vpop.f32.mrb[8].mxu0 }
 0x592   : > { %v1096_v57 = vpop.f32.mrb[9].mxu0 }
 0x593   : > { %v681_v58 = vpop.f32.mrb[10].mxu0 }
 0x594   : > { %v1199_v59 = vpack.i.bf16 %v681_v58, %v678_v0  ;;  %v1097_v60 = vpop.f32.mrb[11].mxu0 }
 0x596   : > { %1200 = vrot.lane.b32.xlu0 %v1199_v59, %s1433_s7 }
 0x5c2   : > { %v799_v61 = vpop.f32.mrb[12].mxu0 }
 0x5c3   : > { %v1108_v62 = vpop.f32.mrb[13].mxu0 }
 0x5c4   : > { %v802_v63 = vpop.f32.mrb[14].mxu0 }
 0x5c5   : > { %v1204_v1 = vpack.i.bf16 %v802_v63, %v799_v61  ;;  %v1109_v2 = vpop.f32.mrb[15].mxu0 }
 0x5c7   : > { %1205 = vrot.lane.b32.xlu1 %v1204_v1, %s1434_s30 }
 0x600   : > { %v1196_v3 = vpop.permute.xlu1 %1195 }
 0x601   : > { %v1198_v5 = vunpack.i.h.bf16 %v1196_v3  ;;  %v1197_v6 = vunpack.i.l.bf16 %v1196_v3 }
 0x603   : > { %v831_v10 = vsel %vm321_vm1, %v1728_v39, %v1198_v5  ;;  %v830_v11 = vsel %vm321_vm1, %v1726_v37, %v1197_v6 }
 0x608   : > { %v1201_v4 = vpop.permute.xlu0 %1200 }
 0x609   : > { %v1203_v7 = vunpack.i.h.bf16 %v1201_v4  ;;  %v1202_v8 = vunpack.i.l.bf16 %v1201_v4 }
 0x60b   : > { %v833_v14 = vsel %vm369_vm2, %v831_v10, %v1203_v7  ;;  %v832_v15 = vsel %vm369_vm2, %v830_v11, %v1202_v8 }
 0x639   : > { %v1206_v9 = vpop.permute.xlu1 %1205 }
 0x63a   : > { %v1208_v12 = vunpack.i.h.bf16 %v1206_v9  ;;  %v1207_v13 = vunpack.i.l.bf16 %v1206_v9 }
 0x63c   : > { %v836_v16 = vsel %vm834_vm3, %v833_v14, %v1208_v12  ;;  %v835_v17 = vsel %vm834_vm3, %v832_v15, %v1207_v13 }
 0x63d   : > { %v1044_v37 = vpack.c.bf16 %v836_v16, %v836_v16  ;;  %v1043_v39 = vpack.c.bf16 %v835_v17, %v835_v17 }
 0x63f   : > { %847 = vst.msk [vmem:[%s301_s8 + $0x4] sm:$0xf] %vm845_vm4, %v1044_v37  ;;  %846 = vst.msk [vmem:[%s301_s8] sm:$0xf] %vm845_vm4, %v1043_v39 }
 0x640   : > { %1347 = shalt.err (!%p1344_p13)
}
 0x641   : > { %s1348_s11 = scalar_lea.hbm %s1768_s28, 128  ;;  %s1352_s18 = scalar_lea.hbm %s1822_s3, 256 }
 0x642   : > { %p1349_p11 = scmp.ne.s32.totalorder %s1768_s28, %s1348_s11  ;;  %p1353_p7 = scmp.lt.u32.totalorder %s1768_s28, %s1822_s3 }
 0x643   : > { %p1354_p4 = scmp.lt.u32.totalorder %s1352_s18, %s1348_s11  ;;  %p1356_p0 = scmp.lt.u32.totalorder %s1348_s11, %s1768_s28 }
 0x644   : > { %p1350_p2 = pnand %p1349_p11, %p1851_p10 }
 0x645   : > { %p1355_p3 = por %p1354_p4, %p1353_p7 }
 0x646   : > { %p1351_p5 = pneg %p1350_p2 }
 0x647   : > { %p1357_p8 = por %p1356_p0, %p1355_p3 }
 0x649   : > { %p1358_p9 = pnand %p1357_p8, %p1351_p5 }
 0x64b   : > { %1361 = shalt.err (!%p1358_p9)
}
 0x64c   : > { %s1436_s20 = smov 64   ;;  %s1437_s5 = smov 4  }
 0x64d   : > { %1116 = dma.vmem_to_hbm [thread:$0]  (%p1851_p10), %s1770_s26, 128, %s1768_s28, %s849_s29, %s1436_s20, %s1436_s20, %s1437_s5  }
 0x64e PF: > { %s880_s7 = sand.u32 1, %s1400_s12   ;;  %p1852_p12 = scmp.ne.s32.totalorder %s1839_s27, 0 }
 0x64f   : > { %p1853_p1 = scmp.ge.s32.totalorder %s1420_s17, 2  ;;  %s881_s30 = scalar_lea.sflag [#allocation4], %s880_s7 }
 0x651   : > { %p1129_p6 = pnand %p1853_p1, %p1852_p12 }
 0x653   : > { %1395 = dma.done.wait (!%p1129_p6), %s881_s30, 128  }
 0x654   : > { %1397 = vsyncadd (!%p1129_p6), %s881_s30, 4294967168  ;;  %s22_s17 = sadd.s32 1, %s1420_s17   ;;  %s1854_s6 = sld [smem:[#allocation14_spill]] }
 0x655   : > { %p19_p13 = scmp.ge.s32.totalorder %s22_s17, 4   ;;  %s1855_s15 = sld [smem:[#allocation12_spill]] }
 0x656   : > { %s1856_s16 = sld [smem:[#allocation13_spill]]  ;;  %s1857_s12 = smov %s1404_s13 }
 0x657   : > { %s1858_s13 = smov %s1408_s14  ;;  %21 = sbr.rel (!%p19_p13) target bundleno = 10 (0xa), region = 101 }
 0x65a   : > { %s1859_s14 = smov %s1854_s6 }
 0x65e   :  { %886 = vsyncpa [#allocation3], 1 }
 0x65f   :  { %888 = vsyncpa [#allocation3 + $0x1], 1 }
 0x660   :  { %889 = vsyncpa [#allocation6], 1 }
 0x661   :  { %891 = vsyncpa [#allocation6 + $0x1], 1 }
 0x662   :  { %892 = vsyncpa [#allocation4], 1 }
 0x663   :  { %894 = vsyncpa [#allocation4 + $0x1], 1 }

// kernel: audio_encoder_forward.17
= control target key start
LH: loop header
LB: loop body
LE: loop exit
PB: predicated region body
PF: predicated region fallthrough
CT: control target
= control target key end

     0   :  { %9 = vsyncpa [#allocation4], 0  ;;  %s489_s0 = inlined_call_operand.hbm [shape: bf16[32,32], index: 0, kind: input, shape index: {}]   ;;  %s490_s1 = inlined_call_operand.hbm [shape: bf16[32,32], index: 1, kind: input, shape index: {}]   ;;  %s491_s2 = inlined_call_operand.vmem [shape: f32[1,32], index: 2, kind: input, shape index: {}]   ;;  %s492_s3 = inlined_call_operand.hbm [shape: bf16[32,32], index: 3, kind: input, shape index: {}, may-alias: {3,4}]   ;;  %s493_s4 = inlined_call_operand.hbm [shape: bf16[32,32], index: 4, kind: output, shape index: {}, may-alias: {3,4}]  }
   0x1   :  { %10 = vsyncpa [#allocation7], 0 }
   0x2   :  { %11 = vsyncpa [#allocation5], 0  ;;  %s377_s15 = smov [#allocation6]   ;;  %s378_s17 = smov [#allocation3]  }
   0x3   :  { %s29_s16 = sshll.u32 %s377_s15, 4  ;;  %s17_s18 = sshll.u32 %s378_s17, 4  ;;  %s30_s16 = int_to_ptr.vmem [resolvable:$true] %s29_s16  ;;  %s409_s18 = int_to_ptr.vmem [resolvable:$true] %s17_s18 }
   0x4   :  { %s283_s21 = scalar_lea.hbm %s490_s1, 256 }
   0x5   :  { %p284_p0 = scmp.ne.s32.totalorder %s490_s1, %s283_s21  ;;  %p287_p1 = scmp.lt.u32.totalorder %s283_s21, %s490_s1 }
   0x7   :  { %p289_p2 = pnand %p287_p1, %p284_p0 }
   0x9   :  { %292 = shalt.err (!%p289_p2)
}
   0xa   :  { %s293_s26 = scalar_lea.vmem %s30_s16, 256  ;;  %p298_p4 = scmp.lt.s32.totalorder %s30_s16, %s30_s16 }
   0xb   :  { %p294_p3 = scmp.ne.s32.totalorder %s30_s16, %s293_s26  ;;  %p299_p5 = scmp.lt.s32.totalorder %s293_s26, %s293_s26 }
   0xd   :  { %p300_p6 = por %p299_p5, %p298_p4 }
   0xf   :  { %p301_p7 = pnand %p300_p6, %p294_p3 }
  0x11   :  { %304 = shalt.err (!%p301_p7)
}
  0x12   :  { %s379_s27 = smov 64   ;;  %s380_s28 = smov 4  }
  0x13   :  { %35 = dma.hbm_to_vmem [thread:$0]  %s490_s1, 256, %s30_s16, [#allocation7], %s379_s27, %s379_s27, %s380_s28  }
  0x14   :  { %s305_s7 = scalar_lea.hbm %s489_s0, 256 }
  0x15   :  { %p306_p8 = scmp.ne.s32.totalorder %s489_s0, %s305_s7  ;;  %p309_p9 = scmp.lt.u32.totalorder %s305_s7, %s489_s0 }
  0x17   :  { %p311_p10 = pnand %p309_p9, %p306_p8 }
  0x19   :  { %314 = shalt.err (!%p311_p10)
}
  0x1a   :  { %s315_s12 = scalar_lea.vmem %s409_s18, 256  ;;  %p320_p12 = scmp.lt.s32.totalorder %s409_s18, %s409_s18 }
  0x1b   :  { %p316_p11 = scmp.ne.s32.totalorder %s409_s18, %s315_s12  ;;  %p321_p13 = scmp.lt.s32.totalorder %s315_s12, %s315_s12 }
  0x1d   :  { %p322_p0 = por %p321_p13, %p320_p12 }
  0x1f   :  { %p323_p1 = pnand %p322_p0, %p316_p11 }
  0x21   :  { %326 = shalt.err (!%p323_p1)
}
  0x22   :  { %23 = dma.hbm_to_vmem [thread:$0]  %s489_s0, 256, %s409_s18, [#allocation4], %s379_s27, %s379_s27, %s380_s28  }
  0x23   :  { %s381_s14 = smov [#allocation8]   ;;  %s327_s19 = scalar_lea.hbm %s492_s3, 256 }
  0x24   :  { %s43_s15 = sshll.u32 %s381_s14, 4  ;;  %p328_p2 = scmp.ne.s32.totalorder %s492_s3, %s327_s19  ;;  %s44_s15 = int_to_ptr.vmem [resolvable:$true] %s43_s15 }
  0x25   :  { %p331_p3 = scmp.lt.u32.totalorder %s327_s19, %s492_s3 }
  0x27   :  { %p333_p4 = pnand %p331_p3, %p328_p2 }
  0x29   :  { %336 = shalt.err (!%p333_p4)
}
  0x2a   :  { %s337_s24 = scalar_lea.vmem %s44_s15, 256  ;;  %p342_p6 = scmp.lt.s32.totalorder %s44_s15, %s44_s15 }
  0x2b   :  { %p338_p5 = scmp.ne.s32.totalorder %s44_s15, %s337_s24  ;;  %p343_p7 = scmp.lt.s32.totalorder %s337_s24, %s337_s24 }
  0x2d   :  { %p344_p8 = por %p343_p7, %p342_p6 }
  0x2f   :  { %p345_p9 = pnand %p344_p8, %p338_p5 }
  0x31   :  { %348 = shalt.err (!%p345_p9)
}
  0x32   :  { %49 = dma.hbm_to_vmem [thread:$0]  %s492_s3, 256, %s44_s15, [#allocation7], %s379_s27, %s379_s27, %s380_s28  }
  0x33   :  { %371 = dma.done.wait [#allocation4], 256  }
  0x34   :  { %372 = vsyncadd [#allocation4], 4294967040 }
  0x35   :  { %373 = dma.done.wait [#allocation7], 512  }
  0x36   :  { %374 = vsyncadd [#allocation7], 4294966784  ;;  %vm64_vm0 = vcmask 261120   ;;  %v382_v0 = vmov 0.0   ;;  %v279_v1 = vld [vmem:[#allocation6] sm:$0xff]   ;;  %v280_v2 = vld [vmem:[#allocation6 + $0x8] sm:$0xff]  }
  0x37   :  { %67 = vst.msk [vmem:[#allocation2 + $0x10] sm:$0xff] %vm64_vm0, %v382_v0  ;;  %65 = vst.msk [vmem:[#allocation2] sm:$0xff] %vm64_vm0, %v382_v0  ;;  %264 = vmatprep.subr.bf16.mxu0 %v279_v1  ;;  %v281_v3 = vld [vmem:[#allocation3] sm:$0xff]   ;;  %v282_v4 = vld [vmem:[#allocation3 + $0x8] sm:$0xff]   ;;  %vm213_vm1 = vcmask 257024   ;;  %s383_s26 = smov [#allocation9]  }
  0x38   :  { %66 = vst.msk [vmem:[#allocation2 + $0x8] sm:$0xff] %vm64_vm0, %v382_v0  ;;  %68 = vst.msk [vmem:[#allocation2 + $0x18] sm:$0xff] %vm64_vm0, %v382_v0  ;;  %265 = vmatpush3.bf16.msra.mxu0 %v279_v1  ;;  %268 = vmatprep.mubr.msk.bf16.mxu0 %vm64_vm0, %v281_v3  ;;  %v259_v17 = vld [vmem:[#allocation8 + $0x8] sm:$0xff]   ;;  %v252_v18 = vld [vmem:[#allocation8] sm:$0xff]   ;;  %s223_s29 = sshll.u32 %s383_s26, 4  ;;  %s224_s29 = int_to_ptr.vmem [resolvable:$true] %s223_s29 }
  0x39   :  { %266 = vmatprep.subr.bf16.mxu0 %v280_v2  ;;  %v242_v19 = vld [vmem:[%s491_s2] ss:$0 sm:$0xff]  ;;  %v257_v20 = vunpack.c.l.bf16 %v259_v17  ;;  %v253_v22 = vunpack.c.l.bf16 %v252_v18  ;;  %v258_v25 = vunpack.c.h.bf16 %v259_v17  ;;  %v254_v28 = vunpack.c.h.bf16 %v252_v18  ;;  %s349_s2 = scalar_lea.vmem %s224_s29, 256  ;;  %p354_p11 = scmp.lt.s32.totalorder %s224_s29, %s224_s29 }
  0x3a   :  { %p350_p10 = scmp.ne.s32.totalorder %s224_s29, %s349_s2  ;;  %p355_p12 = scmp.lt.s32.totalorder %s349_s2, %s349_s2 }
  0x3c   :  { %267 = vmatpush3.bf16.msra.mxu0 %v280_v2  ;;  %p356_p13 = por %p355_p12, %p354_p11 }
  0x3e   :  { %v71_v5 = vld [vmem:[#allocation2 + $0x10] sm:$0xff]  ;;  %v69_v6 = vld [vmem:[#allocation2] sm:$0xff]  ;;  %p357_p0 = pnand %p356_p13, %p350_p10 }
  0x3f   :  { %269 = vmatmul.mubr.msk.bf16.vlgmr.msra.gmra.mrb[0].mxu0 %vm64_vm0, %v282_v4  ;;  %v72_v8 = vld [vmem:[#allocation2 + $0x18] sm:$0xff]  ;;  %v70_v11 = vld [vmem:[#allocation2 + $0x8] sm:$0xff] }
 0x112   :  { %v270_v7 = vpop.f32.mrb[0].mxu0 }
 0x113   :  { %v161_v9 = vadd.f32 %v270_v7, %v71_v5  ;;  %v144_v10 = vpop.f32.mrb[1].mxu0 }
 0x114   :  { %v159_v12 = vadd.f32 %v144_v10, %v69_v6  ;;  %v271_v13 = vpop.f32.mrb[2].mxu0 }
 0x115   :  { %165 = vst.msk [vmem:[#allocation2 + $0x10] sm:$0xff] %vm64_vm0, %v161_v9  ;;  %v162_v14 = vadd.f32 %v271_v13, %v72_v8  ;;  %v147_v15 = vpop.f32.mrb[3].mxu0 }
 0x116   :  { %163 = vst.msk [vmem:[#allocation2] sm:$0xff] %vm64_vm0, %v159_v12  ;;  %v160_v16 = vadd.f32 %v147_v15, %v70_v11 }
 0x117   :  { %166 = vst.msk [vmem:[#allocation2 + $0x18] sm:$0xff] %vm64_vm0, %v162_v14 }
 0x118   :  { %164 = vst.msk [vmem:[#allocation2 + $0x8] sm:$0xff] %vm64_vm0, %v160_v16 }
 0x11c   :  { %v172_v21 = vld [vmem:[#allocation2 + $0x10] sm:$0xff] }
 0x11d   :  { %v170_v23 = vld [vmem:[#allocation2] sm:$0xff]  ;;  %v183_v24 = vadd.f32 %v242_v19, %v172_v21 }
 0x11e   :  { %v173_v26 = vld [vmem:[#allocation2 + $0x18] sm:$0xff]  ;;  %v181_v27 = vadd.f32 %v242_v19, %v170_v23 }
 0x11f   :  { %v171_v29 = vld [vmem:[#allocation2 + $0x8] sm:$0xff]  ;;  %v184_v30 = vadd.f32 %v242_v19, %v173_v26  ;;  %v195_v31 = vadd.f32 %v257_v20, %v183_v24 }
 0x120   :  { %v182_v32 = vadd.f32 %v242_v19, %v171_v29  ;;  %v193_v33 = vadd.f32 %v253_v22, %v181_v27 }
 0x121   :  { %v196_v34 = vadd.f32 %v258_v25, %v184_v30  ;;  %v249_v35 = vpack.c.bf16 %v195_v31, %v195_v31 }
 0x122   :  { %v194_v36 = vadd.f32 %v254_v28, %v182_v32  ;;  %v247_v37 = vpack.c.bf16 %v193_v33, %v193_v33 }
 0x123   :  { %v250_v38 = vpack.c.bf16 %v196_v34, %v196_v34  ;;  %216 = vst.msk [vmem:[#allocation9 + $0x8] sm:$0xf] %vm213_vm1, %v249_v35 }
 0x124   :  { %v248_v39 = vpack.c.bf16 %v194_v36, %v194_v36  ;;  %214 = vst.msk [vmem:[#allocation9] sm:$0xf] %vm213_vm1, %v247_v37 }
 0x125   :  { %217 = vst.msk [vmem:[#allocation9 + $0xc] sm:$0xf] %vm213_vm1, %v250_v38 }
 0x126   :  { %215 = vst.msk [vmem:[#allocation9 + $0x4] sm:$0xf] %vm213_vm1, %v248_v39 }
 0x127   :  { %360 = shalt.err (!%p357_p0)
}
 0x128   :  { %s361_s6 = scalar_lea.hbm %s493_s4, 256 }
 0x129   :  { %p362_p1 = scmp.ne.s32.totalorder %s493_s4, %s361_s6  ;;  %p365_p2 = scmp.lt.u32.totalorder %s361_s6, %s493_s4 }
 0x12b   :  { %p367_p3 = pnand %p365_p2, %p362_p1 }
 0x12d   :  { %370 = shalt.err (!%p367_p3)
}
 0x12e   :  { %229 = dma.vmem_to_hbm [thread:$0]  %s224_s29, 256, %s493_s4, [#allocation5], %s379_s27, %s379_s27, %s380_s28  }
 0x12f   :  { %375 = dma.done.wait [#allocation5], 256  }
 0x130   :  { %376 = vsyncadd [#allocation5], 4294967040 }
 0x131   :  { %233 = vsyncpa [#allocation4], 1 }
 0x132   :  { %234 = vsyncpa [#allocation7], 1 }
 0x133   :  { %235 = vsyncpa [#allocation5], 1 }

// kernel: audio_encoder_forward.18
= control target key start
LH: loop header
LB: loop body
LE: loop exit
PB: predicated region body
PF: predicated region fallthrough
CT: control target
= control target key end

     0   :  { %10 = vsyncpa [#allocation4], 0  ;;  %s361_s18 = smov [#allocation3]   ;;  %s439_s0 = inlined_call_operand.hbm [shape: bf16[32,32], index: 0, kind: input, shape index: {}]   ;;  %s440_s1 = inlined_call_operand.vmem [shape: f32[1,32], index: 1, kind: input, shape index: {}]   ;;  %s441_s2 = inlined_call_operand.vmem [shape: f32[1,32], index: 2, kind: input, shape index: {}]   ;;  %s442_s3 = inlined_call_operand.vmem [shape: bf16[32,128], index: 3, kind: input, shape index: {}]   ;;  %s443_s4 = inlined_call_operand.vmem [shape: f32[1,128], index: 4, kind: input, shape index: {}]   ;;  %s444_s5 = inlined_call_operand.vmem [shape: bf16[32,128], index: 5, kind: output, shape index: {}]  }
   0x1   :  { %s16_s19 = sshll.u32 %s361_s18, 4  ;;  %s337_s22 = scalar_lea.hbm %s439_s0, 256  ;;  %s17_s19 = int_to_ptr.vmem [resolvable:$true] %s16_s19 }
   0x2   :  { %p338_p0 = scmp.ne.s32.totalorder %s439_s0, %s337_s22  ;;  %p341_p1 = scmp.lt.u32.totalorder %s337_s22, %s439_s0 }
   0x4   :  { %p343_p2 = pnand %p341_p1, %p338_p0 }
   0x6   :  { %346 = shalt.err (!%p343_p2)
}
   0x7   :  { %s347_s27 = scalar_lea.vmem %s17_s19, 256  ;;  %p352_p4 = scmp.lt.s32.totalorder %s17_s19, %s17_s19 }
   0x8   :  { %p348_p3 = scmp.ne.s32.totalorder %s17_s19, %s347_s27  ;;  %p353_p5 = scmp.lt.s32.totalorder %s347_s27, %s347_s27 }
   0xa   :  { %p354_p6 = por %p353_p5, %p352_p4 }
   0xc   :  { %p355_p7 = pnand %p354_p6, %p348_p3 }
   0xe   :  { %358 = shalt.err (!%p355_p7)
}
   0xf   :  { %s362_s28 = smov 64   ;;  %s363_s29 = smov 4  }
  0x10   :  { %22 = dma.hbm_to_vmem [thread:$0]  %s439_s0, 256, %s17_s19, [#allocation4], %s362_s28, %s362_s28, %s363_s29  }
  0x11   :  { %359 = dma.done.wait [#allocation4], 256  }
  0x12   :  { %360 = vsyncadd [#allocation4], 4294967040  ;;  %v285_v0 = vld [vmem:[#allocation3] sm:$0xff]   ;;  %vm47_vm0 = vcmask 261120   ;;  %v302_v1 = vld [vmem:[#allocation3 + $0x8] sm:$0xff]  }
  0x13   :  { %v286_v2 = vunpack.c.l.bf16 %v285_v0  ;;  %v290_v3 = vunpack.c.l.bf16 %v302_v1  ;;  %v287_v4 = vunpack.c.h.bf16 %v285_v0  ;;  %v291_v5 = vunpack.c.h.bf16 %v302_v1  ;;  %v319_v30 = vld [vmem:[%s442_s3] sm:$0xff]   ;;  %v320_v31 = vld [vmem:[%s442_s3 + $0x8] sm:$0xff]  }
  0x14   :  { %308 = vmatprep.subr.bf16.mxu0 %v319_v30  ;;  %v269_v46 = vld [vmem:[%s440_s1] ss:$0 sm:$0xff] }
  0x15   :  { %v48_v6 = vsel %vm47_vm0, %v286_v2, 0.0  ;;  %v54_v7 = vsel %vm47_vm0, %v290_v3, 0.0  ;;  %v51_v8 = vsel %vm47_vm0, %v287_v4, 0.0  ;;  %v57_v9 = vsel %vm47_vm0, %v291_v5, 0.0  ;;  %309 = vmatpush3.bf16.msra.mxu0 %v319_v30  ;;  %v270_v51 = vld [vmem:[%s441_s2] ss:$0 sm:$0xff] }
  0x16   :  { %49 = vadd.xlane.f32.xlu0 %v48_v6  ;;  %55 = vadd.xlane.f32.xlu1 %v54_v7 }
  0x17   :  { %310 = vmatprep.subr.bf16.mxu0 %v320_v31 }
  0x19   :  { %311 = vmatpush3.bf16.msra.mxu0 %v320_v31 }
  0x1a   :  { %52 = vadd.xlane.f32.xlu0 %v51_v8  ;;  %58 = vadd.xlane.f32.xlu1 %v57_v9 }
  0xa3   :  { %v50_v10 = vpop.xlane.xlu0 %49  ;;  %v56_v11 = vpop.xlane.xlu1 %55 }
  0xa4   :  { %v61_v12 = vmul.f32 0.03125, %v50_v10  ;;  %v63_v13 = vmul.f32 0.03125, %v56_v11 }
  0xa6   :  { %v65_v14 = vsub.f32 %v286_v2, %v61_v12  ;;  %v67_v15 = vsub.f32 %v290_v3, %v63_v13  ;;  %v271_v2 = vld [vmem:[%s443_s4] ss:$0 sm:$0xff] }
  0xa7   :  { %v53_v16 = vpop.xlane.xlu0 %52  ;;  %v59_v17 = vpop.xlane.xlu1 %58 }
  0xa8   :  { %v62_v18 = vmul.f32 0.03125, %v53_v16  ;;  %v64_v19 = vmul.f32 0.03125, %v59_v17  ;;  %v69_v20 = vmul.f32 %v65_v14, %v65_v14  ;;  %v71_v21 = vmul.f32 %v67_v15, %v67_v15 }
  0xaa   :  { %v66_v22 = vsub.f32 %v287_v4, %v62_v18  ;;  %v68_v23 = vsub.f32 %v291_v5, %v64_v19  ;;  %v73_v24 = vsel %vm47_vm0, %v69_v20, 0.0  ;;  %v79_v25 = vsel %vm47_vm0, %v71_v21, 0.0 }
  0xab   :  { %74 = vadd.xlane.f32.xlu0 %v73_v24 }
  0xac   :  { %v70_v26 = vmul.f32 %v66_v22, %v66_v22  ;;  %v72_v27 = vmul.f32 %v68_v23, %v68_v23 }
  0xae   :  { %v76_v28 = vsel %vm47_vm0, %v70_v26, 0.0  ;;  %v82_v29 = vsel %vm47_vm0, %v72_v27, 0.0 }
  0xaf   :  { %80 = vadd.xlane.f32.xlu0 %v79_v25  ;;  %77 = vadd.xlane.f32.xlu1 %v76_v28 }
  0xb3   :  { %83 = vadd.xlane.f32.xlu1 %v82_v29 }
 0x138   :  { %v75_v32 = vpop.xlane.xlu0 %74 }
 0x139   :  { %v85_v33 = vmul.f32 0.03125, %v75_v32 }
 0x13b   :  { %v89_v34 = vadd.f32 1e-05, %v85_v33 }
 0x13c   :  { %v78_v35 = vpop.xlane.xlu1 %77  ;;  %v81_v36 = vpop.xlane.xlu0 %80 }
 0x13d   :  { %321 = vrsqrt.f32 %v89_v34  ;;  %v86_v37 = vmul.f32 0.03125, %v78_v35  ;;  %v87_v38 = vmul.f32 0.03125, %v81_v36 }
 0x13f   :  { %v90_v39 = vadd.f32 1e-05, %v86_v37  ;;  %v91_v40 = vadd.f32 1e-05, %v87_v38 }
 0x140   :  { %v84_v41 = vpop.xlane.xlu1 %83 }
 0x141   :  { %323 = vrsqrt.f32 %v90_v39  ;;  %v88_v42 = vmul.f32 0.03125, %v84_v41 }
 0x142   :  { %325 = vrsqrt.f32 %v91_v40 }
 0x143   :  { %v92_v43 = vadd.f32 1e-05, %v88_v42 }
 0x145   :  { %327 = vrsqrt.f32 %v92_v43 }
 0x147   :  { %v322_v44 = vpop.eup %321 }
 0x148   :  { %v97_v45 = vmul.f32 %v322_v44, %v65_v14 }
 0x14a   :  { %v108_v49 = vmul.f32 %v269_v46, %v97_v45 }
 0x14b   :  { %v324_v47 = vpop.eup %323 }
 0x14c   :  { %v326_v48 = vpop.eup %325  ;;  %v98_v50 = vmul.f32 %v324_v47, %v66_v22  ;;  %v119_v55 = vadd.f32 %v270_v51, %v108_v49 }
 0x14d   :  { %v99_v52 = vmul.f32 %v326_v48, %v67_v15 }
 0x14e   :  { %v109_v53 = vmul.f32 %v269_v46, %v98_v50 }
 0x14f   :  { %v328_v54 = vpop.eup %327  ;;  %v110_v57 = vmul.f32 %v269_v46, %v99_v52 }
 0x150   :  { %v120_v56 = vadd.f32 %v270_v51, %v109_v53  ;;  %v100_v58 = vmul.f32 %v328_v54, %v68_v23 }
 0x151   :  { %v121_v61 = vadd.f32 %v270_v51, %v110_v57 }
 0x152   :  { %v123_v59 = vpack.c.bf16 %v120_v56, %v119_v55  ;;  %v111_v60 = vmul.f32 %v269_v46, %v100_v58 }
 0x154   :  { %125 = vst.msk [vmem:[#allocation2] sm:$0xff] %vm47_vm0, %v123_v59  ;;  %v122_v62 = vadd.f32 %v270_v51, %v111_v60 }
 0x156   :  { %v124_v63 = vpack.c.bf16 %v122_v62, %v121_v61 }
 0x158   :  { %126 = vst.msk [vmem:[#allocation2 + $0x8] sm:$0xff] %vm47_vm0, %v124_v63 }
 0x15b   :  { %v127_v0 = vld [vmem:[#allocation2] sm:$0xff] }
 0x15c   :  { %312 = vmatprep.mubr.msk.bf16.mxu0 %vm47_vm0, %v127_v0 }
 0x15f   :  { %v128_v1 = vld [vmem:[#allocation2 + $0x8] sm:$0xff] }
 0x160   :  { %313 = vmatmul.mubr.msk.bf16.vlgmr.msra.gmra.mrb[0].mxu0 %vm47_vm0, %v128_v1 }
 0x233   :  { %v314_v3 = vpop.f32.mrb[0].mxu0 }
 0x234   :  { %v202_v4 = vadd.f32 %v314_v3, %v271_v2  ;;  %v193_v5 = vpop.f32.mrb[1].mxu0 }
 0x235   :  { %v194_v6 = vadd.f32 %v271_v2, %v193_v5  ;;  %v315_v7 = vpop.f32.mrb[2].mxu0 }
 0x236   :  { %v214_v8 = vmul.f32 0.044715, %v202_v4  ;;  %v205_v9 = vadd.f32 %v315_v7, %v271_v2  ;;  %v196_v10 = vpop.f32.mrb[3].mxu0  ;;  %v210_v37 = vmul.f32 0.5, %v202_v4 }
 0x237   :  { %v212_v11 = vmul.f32 0.044715, %v194_v6  ;;  %v197_v12 = vadd.f32 %v271_v2, %v196_v10  ;;  %v208_v40 = vmul.f32 0.5, %v194_v6 }
 0x238   :  { %v218_v13 = vmul.f32 %v214_v8, %v202_v4  ;;  %v215_v14 = vmul.f32 0.044715, %v205_v9  ;;  %v211_v38 = vmul.f32 0.5, %v205_v9 }
 0x239   :  { %v216_v15 = vmul.f32 %v212_v11, %v194_v6  ;;  %v213_v16 = vmul.f32 0.044715, %v197_v12  ;;  %v209_v41 = vmul.f32 0.5, %v197_v12 }
 0x23a   :  { %v222_v17 = vmul.f32 %v218_v13, %v202_v4  ;;  %v219_v18 = vmul.f32 %v215_v14, %v205_v9 }
 0x23b   :  { %v220_v19 = vmul.f32 %v216_v15, %v194_v6  ;;  %v217_v20 = vmul.f32 %v213_v16, %v197_v12 }
 0x23c   :  { %v226_v21 = vadd.f32 %v222_v17, %v202_v4  ;;  %v223_v22 = vmul.f32 %v219_v18, %v205_v9 }
 0x23d   :  { %v224_v23 = vadd.f32 %v220_v19, %v194_v6  ;;  %v221_v24 = vmul.f32 %v217_v20, %v197_v12 }
 0x23e   :  { %v230_v25 = vmul.f32 0.7978846, %v226_v21  ;;  %v227_v26 = vadd.f32 %v223_v22, %v205_v9 }
 0x23f   :  { %v228_v27 = vmul.f32 0.7978846, %v224_v23  ;;  %v225_v28 = vadd.f32 %v221_v24, %v197_v12 }
 0x240   :  { %329 = vtanh.f32 %v230_v25  ;;  %v231_v29 = vmul.f32 0.7978846, %v227_v26 }
 0x241   :  { %331 = vtanh.f32 %v228_v27  ;;  %v229_v30 = vmul.f32 0.7978846, %v225_v28 }
 0x242   :  { %333 = vtanh.f32 %v231_v29 }
 0x243   :  { %335 = vtanh.f32 %v229_v30 }
 0x24a   :  { %v330_v31 = vpop.eup %329 }
 0x24b   :  { %v332_v32 = vpop.eup %331  ;;  %v238_v33 = vadd.f32 1.0, %v330_v31 }
 0x24c   :  { %v334_v34 = vpop.eup %333  ;;  %v236_v35 = vadd.f32 1.0, %v332_v32 }
 0x24d   :  { %v336_v36 = vpop.eup %335  ;;  %v239_v39 = vadd.f32 1.0, %v334_v34  ;;  %v242_v43 = vmul.f32 %v238_v33, %v210_v37 }
 0x24e   :  { %v237_v42 = vadd.f32 1.0, %v336_v36  ;;  %v240_v45 = vmul.f32 %v236_v35, %v208_v40 }
 0x24f   :  { %v243_v44 = vmul.f32 %v239_v39, %v211_v38 }
 0x250   :  { %v241_v46 = vmul.f32 %v237_v42, %v209_v41 }
 0x251   :  { %v300_v47 = vpack.c.bf16 %v243_v44, %v242_v43 }
 0x252   :  { %v295_v48 = vpack.c.bf16 %v241_v46, %v240_v45 }
 0x253   :  { %303 = vst [vmem:[%s444_s5 + $0x8] sm:$0xff] %v300_v47  }
 0x254   :  { %296 = vst [vmem:[%s444_s5] sm:$0xff] %v295_v48  }
 0x255   :  { %268 = vsyncpa [#allocation4], 1 }

// kernel: audio_encoder_forward.19
= control target key start
LH: loop header
LB: loop body
LE: loop exit
PB: predicated region body
PF: predicated region fallthrough
CT: control target
= control target key end

     0   :  { %vm22_vm0 = vcmask 261120   ;;  %v293_v1 = vmov 0.0   ;;  %vm215_vm1 = vcmask 257024   ;;  %s378_s1 = inlined_call_operand.vmem [shape: bf16[128,32], index: 1, kind: input, shape index: {}]   ;;  %s379_s0 = inlined_call_operand.vmem [shape: bf16[32,128], index: 0, kind: input, shape index: {}]   ;;  %s380_s3 = inlined_call_operand.vmem [shape: bf16[32,32], index: 3, kind: input, shape index: {}, may-alias: {3,4}]   ;;  %s381_s2 = inlined_call_operand.vmem [shape: f32[1,32], index: 2, kind: input, shape index: {}]   ;;  %s382_s4 = inlined_call_operand.vmem [shape: bf16[32,32], index: 4, kind: output, shape index: {}, may-alias: {3,4}]  }
   0x1   :  { %v283_v0 = vld [vmem:[%s378_s1] sm:$0xff]   ;;  %25 = vst.msk [vmem:[#allocation2 + $0x10] sm:$0xff] %vm22_vm0, %v293_v1  ;;  %23 = vst.msk [vmem:[#allocation2] sm:$0xff] %vm22_vm0, %v293_v1  ;;  %v284_v2 = vld [vmem:[%s378_s1 + $0x8] sm:$0xff]  }
   0x2   :  { %24 = vst.msk [vmem:[#allocation2 + $0x8] sm:$0xff] %vm22_vm0, %v293_v1  ;;  %26 = vst.msk [vmem:[#allocation2 + $0x18] sm:$0xff] %vm22_vm0, %v293_v1  ;;  %262 = vmatprep.subr.bf16.mxu0 %v283_v0  ;;  %v285_v3 = vld [vmem:[%s378_s1 + $0x10] sm:$0xff]   ;;  %v286_v4 = vld [vmem:[%s378_s1 + $0x18] sm:$0xff]  }
   0x3   :  { %263 = vmatpush3.bf16.msra.mxu0 %v283_v0  ;;  %v291_v5 = vld [vmem:[%s379_s0] sm:$0xff]   ;;  %v288_v7 = vld [vmem:[%s378_s1 + $0x28] sm:$0xff]   ;;  %v289_v8 = vld [vmem:[%s378_s1 + $0x30] sm:$0xff]  }
   0x4   :  { %264 = vmatprep.subr.bf16.mxu0 %v284_v2  ;;  %278 = vmatprep.mubr.bf16.mxu0 %v291_v5  ;;  %v287_v6 = vld [vmem:[%s378_s1 + $0x20] sm:$0xff]   ;;  %v290_v9 = vld [vmem:[%s378_s1 + $0x38] sm:$0xff]   ;;  %v292_v10 = vld [vmem:[%s379_s0 + $0x8] sm:$0xff]  }
   0x5   :  { %v251_v23 = vld [vmem:[%s380_s3 + $0x8] sm:$0xff]   ;;  %v244_v24 = vld [vmem:[%s380_s3] sm:$0xff]  }
   0x6   :  { %v234_v25 = vld [vmem:[%s381_s2] ss:$0 sm:$0xff]  ;;  %v249_v26 = vunpack.c.l.bf16 %v251_v23  ;;  %v245_v28 = vunpack.c.l.bf16 %v244_v24  ;;  %v250_v31 = vunpack.c.h.bf16 %v251_v23  ;;  %v246_v34 = vunpack.c.h.bf16 %v244_v24 }
   0x7   :  { %265 = vmatpush3.bf16.msra.mxu0 %v284_v2 }
   0x8   :  { %266 = vmatprep.subr.bf16.mxu0 %v285_v3  ;;  %v29_v11 = vld [vmem:[#allocation2 + $0x10] sm:$0xff]  ;;  %v27_v12 = vld [vmem:[#allocation2] sm:$0xff] }
   0x9   :  { %v30_v14 = vld [vmem:[#allocation2 + $0x18] sm:$0xff]  ;;  %v28_v17 = vld [vmem:[#allocation2 + $0x8] sm:$0xff] }
   0xb   :  { %267 = vmatpush3.bf16.msra.mxu0 %v285_v3 }
   0xc   :  { %268 = vmatprep.subr.bf16.mxu0 %v286_v4 }
   0xf   :  { %269 = vmatpush3.bf16.msra.mxu0 %v286_v4 }
  0x10   :  { %270 = vmatprep.subr.bf16.mxu0 %v287_v6 }
  0x13   :  { %271 = vmatpush3.bf16.msra.mxu0 %v287_v6 }
  0x14   :  { %272 = vmatprep.subr.bf16.mxu0 %v288_v7 }
  0x17   :  { %273 = vmatpush3.bf16.msra.mxu0 %v288_v7 }
  0x18   :  { %274 = vmatprep.subr.bf16.mxu0 %v289_v8 }
  0x1b   :  { %275 = vmatpush3.bf16.msra.mxu0 %v289_v8 }
  0x1c   :  { %276 = vmatprep.subr.bf16.mxu0 %v290_v9 }
  0x1f   :  { %277 = vmatpush3.bf16.msra.mxu0 %v290_v9 }
  0x22   :  { %279 = vmatmul.mubr.bf16.vlgmr.msra.gmra.mrb[0].mxu0 %v292_v10 }
  0xf5   :  { %v280_v13 = vpop.f32.mrb[0].mxu0 }
  0xf6   :  { %v162_v15 = vadd.f32 %v280_v13, %v29_v11  ;;  %v145_v16 = vpop.f32.mrb[1].mxu0 }
  0xf7   :  { %v160_v18 = vadd.f32 %v145_v16, %v27_v12  ;;  %v281_v19 = vpop.f32.mrb[2].mxu0 }
  0xf8   :  { %167 = vst.msk [vmem:[#allocation2 + $0x10] sm:$0xff] %vm22_vm0, %v162_v15  ;;  %v163_v20 = vadd.f32 %v281_v19, %v30_v14  ;;  %v148_v21 = vpop.f32.mrb[3].mxu0 }
  0xf9   :  { %165 = vst.msk [vmem:[#allocation2] sm:$0xff] %vm22_vm0, %v160_v18  ;;  %v161_v22 = vadd.f32 %v148_v21, %v28_v17 }
  0xfa   :  { %168 = vst.msk [vmem:[#allocation2 + $0x18] sm:$0xff] %vm22_vm0, %v163_v20 }
  0xfb   :  { %166 = vst.msk [vmem:[#allocation2 + $0x8] sm:$0xff] %vm22_vm0, %v161_v22 }
  0xff   :  { %v174_v27 = vld [vmem:[#allocation2 + $0x10] sm:$0xff] }
 0x100   :  { %v185_v29 = vadd.f32 %v234_v25, %v174_v27  ;;  %v172_v30 = vld [vmem:[#allocation2] sm:$0xff] }
 0x101   :  { %v183_v32 = vadd.f32 %v234_v25, %v172_v30  ;;  %v175_v33 = vld [vmem:[#allocation2 + $0x18] sm:$0xff] }
 0x102   :  { %v197_v35 = vadd.f32 %v249_v26, %v185_v29  ;;  %v186_v36 = vadd.f32 %v234_v25, %v175_v33  ;;  %v173_v37 = vld [vmem:[#allocation2 + $0x8] sm:$0xff] }
 0x103   :  { %v195_v38 = vadd.f32 %v245_v28, %v183_v32  ;;  %v184_v39 = vadd.f32 %v234_v25, %v173_v37 }
 0x104   :  { %v241_v40 = vpack.c.bf16 %v197_v35, %v197_v35  ;;  %v198_v41 = vadd.f32 %v250_v31, %v186_v36 }
 0x105   :  { %v239_v42 = vpack.c.bf16 %v195_v38, %v195_v38  ;;  %v196_v43 = vadd.f32 %v246_v34, %v184_v39 }
 0x106   :  { %218 = vst.msk [vmem:[%s382_s4 + $0x8] sm:$0xf] %vm215_vm1, %v241_v40  ;;  %v242_v44 = vpack.c.bf16 %v198_v41, %v198_v41 }
 0x107   :  { %216 = vst.msk [vmem:[%s382_s4] sm:$0xf] %vm215_vm1, %v239_v42  ;;  %v240_v45 = vpack.c.bf16 %v196_v43, %v196_v43 }
 0x108   :  { %219 = vst.msk [vmem:[%s382_s4 + $0xc] sm:$0xf] %vm215_vm1, %v242_v44 }
 0x109   :  { %217 = vst.msk [vmem:[%s382_s4 + $0x4] sm:$0xf] %vm215_vm1, %v240_v45 }

// kernel: audio_encoder_forward.20
= control target key start
LH: loop header
LB: loop body
LE: loop exit
PB: predicated region body
PF: predicated region fallthrough
CT: control target
= control target key end

     0   :  { %vm33_vm0 = vcmask 261120   ;;  %vm210_vm1 = vcmask 781312   ;;  %s340_s0 = inlined_call_operand.vmem [shape: bf16[32,32], index: 0, kind: input, shape index: {}]   ;;  %s341_s3 = inlined_call_operand.vmem [shape: bf16[32,96], index: 3, kind: input, shape index: {}]   ;;  %s342_s1 = inlined_call_operand.vmem [shape: f32[1,32], index: 1, kind: input, shape index: {}]   ;;  %s343_s2 = inlined_call_operand.vmem [shape: f32[1,32], index: 2, kind: input, shape index: {}]   ;;  %s344_s4 = inlined_call_operand.vmem [shape: f32[1,96], index: 4, kind: input, shape index: {}]   ;;  %s345_s5 = inlined_call_operand.vmem [shape: bf16[32,96], index: 5, kind: output, shape index: {}]  }
   0x1   :  { %v235_v0 = vld [vmem:[%s340_s0] sm:$0xff]   ;;  %v242_v1 = vld [vmem:[%s340_s0 + $0x8] sm:$0xff]  }
   0x2   :  { %v236_v2 = vunpack.c.l.bf16 %v235_v0  ;;  %v240_v3 = vunpack.c.l.bf16 %v242_v1  ;;  %v237_v4 = vunpack.c.h.bf16 %v235_v0  ;;  %v241_v5 = vunpack.c.h.bf16 %v242_v1  ;;  %v255_v30 = vld [vmem:[%s341_s3] sm:$0xff]   ;;  %v256_v31 = vld [vmem:[%s341_s3 + $0x8] sm:$0xff]  }
   0x3   :  { %247 = vmatprep.subr.bf16.mxu0 %v255_v30  ;;  %v219_v46 = vld [vmem:[%s342_s1] ss:$0 sm:$0xff] }
   0x4   :  { %v34_v6 = vsel %vm33_vm0, %v236_v2, 0.0  ;;  %v40_v7 = vsel %vm33_vm0, %v240_v3, 0.0  ;;  %v37_v8 = vsel %vm33_vm0, %v237_v4, 0.0  ;;  %v43_v9 = vsel %vm33_vm0, %v241_v5, 0.0  ;;  %248 = vmatpush3.bf16.msra.mxu0 %v255_v30  ;;  %v220_v51 = vld [vmem:[%s343_s2] ss:$0 sm:$0xff] }
   0x5   :  { %35 = vadd.xlane.f32.xlu0 %v34_v6  ;;  %41 = vadd.xlane.f32.xlu1 %v40_v7 }
   0x6   :  { %249 = vmatprep.subr.bf16.mxu0 %v256_v31 }
   0x8   :  { %250 = vmatpush3.bf16.msra.mxu0 %v256_v31 }
   0x9   :  { %38 = vadd.xlane.f32.xlu0 %v37_v8  ;;  %44 = vadd.xlane.f32.xlu1 %v43_v9 }
  0x92   :  { %v36_v10 = vpop.xlane.xlu0 %35  ;;  %v42_v11 = vpop.xlane.xlu1 %41 }
  0x93   :  { %v47_v12 = vmul.f32 0.03125, %v36_v10  ;;  %v49_v13 = vmul.f32 0.03125, %v42_v11 }
  0x95   :  { %v51_v14 = vsub.f32 %v236_v2, %v47_v12  ;;  %v53_v15 = vsub.f32 %v240_v3, %v49_v13  ;;  %v221_v2 = vld [vmem:[%s344_s4] ss:$0 sm:$0xff] }
  0x96   :  { %v39_v16 = vpop.xlane.xlu0 %38  ;;  %v45_v17 = vpop.xlane.xlu1 %44 }
  0x97   :  { %v48_v18 = vmul.f32 0.03125, %v39_v16  ;;  %v50_v19 = vmul.f32 0.03125, %v45_v17  ;;  %v55_v20 = vmul.f32 %v51_v14, %v51_v14  ;;  %v57_v21 = vmul.f32 %v53_v15, %v53_v15 }
  0x99   :  { %v52_v22 = vsub.f32 %v237_v4, %v48_v18  ;;  %v54_v23 = vsub.f32 %v241_v5, %v50_v19  ;;  %v59_v24 = vsel %vm33_vm0, %v55_v20, 0.0  ;;  %v65_v25 = vsel %vm33_vm0, %v57_v21, 0.0 }
  0x9a   :  { %60 = vadd.xlane.f32.xlu0 %v59_v24 }
  0x9b   :  { %v56_v26 = vmul.f32 %v52_v22, %v52_v22  ;;  %v58_v27 = vmul.f32 %v54_v23, %v54_v23 }
  0x9d   :  { %v62_v28 = vsel %vm33_vm0, %v56_v26, 0.0  ;;  %v68_v29 = vsel %vm33_vm0, %v58_v27, 0.0 }
  0x9e   :  { %66 = vadd.xlane.f32.xlu0 %v65_v25  ;;  %63 = vadd.xlane.f32.xlu1 %v62_v28 }
  0xa2   :  { %69 = vadd.xlane.f32.xlu1 %v68_v29 }
 0x127   :  { %v61_v32 = vpop.xlane.xlu0 %60 }
 0x128   :  { %v71_v33 = vmul.f32 0.03125, %v61_v32 }
 0x12a   :  { %v75_v34 = vadd.f32 1e-05, %v71_v33 }
 0x12b   :  { %v64_v35 = vpop.xlane.xlu1 %63  ;;  %v67_v36 = vpop.xlane.xlu0 %66 }
 0x12c   :  { %257 = vrsqrt.f32 %v75_v34  ;;  %v72_v37 = vmul.f32 0.03125, %v64_v35  ;;  %v73_v38 = vmul.f32 0.03125, %v67_v36 }
 0x12e   :  { %v76_v39 = vadd.f32 1e-05, %v72_v37  ;;  %v77_v40 = vadd.f32 1e-05, %v73_v38 }
 0x12f   :  { %v70_v41 = vpop.xlane.xlu1 %69 }
 0x130   :  { %259 = vrsqrt.f32 %v76_v39  ;;  %v74_v42 = vmul.f32 0.03125, %v70_v41 }
 0x131   :  { %261 = vrsqrt.f32 %v77_v40 }
 0x132   :  { %v78_v43 = vadd.f32 1e-05, %v74_v42 }
 0x134   :  { %263 = vrsqrt.f32 %v78_v43 }
 0x136   :  { %v258_v44 = vpop.eup %257 }
 0x137   :  { %v83_v45 = vmul.f32 %v258_v44, %v51_v14 }
 0x139   :  { %v94_v49 = vmul.f32 %v219_v46, %v83_v45 }
 0x13a   :  { %v260_v47 = vpop.eup %259 }
 0x13b   :  { %v262_v48 = vpop.eup %261  ;;  %v84_v50 = vmul.f32 %v260_v47, %v52_v22  ;;  %v105_v55 = vadd.f32 %v220_v51, %v94_v49 }
 0x13c   :  { %v85_v52 = vmul.f32 %v262_v48, %v53_v15 }
 0x13d   :  { %v95_v53 = vmul.f32 %v219_v46, %v84_v50 }
 0x13e   :  { %v264_v54 = vpop.eup %263  ;;  %v96_v57 = vmul.f32 %v219_v46, %v85_v52 }
 0x13f   :  { %v106_v56 = vadd.f32 %v220_v51, %v95_v53  ;;  %v86_v58 = vmul.f32 %v264_v54, %v54_v23 }
 0x140   :  { %v107_v61 = vadd.f32 %v220_v51, %v96_v57 }
 0x141   :  { %v109_v59 = vpack.c.bf16 %v106_v56, %v105_v55  ;;  %v97_v60 = vmul.f32 %v219_v46, %v86_v58 }
 0x143   :  { %111 = vst.msk [vmem:[#allocation2] sm:$0xff] %vm33_vm0, %v109_v59  ;;  %v108_v62 = vadd.f32 %v220_v51, %v97_v60 }
 0x145   :  { %v110_v63 = vpack.c.bf16 %v108_v62, %v107_v61 }
 0x147   :  { %112 = vst.msk [vmem:[#allocation2 + $0x8] sm:$0xff] %vm33_vm0, %v110_v63 }
 0x14a   :  { %v113_v0 = vld [vmem:[#allocation2] sm:$0xff] }
 0x14b   :  { %251 = vmatprep.mubr.msk.bf16.mxu0 %vm33_vm0, %v113_v0 }
 0x14e   :  { %v114_v1 = vld [vmem:[#allocation2 + $0x8] sm:$0xff] }
 0x14f   :  { %252 = vmatmul.mubr.msk.bf16.vlgmr.msra.gmra.mrb[0].mxu0 %vm33_vm0, %v114_v1 }
 0x222   :  { %v253_v3 = vpop.f32.mrb[0].mxu0 }
 0x223   :  { %v188_v4 = vadd.f32 %v253_v3, %v221_v2  ;;  %v179_v5 = vpop.f32.mrb[1].mxu0 }
 0x224   :  { %v180_v6 = vadd.f32 %v221_v2, %v179_v5  ;;  %v254_v7 = vpop.f32.mrb[2].mxu0 }
 0x225   :  { %v232_v8 = vpack.c.bf16 %v188_v4, %v188_v4  ;;  %v191_v9 = vadd.f32 %v254_v7, %v221_v2  ;;  %v182_v10 = vpop.f32.mrb[3].mxu0 }
 0x226   :  { %v230_v11 = vpack.c.bf16 %v180_v6, %v180_v6  ;;  %v183_v12 = vadd.f32 %v221_v2, %v182_v10 }
 0x227   :  { %213 = vst.msk [vmem:[%s345_s5 + $0x8] sm:$0xf] %vm210_vm1, %v232_v8  ;;  %v233_v13 = vpack.c.bf16 %v191_v9, %v191_v9 }
 0x228   :  { %211 = vst.msk [vmem:[%s345_s5] sm:$0xf] %vm210_vm1, %v230_v11  ;;  %v231_v14 = vpack.c.bf16 %v183_v12, %v183_v12 }
 0x229   :  { %214 = vst.msk [vmem:[%s345_s5 + $0xc] sm:$0xf] %vm210_vm1, %v233_v13 }
 0x22a   :  { %212 = vst.msk [vmem:[%s345_s5 + $0x4] sm:$0xf] %vm210_vm1, %v231_v14 }

// kernel: audio_encoder_forward.25
= control target key start
LH: loop header
LB: loop body
LE: loop exit
PB: predicated region body
PF: predicated region fallthrough
CT: control target
= control target key end

     0   :  { %s307_s0 = inlined_call_operand.vmem [shape: bf16[16,64], index: 0, kind: input, shape index: {}]   ;;  %s308_s1 = inlined_call_operand.vmem [shape: f32[1,32], index: 1, kind: input, shape index: {}]   ;;  %s309_s2 = inlined_call_operand.vmem [shape: f32[1,32], index: 2, kind: input, shape index: {}]   ;;  %s310_s3 = inlined_call_operand.vmem [shape: bf16[32,32], index: 3, kind: input, shape index: {}]   ;;  %s311_s4 = inlined_call_operand.vmem [shape: f32[1,32], index: 4, kind: input, shape index: {}]   ;;  %s312_s5 = inlined_call_operand.hbm [shape: f32[16,32], index: 5, kind: output, shape index: {}]  }
   0x1   :  { %v177_v0 = vld [vmem:[%s307_s0] sm:$0xff]  }
   0x2   :  { %v178_v1 = vunpack.c.l.bf16 %v177_v0  ;;  %v179_v2 = vunpack.c.h.bf16 %v177_v0 }
   0x3   :  { %10 = vsyncpa [#allocation3], 0  ;;  %s234_s20 = smov 96   ;;  %vm38_vm0 = vcmask 261120   ;;  %v202_v21 = vld [vmem:[%s310_s3] sm:$0xff]   ;;  %v235_v22 = vmov 0.0  }
   0x4   :  { %v197_v3 = vpack.i.bf16 %v179_v2, %v178_v1  ;;  %183 = vmatprep.subr.bf16.mxu0 %v235_v22  ;;  %v203_v23 = vld [vmem:[%s310_s3 + $0x8] sm:$0xff]   ;;  %vm236_vm1 = vmmov 0   ;;  %v170_v32 = vld [vmem:[%s308_s1] ss:$0 sm:$0xff]  ;;  %s237_s29 = smov [#allocation2]  }
   0x5   :  { %184 = vmatpush3.bf16.msra.mxu0 %v202_v21  ;;  %187 = vmatprep.mubr.msk.bf16.mxu0 %vm236_vm1, %v235_v22  ;;  %v171_v36 = vld [vmem:[%s309_s2] ss:$0 sm:$0xff]  ;;  %s159_s30 = sshll.u32 %s237_s29, 4  ;;  %s160_s30 = int_to_ptr.vmem [resolvable:$true] %s159_s30 }
   0x6   :  { %198 = vrot.lane.b32.xlu0 %v197_v3, %s234_s20  ;;  %185 = vmatprep.subr.bf16.mxu0 %v235_v22  ;;  %v172_v41 = vld [vmem:[%s311_s4] ss:$0 sm:$0xff]  ;;  %s210_s1 = scalar_lea.vmem %s160_s30, 256  ;;  %p215_p1 = scmp.lt.s32.totalorder %s160_s30, %s160_s30 }
   0x7   :  { %p211_p0 = scmp.ne.s32.totalorder %s160_s30, %s210_s1  ;;  %p216_p2 = scmp.lt.s32.totalorder %s210_s1, %s210_s1 }
   0x9   :  { %186 = vmatpush3.bf16.msra.mxu0 %v203_v23  ;;  %p217_p3 = por %p216_p2, %p215_p1 }
   0xb   :  { %p218_p4 = pnand %p217_p3, %p211_p0 }
  0x78   :  { %v199_v4 = vpop.permute.xlu0 %198 }
  0x79   :  { %v208_v5 = vadd.high.f32.bf16 %v179_v2, %v199_v4  ;;  %v209_v6 = vadd.low.f32.bf16 %v178_v1, %v199_v4 }
  0x7b   :  { %v37_v7 = vmul.f32 0.5, %v208_v5  ;;  %v36_v8 = vmul.f32 0.5, %v209_v6 }
  0x7d   :  { %v42_v9 = vsel %vm38_vm0, %v37_v7, 0.0  ;;  %v39_v10 = vsel %vm38_vm0, %v36_v8, 0.0 }
  0x7e   :  { %43 = vadd.xlane.f32.xlu1 %v42_v9  ;;  %40 = vadd.xlane.f32.xlu0 %v39_v10 }
 0x10b   :  { %v44_v11 = vpop.xlane.xlu1 %43  ;;  %v41_v12 = vpop.xlane.xlu0 %40 }
 0x10c   :  { %v47_v13 = vmul.f32 0.03125, %v44_v11  ;;  %v46_v14 = vmul.f32 0.03125, %v41_v12 }
 0x10e   :  { %v49_v15 = vsub.f32 %v37_v7, %v47_v13  ;;  %v48_v16 = vsub.f32 %v36_v8, %v46_v14 }
 0x110   :  { %v50_v17 = vmul.f32 %v48_v16, %v48_v16  ;;  %v51_v19 = vmul.f32 %v49_v15, %v49_v15 }
 0x112   :  { %v52_v18 = vsel %vm38_vm0, %v50_v17, 0.0  ;;  %v55_v20 = vsel %vm38_vm0, %v51_v19, 0.0 }
 0x113   :  { %53 = vadd.xlane.f32.xlu1 %v52_v18 }
 0x117   :  { %56 = vadd.xlane.f32.xlu1 %v55_v20 }
 0x1a0   :  { %v54_v24 = vpop.xlane.xlu1 %53 }
 0x1a1   :  { %v58_v25 = vmul.f32 0.03125, %v54_v24 }
 0x1a3   :  { %v60_v26 = vadd.f32 1e-05, %v58_v25 }
 0x1a4   :  { %v57_v27 = vpop.xlane.xlu1 %56 }
 0x1a5   :  { %204 = vrsqrt.f32 %v60_v26  ;;  %v59_v28 = vmul.f32 0.03125, %v57_v27 }
 0x1a7   :  { %v61_v29 = vadd.f32 1e-05, %v59_v28 }
 0x1a9   :  { %206 = vrsqrt.f32 %v61_v29 }
 0x1af   :  { %v205_v30 = vpop.eup %204 }
 0x1b0   :  { %v64_v31 = vmul.f32 %v205_v30, %v48_v16 }
 0x1b2   :  { %v73_v35 = vmul.f32 %v170_v32, %v64_v31 }
 0x1b3   :  { %v207_v33 = vpop.eup %206 }
 0x1b4   :  { %v65_v34 = vmul.f32 %v207_v33, %v49_v15  ;;  %v82_v38 = vadd.f32 %v171_v36, %v73_v35 }
 0x1b6   :  { %v74_v37 = vmul.f32 %v170_v32, %v65_v34 }
 0x1b8   :  { %v83_v39 = vadd.f32 %v171_v36, %v74_v37 }
 0x1ba   :  { %v84_v40 = vpack.c.bf16 %v83_v39, %v82_v38 }
 0x1bc   :  { %188 = vmatmul.mubr.msk.bf16.vlgmr.msra.gmra.mrb[0].mxu0 %vm38_vm0, %v84_v40 }
 0x28f   :  { %v145_v42 = vpop.f32.mrb[0].mxu0 }
 0x290   :  { %v146_v43 = vadd.f32 %v172_v41, %v145_v42  ;;  %v189_v44 = vpop.f32.mrb[1].mxu0 }
 0x291   :  { %v148_v45 = vpop.f32.mrb[2].mxu0 }
 0x292   :  { %152 = vst.msk [vmem:[#allocation2] sm:$0xff] %vm38_vm0, %v146_v43  ;;  %v149_v46 = vadd.f32 %v172_v41, %v148_v45  ;;  %v190_v47 = vpop.f32.mrb[3].mxu0 }
 0x294   :  { %153 = vst.msk [vmem:[#allocation2 + $0x8] sm:$0xff] %vm38_vm0, %v149_v46 }
 0x295   :  { %221 = shalt.err (!%p218_p4)
}
 0x296   :  { %s222_s6 = scalar_lea.hbm %s312_s5, 256 }
 0x297   :  { %p223_p5 = scmp.ne.s32.totalorder %s312_s5, %s222_s6  ;;  %p226_p6 = scmp.lt.u32.totalorder %s222_s6, %s312_s5 }
 0x299   :  { %p228_p7 = pnand %p226_p6, %p223_p5 }
 0x29b   :  { %231 = shalt.err (!%p228_p7)
}
 0x29c   :  { %s238_s11 = smov 128   ;;  %s239_s12 = smov 8  }
 0x29d   :  { %165 = dma.vmem_to_hbm [thread:$0]  %s160_s30, 256, %s312_s5, [#allocation3], %s238_s11, %s238_s11, %s239_s12  }
 0x29e   :  { %232 = dma.done.wait [#allocation3], 256  }
 0x29f   :  { %233 = vsyncadd [#allocation3], 4294967040 }
 0x2a0   :  { %169 = vsyncpa [#allocation3], 1 }

</bundles_post_ra>
